<compile_context>
chip_gen: v7x
topology: tpu7x:2x2x1
jax: 0.10.0
libtpu: 0.0.40
codegen_flags: <defaults>
</compile_context>

<pallas_src>
import jax
import jax.numpy as jnp
from jax import lax
from jax.experimental import pallas as pl
from jax.experimental.pallas import tpu as pltpu

LANE = 128  # TPU lane width; channel dim is padded up to a multiple of this.


def _tpu_vmem_capacity_bytes():
    try:
        info = pltpu.get_tpu_info()
        cap = getattr(info, "vmem_capacity_bytes", None)
        if cap:
            return int(cap)
    except Exception:
        pass
    return 64 << 20  # conservative default (v7x per-TensorCore VMEM)


def _estimate_step_vmem_bytes(TH, W, Cp, compute_itemsize):
    """Rough per-grid-step VMEM footprint (double-buffered I/O + scratches + temporaries)."""
    f32 = 4
    cs = compute_itemsize
    tile = TH * W * Cp
    win = (TH + 4) * W * Cp
    h1 = (TH + 2) * W * Cp
    halo = 2 * W * Cp
    total = 0
    total += 2 * 2 * tile * f32            # x core in + output, double-buffered
    total += 2 * 2 * halo * f32            # top/bottom halo inputs, double-buffered
    total += 2 * 2 * 9 * Cp * Cp * cs      # w1 + w2, double-buffered (constant index_map)
    total += 2 * 2 * Cp * f32              # biases
    total += (win + h1) * f32              # win / h1 scratches
    # compiler temporaries: f32 shifted windows, compute-dtype LHS copies,
    # f32 conv accumulator, output value before the store
    total += 2 * win * f32 + 3 * win * cs + h1 * f32 + tile * f32
    return total


def _pick_row_tile(H, W, Cp, compute_itemsize, vmem_budget, row_tile=None):
    if row_tile is not None:
        return row_tile
    cands = [th for th in range(2, H + 1, 2) if H % th == 0]
    # Prefer >= 2 row tiles so the v7x 2-TC megacore split has work even when N == 1.
    multi = [th for th in cands if H // th >= 2]
    if multi:
        cands = multi
    best = cands[0]
    for th in cands:
        if _estimate_step_vmem_bytes(th, W, Cp, compute_itemsize) <= vmem_budget:
            best = max(best, th)
    return best


def _make_rcu_kernel(W, TH, Cp, compute_dtype):
    n_win = (TH + 4) * W   # conv1 input rows (2-row halo each side), flattened row-major
    n_h1 = (TH + 2) * W    # conv1 output rows we keep (1-row halo for conv2)
    n_out = TH * W         # output tile rows

    def conv3x3(src_ref, n_src, w_ref, out_rows):
        """3x3 SAME conv as 9 accumulating K=Cp MXU matmuls (f32 accumulation).

        src_ref: (n_src, Cp) f32 scratch holding the activated/masked conv input; it carries
        one extra image row of halo above and below the out_rows // W output rows.
        Tap (dy, dx) multiplies by w_ref[(dy+1)*3 + (dx+1)] (matching the host-side
        (3,3,Cp,Cp) -> (9,Cp,Cp) reshape).
        """
        center = src_ref[...]                                             # f32 window
        col = lax.broadcasted_iota(jnp.int32, (n_src, 1), 0) % W
        # Flat +-1 row shifts == +-1 column shifts inside an image row; wrap-around and
        # cross-row leakage land exactly on the positions zeroed by the column masks.
        # NOTE: pltpu.roll(center, -+1, axis=0) (XLU sublane rotate) is the cheaper form of
        # these shifts; slice+concat is kept for guaranteed lowering.
        up = jnp.concatenate([center[1:], center[:1]], axis=0)            # up[f] = center[f+1]
        dn = jnp.concatenate([center[-1:], center[:-1]], axis=0)          # dn[f] = center[f-1]
        zeros = jnp.zeros_like(center)
        # Cast once per shifted variant (3 casts/conv instead of 9 per-tap casts).
        srcs = (jnp.where(col > 0, dn, zeros).astype(compute_dtype),          # dx = -1
                center.astype(compute_dtype),                                 # dx =  0
                jnp.where(col < (W - 1), up, zeros).astype(compute_dtype))    # dx = +1
        acc = None
        for dy in (-1, 0, 1):
            base = (1 + dy) * W                     # sublane-aligned (multiple of W)
            for dx in (-1, 0, 1):
                k = (dy + 1) * 3 + (dx + 1)
                lhs = srcs[dx + 1][base:base + out_rows]
                part = jnp.dot(lhs, w_ref[k], preferred_element_type=jnp.float32)
                acc = part if acc is None else acc + part
        return acc

    def kernel(x_core_ref, x_top_ref, x_bot_ref, w1_ref, b1_ref, w2_ref, b2_ref,
               o_ref, win_ref, h1_ref):
        t = pl.program_id(1)
        last_t = pl.num_programs(1) - 1

        # ---- Stage 0: ReLU(x) into the haloed window scratch (f32, flat row-major) ----
        win_ref[0:2 * W, :] = jnp.maximum(x_top_ref[0], 0.0)
        win_ref[2 * W:(TH + 2) * W, :] = jnp.maximum(x_core_ref[0], 0.0)
        win_ref[(TH + 2) * W:(TH + 4) * W, :] = jnp.maximum(x_bot_ref[0], 0.0)

        # SAME zero padding: the clamped halo fetches at the image edges must read as zeros.
        @pl.when(t == 0)
        def _():
            win_ref[0:2 * W, :] = jnp.zeros((2 * W, Cp), jnp.float32)

        @pl.when(t == last_t)
        def _():
            win_ref[(TH + 2) * W:(TH + 4) * W, :] = jnp.zeros((2 * W, Cp), jnp.float32)

        # ---- conv1 + bias + ReLU, computed for TH+2 rows (1-row halo for conv2) ----
        acc1 = conv3x3(win_ref, n_win, w1_ref, out_rows=n_h1)
        h1_ref[...] = jnp.maximum(acc1 + b1_ref[...], 0.0)

        # conv2's SAME padding: its 1-row halo is zero outside the image.
        @pl.when(t == 0)
        def _():
            h1_ref[0:W, :] = jnp.zeros((W, Cp), jnp.float32)

        @pl.when(t == last_t)
        def _():
            h1_ref[(TH + 1) * W:(TH + 2) * W, :] = jnp.zeros((W, Cp), jnp.float32)

        # ---- conv2 + bias on the core TH rows, residual add with pre-ReLU x ----
        acc2 = conv3x3(h1_ref, n_h1, w2_ref, out_rows=n_out)
        o_ref[0] = (acc2 + b2_ref[...] + x_core_ref[0]).astype(o_ref.dtype)

    return kernel


def residual_conv_unit(x_nhwc, w1_hwio, b1, w2_hwio, b2, *,
                       row_tile=None, compute_dtype=jnp.bfloat16):
    """x_nhwc: (N, H, W, C) f32; weights HWIO (3, 3, C, C); biases (C,)."""
    N, H, W, C = x_nhwc.shape
    assert w1_hwio.shape == (3, 3, C, C) and w2_hwio.shape == (3, 3, C, C)
    assert H % 2 == 0, "H must be even (2-row halo blocks)"
    assert (2 * W) % 8 == 0, "W must be a multiple of 4"

    Cp = max(LANE, ((C + LANE - 1) // LANE) * LANE)   # lane-dense channel padding
    cs = jnp.dtype(compute_dtype).itemsize

    # Generation-aware VMEM budgeting (128 MiB v5e/v6e, 64 MiB per TC on v7x).
    vmem_cap = _tpu_vmem_capacity_bytes()
    vmem_limit = max(32 << 20, int(vmem_cap * 0.85))
    vmem_budget = int(vmem_limit * 0.9)

    TH = _pick_row_tile(H, W, Cp, cs, vmem_budget, row_tile)
    assert H % TH == 0 and TH % 2 == 0, "row tile must be an even divisor of H"

    def pad_c(a, axis):
        if Cp == C:
            return a
        pad = [(0, 0)] * a.ndim
        pad[axis] = (0, Cp - C)
        return jnp.pad(a, pad)

    # activations: flat row-major (H*W, Cp) so the lane dim is the (padded) channel dim
    x = pad_c(x_nhwc, 3).reshape(N, H * W, Cp)
    # weights: (3,3,Cp,Cp) -> (9, Cp, Cp); tap k = ky*3 + kx (matches in-kernel tap index)
    w1 = pad_c(pad_c(w1_hwio, 2), 3).reshape(9, Cp, Cp).astype(compute_dtype)
    w2 = pad_c(pad_c(w2_hwio, 2), 3).reshape(9, Cp, Cp).astype(compute_dtype)
    b1p = pad_c(b1.astype(jnp.float32), 0).reshape(1, Cp)
    b2p = pad_c(b2.astype(jnp.float32), 0).reshape(1, Cp)

    n_row_tiles = H // TH
    half = TH // 2                 # halo blocks are 2 image rows = 2*W flat rows
    n_halo_blocks = H // 2

    core_spec = pl.BlockSpec((1, TH * W, Cp), lambda n, t: (n, t, 0))
    # 2-row halos above/below the core tile; clamped at the image edges (zeroed in-kernel).
    top_spec = pl.BlockSpec((1, 2 * W, Cp),
                            lambda n, t: (n, jnp.maximum(t * half - 1, 0), 0))
    bot_spec = pl.BlockSpec((1, 2 * W, Cp),
                            lambda n, t: (n, jnp.minimum((t + 1) * half, n_halo_blocks - 1), 0))
    w_spec = pl.BlockSpec((9, Cp, Cp), lambda n, t: (0, 0, 0))
    b_spec = pl.BlockSpec((1, Cp), lambda n, t: (0, 0))

    kernel = _make_rcu_kernel(W, TH, Cp, compute_dtype)

    out = pl.pallas_call(
        kernel,
        out_shape=jax.ShapeDtypeStruct((N, H * W, Cp), x_nhwc.dtype),
        grid_spec=pltpu.PrefetchScalarGridSpec(
            num_scalar_prefetch=0,
            grid=(N, n_row_tiles),
            in_specs=[core_spec, top_spec, bot_spec, w_spec, b_spec, w_spec, b_spec],
            out_specs=pl.BlockSpec((1, TH * W, Cp), lambda n, t: (n, t, 0)),
            scratch_shapes=[
                pltpu.VMEM(((TH + 4) * W, Cp), jnp.float32),   # haloed ReLU(x) window
                pltpu.VMEM(((TH + 2) * W, Cp), jnp.float32),   # conv1 output (+1-row halo)
            ],
        ),
        compiler_params=pltpu.CompilerParams(
            dimension_semantics=("parallel", "parallel"),
            vmem_limit_bytes=vmem_limit),
    )(x, x, x, w1, b1p, w2, b2p)

    out = out.reshape(N, H, W, Cp)
    return out[..., :C] if Cp != C else out


def _ref_forward(x_nhwc, w1_hwio, b1, w2_hwio, b2):
    """Plain-JAX reference of the PyTorch forward (NHWC/HWIO)."""
    dn = ("NHWC", "HWIO", "NHWC")
    h = jnp.maximum(x_nhwc, 0.0)
    h = lax.conv_general_dilated(h, w1_hwio, (1, 1), "SAME", dimension_numbers=dn) + b1
    h = jnp.maximum(h, 0.0)
    h = lax.conv_general_dilated(h, w2_hwio, (1, 1), "SAME", dimension_numbers=dn) + b2
    return h + x_nhwc


if __name__ == "__main__":
    # Small shapes consistent with the module: x is NCHW in PyTorch terms.
    N, C, H, W = 2, 4, 16, 16

    key = jax.random.PRNGKey(0)
    kx, kw1, kb1, kw2, kb2 = jax.random.split(key, 5)

    x_nchw = jax.random.normal(kx, (N, C, H, W), dtype=jnp.float32)
    w1_oihw = 0.1 * jax.random.normal(kw1, (C, C, 3, 3), dtype=jnp.float32)
    b1 = 0.1 * jax.random.normal(kb1, (C,), dtype=jnp.float32)
    w2_oihw = 0.1 * jax.random.normal(kw2, (C, C, 3, 3), dtype=jnp.float32)
    b2 = 0.1 * jax.random.normal(kb2, (C,), dtype=jnp.float32)

    # NCHW -> NHWC, OIHW -> HWIO
    x_nhwc = jnp.transpose(x_nchw, (0, 2, 3, 1))
    w1_hwio = jnp.transpose(w1_oihw, (2, 3, 1, 0))
    w2_hwio = jnp.transpose(w2_oihw, (2, 3, 1, 0))

    ref = _ref_forward(x_nhwc, w1_hwio, b1, w2_hwio, b2)

    # Exact-math config (f32 matmuls), small row tile so the cross-tile halo path is exercised.
    out_f32 = jax.block_until_ready(
        residual_conv_unit(x_nhwc, w1_hwio, b1, w2_hwio, b2,
                           row_tile=4, compute_dtype=jnp.float32))
    assert out_f32.shape == (N, H, W, C)
    assert jnp.allclose(out_f32, ref, atol=1e-4, rtol=1e-4), "f32 mismatch vs JAX reference"

    # bf16-matmul config (MXU-native on v5e/v6e/v7x), f32 accumulation; looser tolerance.
    out_bf16 = jax.block_until_ready(
        residual_conv_unit(x_nhwc, w1_hwio, b1, w2_hwio, b2,
                           row_tile=None, compute_dtype=jnp.bfloat16))
    assert out_bf16.shape == (N, H, W, C)
    assert jnp.allclose(out_bf16, ref, atol=5e-2, rtol=5e-2), "bf16 mismatch vs JAX reference"

    print("KERNEL_OK")
</pallas_src>

<mosaic_0001>
module attributes {stable_mosaic.version = 11 : i64} {
  func.func @kernel(%arg0: i32, %arg1: i32, %arg2: memref<1x64x128xf32, #tpu.memory_space<vmem>>, %arg3: memref<1x32x128xf32, #tpu.memory_space<vmem>>, %arg4: memref<1x32x128xf32, #tpu.memory_space<vmem>>, %arg5: memref<9x128x128xf32, #tpu.memory_space<vmem>>, %arg6: memref<1x128xf32, #tpu.memory_space<vmem>>, %arg7: memref<9x128x128xf32, #tpu.memory_space<vmem>>, %arg8: memref<1x128xf32, #tpu.memory_space<vmem>>, %arg9: memref<1x64x128xf32, #tpu.memory_space<vmem>>, %arg10: memref<128x128xf32, #tpu.memory_space<vmem>>, %arg11: memref<96x128xf32, #tpu.memory_space<vmem>>) attributes {dimension_semantics = [#tpu.dimension_semantics<parallel>, #tpu.dimension_semantics<parallel>], iteration_bounds = array<i64: 2, 4>, scalar_prefetch = 0 : i64, scratch_operands = 2 : i64, tpu.core_type = #tpu.core_type<tc>, window_params = [{transform_indices = @transform_0, window_bounds = array<i64: 1, 64, 128>}, {transform_indices = @transform_1, window_bounds = array<i64: 1, 32, 128>}, {transform_indices = @transform_2, window_bounds = array<i64: 1, 32, 128>}, {pipeline_mode = #tpu.pipeline_mode<synchronous>, transform_indices = @transform_3, window_bounds = array<i64: 9, 128, 128>}, {pipeline_mode = #tpu.pipeline_mode<synchronous>, transform_indices = @transform_4, window_bounds = array<i64: 1, 128>}, {pipeline_mode = #tpu.pipeline_mode<synchronous>, transform_indices = @transform_5, window_bounds = array<i64: 9, 128, 128>}, {pipeline_mode = #tpu.pipeline_mode<synchronous>, transform_indices = @transform_6, window_bounds = array<i64: 1, 128>}, {transform_indices = @transform_7, window_bounds = array<i64: 1, 64, 128>}]} {
    %c0 = arith.constant 0 : index
    %c0_0 = arith.constant 0 : index
    %c0_1 = arith.constant 0 : index
    %0 = vector.load %arg3[%c0, %c0_0, %c0_1] : memref<1x32x128xf32, #tpu.memory_space<vmem>>, vector<1x32x128xf32>
    %1 = vector.shape_cast %0 : vector<1x32x128xf32> to vector<32x128xf32>
    %cst = arith.constant 0.000000e+00 : f32
    %2 = vector.broadcast %cst : f32 to vector<32x128xf32>
    %3 = arith.maximumf %1, %2 : vector<32x128xf32>
    %c0_2 = arith.constant 0 : index
    %c0_3 = arith.constant 0 : index
    %4 = vector.load %arg10[%c0_2, %c0_3] : memref<128x128xf32, #tpu.memory_space<vmem>>, vector<32x128xf32>
    tpu.vector_store %arg10[%c0_2, %c0_3], %3 {strides = array<i32>} : memref<128x128xf32, #tpu.memory_space<vmem>>, vector<32x128xf32>,
    %c0_4 = arith.constant 0 : index
    %c0_5 = arith.constant 0 : index
    %c0_6 = arith.constant 0 : index
    %5 = vector.load %arg2[%c0_4, %c0_5, %c0_6] : memref<1x64x128xf32, #tpu.memory_space<vmem>>, vector<1x64x128xf32>
    %6 = vector.shape_cast %5 : vector<1x64x128xf32> to vector<64x128xf32>
    %cst_7 = arith.constant 0.000000e+00 : f32
    %7 = vector.broadcast %cst_7 : f32 to vector<64x128xf32>
    %8 = arith.maximumf %6, %7 : vector<64x128xf32>
    %c32 = arith.constant 32 : index
    %c0_8 = arith.constant 0 : index
    %9 = vector.load %arg10[%c32, %c0_8] : memref<128x128xf32, #tpu.memory_space<vmem>>, vector<64x128xf32>
    tpu.vector_store %arg10[%c32, %c0_8], %8 {strides = array<i32>} : memref<128x128xf32, #tpu.memory_space<vmem>>, vector<64x128xf32>,
    %c0_9 = arith.constant 0 : index
    %c0_10 = arith.constant 0 : index
    %c0_11 = arith.constant 0 : index
    %10 = vector.load %arg4[%c0_9, %c0_10, %c0_11] : memref<1x32x128xf32, #tpu.memory_space<vmem>>, vector<1x32x128xf32>
    %11 = vector.shape_cast %10 : vector<1x32x128xf32> to vector<32x128xf32>
    %cst_12 = arith.constant 0.000000e+00 : f32
    %12 = vector.broadcast %cst_12 : f32 to vector<32x128xf32>
    %13 = arith.maximumf %11, %12 : vector<32x128xf32>
    %c96 = arith.constant 96 : index
    %c0_13 = arith.constant 0 : index
    %14 = vector.load %arg10[%c96, %c0_13] : memref<128x128xf32, #tpu.memory_space<vmem>>, vector<32x128xf32>
    tpu.vector_store %arg10[%c96, %c0_13], %13 {strides = array<i32>} : memref<128x128xf32, #tpu.memory_space<vmem>>, vector<32x128xf32>,
    %c0_i32 = arith.constant 0 : i32
    %15 = arith.cmpi eq, %arg1, %c0_i32 : i32
    %16 = arith.extui %15 : i1 to i32
    %c0_i32_14 = arith.constant 0 : i32
    %17 = arith.cmpi ne, %16, %c0_i32_14 : i32
    scf.if %17 {
      %cst_116 = arith.constant 0.000000e+00 : f32
      %200 = vector.broadcast %cst_116 : f32 to vector<32x128xf32>
      %c0_117 = arith.constant 0 : index
      %c0_118 = arith.constant 0 : index
      %201 = vector.load %arg10[%c0_117, %c0_118] : memref<128x128xf32, #tpu.memory_space<vmem>>, vector<32x128xf32>
      tpu.vector_store %arg10[%c0_117, %c0_118], %200 {strides = array<i32>} : memref<128x128xf32, #tpu.memory_space<vmem>>, vector<32x128xf32>,
    } else {
    }
    %c3_i32 = arith.constant 3 : i32
    %18 = arith.cmpi eq, %arg1, %c3_i32 : i32
    %19 = arith.extui %18 : i1 to i32
    %c0_i32_15 = arith.constant 0 : i32
    %20 = arith.cmpi ne, %19, %c0_i32_15 : i32
    scf.if %20 {
      %cst_116 = arith.constant 0.000000e+00 : f32
      %200 = vector.broadcast %cst_116 : f32 to vector<32x128xf32>
      %c96_117 = arith.constant 96 : index
      %c0_118 = arith.constant 0 : index
      %201 = vector.load %arg10[%c96_117, %c0_118] : memref<128x128xf32, #tpu.memory_space<vmem>>, vector<32x128xf32>
      tpu.vector_store %arg10[%c96_117, %c0_118], %200 {strides = array<i32>} : memref<128x128xf32, #tpu.memory_space<vmem>>, vector<32x128xf32>,
    } else {
    }
    %c0_16 = arith.constant 0 : index
    %c0_17 = arith.constant 0 : index
    %21 = vector.load %arg10[%c0_16, %c0_17] : memref<128x128xf32, #tpu.memory_space<vmem>>, vector<128x128xf32>
    %22 = tpu.iota {dimensions = array<i32: 0>} : vector<128x1xi32>
    %c16_i32 = arith.constant 16 : i32
    %c0_i32_18 = arith.constant 0 : i32
    %23 = arith.cmpi eq, %c16_i32, %c0_i32_18 : i32
    %c1_i32 = arith.constant 1 : i32
    %24 = arith.select %23, %c1_i32, %c16_i32 : i32
    %25 = vector.broadcast %24 : i32 to vector<128x1xi32>
    %26 = arith.remsi %22, %25 : vector<128x1xi32>
    %c0_i32_19 = arith.constant 0 : i32
    %27 = vector.broadcast %c0_i32_19 : i32 to vector<128x1xi32>
    %28 = arith.cmpi ne, %26, %27 : vector<128x1xi32>
    %c0_i32_20 = arith.constant 0 : i32
    %29 = vector.broadcast %c0_i32_20 : i32 to vector<128x1xi32>
    %30 = arith.cmpi slt, %26, %29 : vector<128x1xi32>
    %c0_i32_21 = arith.constant 0 : i32
    %31 = arith.cmpi slt, %24, %c0_i32_21 : i32
    %32 = vector.broadcast %31 : i1 to vector<128x1xi1>
    %33 = vector.broadcast %32 : vector<128x1xi1> to vector<128x1xi1>
    %34 = arith.xori %30, %33 : vector<128x1xi1>
    %35 = arith.andi %34, %28 : vector<128x1xi1>
    %36 = vector.broadcast %24 : i32 to vector<128x1xi32>
    %37 = arith.addi %26, %36 : vector<128x1xi32>
    %38 = arith.select %35, %37, %26 : vector<128x1xi1>, vector<128x1xi32>
    %39 = vector.extract_strided_slice %21 {offsets = [1, 0], sizes = [127, 128], strides = [1, 1]} : vector<128x128xf32> to vector<127x128xf32>
    %40 = vector.extract_strided_slice %21 {offsets = [0, 0], sizes = [1, 128], strides = [1, 1]} : vector<128x128xf32> to vector<1x128xf32>
    %41 = tpu.concatenate %39, %40 in 0 : vector<127x128xf32>, vector<1x128xf32> -> vector<128x128xf32>
    %42 = vector.extract_strided_slice %21 {offsets = [127, 0], sizes = [1, 128], strides = [1, 1]} : vector<128x128xf32> to vector<1x128xf32>
    %43 = vector.extract_strided_slice %21 {offsets = [0, 0], sizes = [127, 128], strides = [1, 1]} : vector<128x128xf32> to vector<127x128xf32>
    %44 = tpu.concatenate %42, %43 in 0 : vector<1x128xf32>, vector<127x128xf32> -> vector<128x128xf32>
    %cst_22 = arith.constant 0.000000e+00 : f32
    %45 = vector.broadcast %cst_22 : f32 to vector<128x128xf32>
    %c0_i32_23 = arith.constant 0 : i32
    %46 = vector.broadcast %c0_i32_23 : i32 to vector<128x1xi32>
    %47 = arith.cmpi sgt, %38, %46 : vector<128x1xi32>
    %48 = vector.shape_cast %47 : vector<128x1xi1> to vector<128x1xi1>
    %49 = vector.broadcast %48 : vector<128x1xi1> to vector<128x128xi1>
    %50 = arith.select %49, %44, %45 : vector<128x128xi1>, vector<128x128xf32>
    %c15_i32 = arith.constant 15 : i32
    %51 = vector.broadcast %c15_i32 : i32 to vector<128x1xi32>
    %52 = arith.cmpi slt, %38, %51 : vector<128x1xi32>
    %53 = vector.shape_cast %52 : vector<128x1xi1> to vector<128x1xi1>
    %54 = vector.broadcast %53 : vector<128x1xi1> to vector<128x128xi1>
    %55 = arith.select %54, %41, %45 : vector<128x128xi1>, vector<128x128xf32>
    %56 = vector.extract_strided_slice %50 {offsets = [0, 0], sizes = [96, 128], strides = [1, 1]} : vector<128x128xf32> to vector<96x128xf32>
    %c0_24 = arith.constant 0 : index
    %c0_25 = arith.constant 0 : index
    %c0_26 = arith.constant 0 : index
    %57 = vector.load %arg5[%c0_24, %c0_25, %c0_26] : memref<9x128x128xf32, #tpu.memory_space<vmem>>, vector<1x128x128xf32>
    %58 = vector.shape_cast %57 : vector<1x128x128xf32> to vector<128x128xf32>
    %cst_27 = arith.constant dense<0.000000e+00> : vector<96x128xf32>
    %59 = tpu.matmul %56, %58, %cst_27 {dimension_numbers = #tpu.dot_dimension_numbers<[1], [0], [0], [1], [0, 0, 1, 1], [], []>} : vector<96x128xf32>, vector<128x128xf32>, vector<96x128xf32> -> vector<96x128xf32>
    %60 = vector.extract_strided_slice %21 {offsets = [0, 0], sizes = [96, 128], strides = [1, 1]} : vector<128x128xf32> to vector<96x128xf32>
    %c1 = arith.constant 1 : index
    %c0_28 = arith.constant 0 : index
    %c0_29 = arith.constant 0 : index
    %61 = vector.load %arg5[%c1, %c0_28, %c0_29] : memref<9x128x128xf32, #tpu.memory_space<vmem>>, vector<1x128x128xf32>
    %62 = vector.shape_cast %61 : vector<1x128x128xf32> to vector<128x128xf32>
    %cst_30 = arith.constant dense<0.000000e+00> : vector<96x128xf32>
    %63 = tpu.matmul %60, %62, %cst_30 {dimension_numbers = #tpu.dot_dimension_numbers<[1], [0], [0], [1], [0, 0, 1, 1], [], []>} : vector<96x128xf32>, vector<128x128xf32>, vector<96x128xf32> -> vector<96x128xf32>
    %64 = arith.addf %59, %63 : vector<96x128xf32>
    %65 = vector.extract_strided_slice %55 {offsets = [0, 0], sizes = [96, 128], strides = [1, 1]} : vector<128x128xf32> to vector<96x128xf32>
    %c2 = arith.constant 2 : index
    %c0_31 = arith.constant 0 : index
    %c0_32 = arith.constant 0 : index
    %66 = vector.load %arg5[%c2, %c0_31, %c0_32] : memref<9x128x128xf32, #tpu.memory_space<vmem>>, vector<1x128x128xf32>
    %67 = vector.shape_cast %66 : vector<1x128x128xf32> to vector<128x128xf32>
    %cst_33 = arith.constant dense<0.000000e+00> : vector<96x128xf32>
    %68 = tpu.matmul %65, %67, %cst_33 {dimension_numbers = #tpu.dot_dimension_numbers<[1], [0], [0], [1], [0, 0, 1, 1], [], []>} : vector<96x128xf32>, vector<128x128xf32>, vector<96x128xf32> -> vector<96x128xf32>
    %69 = arith.addf %64, %68 : vector<96x128xf32>
    %70 = vector.extract_strided_slice %50 {offsets = [16, 0], sizes = [96, 128], strides = [1, 1]} : vector<128x128xf32> to vector<96x128xf32>
    %c3 = arith.constant 3 : index
    %c0_34 = arith.constant 0 : index
    %c0_35 = arith.constant 0 : index
    %71 = vector.load %arg5[%c3, %c0_34, %c0_35] : memref<9x128x128xf32, #tpu.memory_space<vmem>>, vector<1x128x128xf32>
    %72 = vector.shape_cast %71 : vector<1x128x128xf32> to vector<128x128xf32>
    %cst_36 = arith.constant dense<0.000000e+00> : vector<96x128xf32>
    %73 = tpu.matmul %70, %72, %cst_36 {dimension_numbers = #tpu.dot_dimension_numbers<[1], [0], [0], [1], [0, 0, 1, 1], [], []>} : vector<96x128xf32>, vector<128x128xf32>, vector<96x128xf32> -> vector<96x128xf32>
    %74 = arith.addf %69, %73 : vector<96x128xf32>
    %75 = vector.extract_strided_slice %21 {offsets = [16, 0], sizes = [96, 128], strides = [1, 1]} : vector<128x128xf32> to vector<96x128xf32>
    %c4 = arith.constant 4 : index
    %c0_37 = arith.constant 0 : index
    %c0_38 = arith.constant 0 : index
    %76 = vector.load %arg5[%c4, %c0_37, %c0_38] : memref<9x128x128xf32, #tpu.memory_space<vmem>>, vector<1x128x128xf32>
    %77 = vector.shape_cast %76 : vector<1x128x128xf32> to vector<128x128xf32>
    %cst_39 = arith.constant dense<0.000000e+00> : vector<96x128xf32>
    %78 = tpu.matmul %75, %77, %cst_39 {dimension_numbers = #tpu.dot_dimension_numbers<[1], [0], [0], [1], [0, 0, 1, 1], [], []>} : vector<96x128xf32>, vector<128x128xf32>, vector<96x128xf32> -> vector<96x128xf32>
    %79 = arith.addf %74, %78 : vector<96x128xf32>
    %80 = vector.extract_strided_slice %55 {offsets = [16, 0], sizes = [96, 128], strides = [1, 1]} : vector<128x128xf32> to vector<96x128xf32>
    %c5 = arith.constant 5 : index
    %c0_40 = arith.constant 0 : index
    %c0_41 = arith.constant 0 : index
    %81 = vector.load %arg5[%c5, %c0_40, %c0_41] : memref<9x128x128xf32, #tpu.memory_space<vmem>>, vector<1x128x128xf32>
    %82 = vector.shape_cast %81 : vector<1x128x128xf32> to vector<128x128xf32>
    %cst_42 = arith.constant dense<0.000000e+00> : vector<96x128xf32>
    %83 = tpu.matmul %80, %82, %cst_42 {dimension_numbers = #tpu.dot_dimension_numbers<[1], [0], [0], [1], [0, 0, 1, 1], [], []>} : vector<96x128xf32>, vector<128x128xf32>, vector<96x128xf32> -> vector<96x128xf32>
    %84 = arith.addf %79, %83 : vector<96x128xf32>
    %85 = vector.extract_strided_slice %50 {offsets = [32, 0], sizes = [96, 128], strides = [1, 1]} : vector<128x128xf32> to vector<96x128xf32>
    %c6 = arith.constant 6 : index
    %c0_43 = arith.constant 0 : index
    %c0_44 = arith.constant 0 : index
    %86 = vector.load %arg5[%c6, %c0_43, %c0_44] : memref<9x128x128xf32, #tpu.memory_space<vmem>>, vector<1x128x128xf32>
    %87 = vector.shape_cast %86 : vector<1x128x128xf32> to vector<128x128xf32>
    %cst_45 = arith.constant dense<0.000000e+00> : vector<96x128xf32>
    %88 = tpu.matmul %85, %87, %cst_45 {dimension_numbers = #tpu.dot_dimension_numbers<[1], [0], [0], [1], [0, 0, 1, 1], [], []>} : vector<96x128xf32>, vector<128x128xf32>, vector<96x128xf32> -> vector<96x128xf32>
    %89 = arith.addf %84, %88 : vector<96x128xf32>
    %90 = vector.extract_strided_slice %21 {offsets = [32, 0], sizes = [96, 128], strides = [1, 1]} : vector<128x128xf32> to vector<96x128xf32>
    %c7 = arith.constant 7 : index
    %c0_46 = arith.constant 0 : index
    %c0_47 = arith.constant 0 : index
    %91 = vector.load %arg5[%c7, %c0_46, %c0_47] : memref<9x128x128xf32, #tpu.memory_space<vmem>>, vector<1x128x128xf32>
    %92 = vector.shape_cast %91 : vector<1x128x128xf32> to vector<128x128xf32>
    %cst_48 = arith.constant dense<0.000000e+00> : vector<96x128xf32>
    %93 = tpu.matmul %90, %92, %cst_48 {dimension_numbers = #tpu.dot_dimension_numbers<[1], [0], [0], [1], [0, 0, 1, 1], [], []>} : vector<96x128xf32>, vector<128x128xf32>, vector<96x128xf32> -> vector<96x128xf32>
    %94 = arith.addf %89, %93 : vector<96x128xf32>
    %95 = vector.extract_strided_slice %55 {offsets = [32, 0], sizes = [96, 128], strides = [1, 1]} : vector<128x128xf32> to vector<96x128xf32>
    %c8 = arith.constant 8 : index
    %c0_49 = arith.constant 0 : index
    %c0_50 = arith.constant 0 : index
    %96 = vector.load %arg5[%c8, %c0_49, %c0_50] : memref<9x128x128xf32, #tpu.memory_space<vmem>>, vector<1x128x128xf32>
    %97 = vector.shape_cast %96 : vector<1x128x128xf32> to vector<128x128xf32>
    %cst_51 = arith.constant dense<0.000000e+00> : vector<96x128xf32>
    %98 = tpu.matmul %95, %97, %cst_51 {dimension_numbers = #tpu.dot_dimension_numbers<[1], [0], [0], [1], [0, 0, 1, 1], [], []>} : vector<96x128xf32>, vector<128x128xf32>, vector<96x128xf32> -> vector<96x128xf32>
    %99 = arith.addf %94, %98 : vector<96x128xf32>
    %c0_52 = arith.constant 0 : index
    %c0_53 = arith.constant 0 : index
    %100 = vector.load %arg6[%c0_52, %c0_53] : memref<1x128xf32, #tpu.memory_space<vmem>>, vector<1x128xf32>
    %101 = vector.broadcast %100 : vector<1x128xf32> to vector<96x128xf32>
    %102 = arith.addf %99, %101 : vector<96x128xf32>
    %cst_54 = arith.constant 0.000000e+00 : f32
    %103 = vector.broadcast %cst_54 : f32 to vector<96x128xf32>
    %104 = arith.maximumf %102, %103 : vector<96x128xf32>
    %c0_55 = arith.constant 0 : index
    %c0_56 = arith.constant 0 : index
    %105 = vector.load %arg11[%c0_55, %c0_56] : memref<96x128xf32, #tpu.memory_space<vmem>>, vector<96x128xf32>
    tpu.vector_store %arg11[%c0_55, %c0_56], %104 {strides = array<i32>} : memref<96x128xf32, #tpu.memory_space<vmem>>, vector<96x128xf32>,
    %c0_i32_57 = arith.constant 0 : i32
    %106 = arith.cmpi eq, %arg1, %c0_i32_57 : i32
    %107 = arith.extui %106 : i1 to i32
    %c0_i32_58 = arith.constant 0 : i32
    %108 = arith.cmpi ne, %107, %c0_i32_58 : i32
    scf.if %108 {
      %cst_116 = arith.constant 0.000000e+00 : f32
      %200 = vector.broadcast %cst_116 : f32 to vector<16x128xf32>
      %c0_117 = arith.constant 0 : index
      %c0_118 = arith.constant 0 : index
      %201 = vector.load %arg11[%c0_117, %c0_118] : memref<96x128xf32, #tpu.memory_space<vmem>>, vector<16x128xf32>
      tpu.vector_store %arg11[%c0_117, %c0_118], %200 {strides = array<i32>} : memref<96x128xf32, #tpu.memory_space<vmem>>, vector<16x128xf32>,
    } else {
    }
    %c3_i32_59 = arith.constant 3 : i32
    %109 = arith.cmpi eq, %arg1, %c3_i32_59 : i32
    %110 = arith.extui %109 : i1 to i32
    %c0_i32_60 = arith.constant 0 : i32
    %111 = arith.cmpi ne, %110, %c0_i32_60 : i32
    scf.if %111 {
      %cst_116 = arith.constant 0.000000e+00 : f32
      %200 = vector.broadcast %cst_116 : f32 to vector<16x128xf32>
      %c80 = arith.constant 80 : index
      %c0_117 = arith.constant 0 : index
      %201 = vector.load %arg11[%c80, %c0_117] : memref<96x128xf32, #tpu.memory_space<vmem>>, vector<16x128xf32>
      tpu.vector_store %arg11[%c80, %c0_117], %200 {strides = array<i32>} : memref<96x128xf32, #tpu.memory_space<vmem>>, vector<16x128xf32>,
    } else {
    }
    %c0_61 = arith.constant 0 : index
    %c0_62 = arith.constant 0 : index
    %112 = vector.load %arg11[%c0_61, %c0_62] : memref<96x128xf32, #tpu.memory_space<vmem>>, vector<96x128xf32>
    %113 = tpu.iota {dimensions = array<i32: 0>} : vector<96x1xi32>
    %c16_i32_63 = arith.constant 16 : i32
    %c0_i32_64 = arith.constant 0 : i32
    %114 = arith.cmpi eq, %c16_i32_63, %c0_i32_64 : i32
    %c1_i32_65 = arith.constant 1 : i32
    %115 = arith.select %114, %c1_i32_65, %c16_i32_63 : i32
    %116 = vector.broadcast %115 : i32 to vector<96x1xi32>
    %117 = arith.remsi %113, %116 : vector<96x1xi32>
    %c0_i32_66 = arith.constant 0 : i32
    %118 = vector.broadcast %c0_i32_66 : i32 to vector<96x1xi32>
    %119 = arith.cmpi ne, %117, %118 : vector<96x1xi32>
    %c0_i32_67 = arith.constant 0 : i32
    %120 = vector.broadcast %c0_i32_67 : i32 to vector<96x1xi32>
    %121 = arith.cmpi slt, %117, %120 : vector<96x1xi32>
    %c0_i32_68 = arith.constant 0 : i32
    %122 = arith.cmpi slt, %115, %c0_i32_68 : i32
    %123 = vector.broadcast %122 : i1 to vector<96x1xi1>
    %124 = vector.broadcast %123 : vector<96x1xi1> to vector<96x1xi1>
    %125 = arith.xori %121, %124 : vector<96x1xi1>
    %126 = arith.andi %125, %119 : vector<96x1xi1>
    %127 = vector.broadcast %115 : i32 to vector<96x1xi32>
    %128 = arith.addi %117, %127 : vector<96x1xi32>
    %129 = arith.select %126, %128, %117 : vector<96x1xi1>, vector<96x1xi32>
    %130 = vector.extract_strided_slice %112 {offsets = [1, 0], sizes = [95, 128], strides = [1, 1]} : vector<96x128xf32> to vector<95x128xf32>
    %131 = vector.extract_strided_slice %112 {offsets = [0, 0], sizes = [1, 128], strides = [1, 1]} : vector<96x128xf32> to vector<1x128xf32>
    %132 = tpu.concatenate %130, %131 in 0 : vector<95x128xf32>, vector<1x128xf32> -> vector<96x128xf32>
    %133 = vector.extract_strided_slice %112 {offsets = [95, 0], sizes = [1, 128], strides = [1, 1]} : vector<96x128xf32> to vector<1x128xf32>
    %134 = vector.extract_strided_slice %112 {offsets = [0, 0], sizes = [95, 128], strides = [1, 1]} : vector<96x128xf32> to vector<95x128xf32>
    %135 = tpu.concatenate %133, %134 in 0 : vector<1x128xf32>, vector<95x128xf32> -> vector<96x128xf32>
    %cst_69 = arith.constant 0.000000e+00 : f32
    %136 = vector.broadcast %cst_69 : f32 to vector<96x128xf32>
    %c0_i32_70 = arith.constant 0 : i32
    %137 = vector.broadcast %c0_i32_70 : i32 to vector<96x1xi32>
    %138 = arith.cmpi sgt, %129, %137 : vector<96x1xi32>
    %139 = vector.shape_cast %138 : vector<96x1xi1> to vector<96x1xi1>
    %140 = vector.broadcast %139 : vector<96x1xi1> to vector<96x128xi1>
    %141 = arith.select %140, %135, %136 : vector<96x128xi1>, vector<96x128xf32>
    %c15_i32_71 = arith.constant 15 : i32
    %142 = vector.broadcast %c15_i32_71 : i32 to vector<96x1xi32>
    %143 = arith.cmpi slt, %129, %142 : vector<96x1xi32>
    %144 = vector.shape_cast %143 : vector<96x1xi1> to vector<96x1xi1>
    %145 = vector.broadcast %144 : vector<96x1xi1> to vector<96x128xi1>
    %146 = arith.select %145, %132, %136 : vector<96x128xi1>, vector<96x128xf32>
    %147 = vector.extract_strided_slice %141 {offsets = [0, 0], sizes = [64, 128], strides = [1, 1]} : vector<96x128xf32> to vector<64x128xf32>
    %c0_72 = arith.constant 0 : index
    %c0_73 = arith.constant 0 : index
    %c0_74 = arith.constant 0 : index
    %148 = vector.load %arg7[%c0_72, %c0_73, %c0_74] : memref<9x128x128xf32, #tpu.memory_space<vmem>>, vector<1x128x128xf32>
    %149 = vector.shape_cast %148 : vector<1x128x128xf32> to vector<128x128xf32>
    %cst_75 = arith.constant dense<0.000000e+00> : vector<64x128xf32>
    %150 = tpu.matmul %147, %149, %cst_75 {dimension_numbers = #tpu.dot_dimension_numbers<[1], [0], [0], [1], [0, 0, 1, 1], [], []>} : vector<64x128xf32>, vector<128x128xf32>, vector<64x128xf32> -> vector<64x128xf32>
    %151 = vector.extract_strided_slice %112 {offsets = [0, 0], sizes = [64, 128], strides = [1, 1]} : vector<96x128xf32> to vector<64x128xf32>
    %c1_76 = arith.constant 1 : index
    %c0_77 = arith.constant 0 : index
    %c0_78 = arith.constant 0 : index
    %152 = vector.load %arg7[%c1_76, %c0_77, %c0_78] : memref<9x128x128xf32, #tpu.memory_space<vmem>>, vector<1x128x128xf32>
    %153 = vector.shape_cast %152 : vector<1x128x128xf32> to vector<128x128xf32>
    %cst_79 = arith.constant dense<0.000000e+00> : vector<64x128xf32>
    %154 = tpu.matmul %151, %153, %cst_79 {dimension_numbers = #tpu.dot_dimension_numbers<[1], [0], [0], [1], [0, 0, 1, 1], [], []>} : vector<64x128xf32>, vector<128x128xf32>, vector<64x128xf32> -> vector<64x128xf32>
    %155 = arith.addf %150, %154 : vector<64x128xf32>
    %156 = vector.extract_strided_slice %146 {offsets = [0, 0], sizes = [64, 128], strides = [1, 1]} : vector<96x128xf32> to vector<64x128xf32>
    %c2_80 = arith.constant 2 : index
    %c0_81 = arith.constant 0 : index
    %c0_82 = arith.constant 0 : index
    %157 = vector.load %arg7[%c2_80, %c0_81, %c0_82] : memref<9x128x128xf32, #tpu.memory_space<vmem>>, vector<1x128x128xf32>
    %158 = vector.shape_cast %157 : vector<1x128x128xf32> to vector<128x128xf32>
    %cst_83 = arith.constant dense<0.000000e+00> : vector<64x128xf32>
    %159 = tpu.matmul %156, %158, %cst_83 {dimension_numbers = #tpu.dot_dimension_numbers<[1], [0], [0], [1], [0, 0, 1, 1], [], []>} : vector<64x128xf32>, vector<128x128xf32>, vector<64x128xf32> -> vector<64x128xf32>
    %160 = arith.addf %155, %159 : vector<64x128xf32>
    %161 = vector.extract_strided_slice %141 {offsets = [16, 0], sizes = [64, 128], strides = [1, 1]} : vector<96x128xf32> to vector<64x128xf32>
    %c3_84 = arith.constant 3 : index
    %c0_85 = arith.constant 0 : index
    %c0_86 = arith.constant 0 : index
    %162 = vector.load %arg7[%c3_84, %c0_85, %c0_86] : memref<9x128x128xf32, #tpu.memory_space<vmem>>, vector<1x128x128xf32>
    %163 = vector.shape_cast %162 : vector<1x128x128xf32> to vector<128x128xf32>
    %cst_87 = arith.constant dense<0.000000e+00> : vector<64x128xf32>
    %164 = tpu.matmul %161, %163, %cst_87 {dimension_numbers = #tpu.dot_dimension_numbers<[1], [0], [0], [1], [0, 0, 1, 1], [], []>} : vector<64x128xf32>, vector<128x128xf32>, vector<64x128xf32> -> vector<64x128xf32>
    %165 = arith.addf %160, %164 : vector<64x128xf32>
    %166 = vector.extract_strided_slice %112 {offsets = [16, 0], sizes = [64, 128], strides = [1, 1]} : vector<96x128xf32> to vector<64x128xf32>
    %c4_88 = arith.constant 4 : index
    %c0_89 = arith.constant 0 : index
    %c0_90 = arith.constant 0 : index
    %167 = vector.load %arg7[%c4_88, %c0_89, %c0_90] : memref<9x128x128xf32, #tpu.memory_space<vmem>>, vector<1x128x128xf32>
    %168 = vector.shape_cast %167 : vector<1x128x128xf32> to vector<128x128xf32>
    %cst_91 = arith.constant dense<0.000000e+00> : vector<64x128xf32>
    %169 = tpu.matmul %166, %168, %cst_91 {dimension_numbers = #tpu.dot_dimension_numbers<[1], [0], [0], [1], [0, 0, 1, 1], [], []>} : vector<64x128xf32>, vector<128x128xf32>, vector<64x128xf32> -> vector<64x128xf32>
    %170 = arith.addf %165, %169 : vector<64x128xf32>
    %171 = vector.extract_strided_slice %146 {offsets = [16, 0], sizes = [64, 128], strides = [1, 1]} : vector<96x128xf32> to vector<64x128xf32>
    %c5_92 = arith.constant 5 : index
    %c0_93 = arith.constant 0 : index
    %c0_94 = arith.constant 0 : index
    %172 = vector.load %arg7[%c5_92, %c0_93, %c0_94] : memref<9x128x128xf32, #tpu.memory_space<vmem>>, vector<1x128x128xf32>
    %173 = vector.shape_cast %172 : vector<1x128x128xf32> to vector<128x128xf32>
    %cst_95 = arith.constant dense<0.000000e+00> : vector<64x128xf32>
    %174 = tpu.matmul %171, %173, %cst_95 {dimension_numbers = #tpu.dot_dimension_numbers<[1], [0], [0], [1], [0, 0, 1, 1], [], []>} : vector<64x128xf32>, vector<128x128xf32>, vector<64x128xf32> -> vector<64x128xf32>
    %175 = arith.addf %170, %174 : vector<64x128xf32>
    %176 = vector.extract_strided_slice %141 {offsets = [32, 0], sizes = [64, 128], strides = [1, 1]} : vector<96x128xf32> to vector<64x128xf32>
    %c6_96 = arith.constant 6 : index
    %c0_97 = arith.constant 0 : index
    %c0_98 = arith.constant 0 : index
    %177 = vector.load %arg7[%c6_96, %c0_97, %c0_98] : memref<9x128x128xf32, #tpu.memory_space<vmem>>, vector<1x128x128xf32>
    %178 = vector.shape_cast %177 : vector<1x128x128xf32> to vector<128x128xf32>
    %cst_99 = arith.constant dense<0.000000e+00> : vector<64x128xf32>
    %179 = tpu.matmul %176, %178, %cst_99 {dimension_numbers = #tpu.dot_dimension_numbers<[1], [0], [0], [1], [0, 0, 1, 1], [], []>} : vector<64x128xf32>, vector<128x128xf32>, vector<64x128xf32> -> vector<64x128xf32>
    %180 = arith.addf %175, %179 : vector<64x128xf32>
    %181 = vector.extract_strided_slice %112 {offsets = [32, 0], sizes = [64, 128], strides = [1, 1]} : vector<96x128xf32> to vector<64x128xf32>
    %c7_100 = arith.constant 7 : index
    %c0_101 = arith.constant 0 : index
    %c0_102 = arith.constant 0 : index
    %182 = vector.load %arg7[%c7_100, %c0_101, %c0_102] : memref<9x128x128xf32, #tpu.memory_space<vmem>>, vector<1x128x128xf32>
    %183 = vector.shape_cast %182 : vector<1x128x128xf32> to vector<128x128xf32>
    %cst_103 = arith.constant dense<0.000000e+00> : vector<64x128xf32>
    %184 = tpu.matmul %181, %183, %cst_103 {dimension_numbers = #tpu.dot_dimension_numbers<[1], [0], [0], [1], [0, 0, 1, 1], [], []>} : vector<64x128xf32>, vector<128x128xf32>, vector<64x128xf32> -> vector<64x128xf32>
    %185 = arith.addf %180, %184 : vector<64x128xf32>
    %186 = vector.extract_strided_slice %146 {offsets = [32, 0], sizes = [64, 128], strides = [1, 1]} : vector<96x128xf32> to vector<64x128xf32>
    %c8_104 = arith.constant 8 : index
    %c0_105 = arith.constant 0 : index
    %c0_106 = arith.constant 0 : index
    %187 = vector.load %arg7[%c8_104, %c0_105, %c0_106] : memref<9x128x128xf32, #tpu.memory_space<vmem>>, vector<1x128x128xf32>
    %188 = vector.shape_cast %187 : vector<1x128x128xf32> to vector<128x128xf32>
    %cst_107 = arith.constant dense<0.000000e+00> : vector<64x128xf32>
    %189 = tpu.matmul %186, %188, %cst_107 {dimension_numbers = #tpu.dot_dimension_numbers<[1], [0], [0], [1], [0, 0, 1, 1], [], []>} : vector<64x128xf32>, vector<128x128xf32>, vector<64x128xf32> -> vector<64x128xf32>
    %190 = arith.addf %185, %189 : vector<64x128xf32>
    %c0_108 = arith.constant 0 : index
    %c0_109 = arith.constant 0 : index
    %191 = vector.load %arg8[%c0_108, %c0_109] : memref<1x128xf32, #tpu.memory_space<vmem>>, vector<1x128xf32>
    %192 = vector.broadcast %191 : vector<1x128xf32> to vector<64x128xf32>
    %193 = arith.addf %190, %192 : vector<64x128xf32>
    %c0_110 = arith.constant 0 : index
    %c0_111 = arith.constant 0 : index
    %c0_112 = arith.constant 0 : index
    %194 = vector.load %arg2[%c0_110, %c0_111, %c0_112] : memref<1x64x128xf32, #tpu.memory_space<vmem>>, vector<1x64x128xf32>
    %195 = vector.shape_cast %194 : vector<1x64x128xf32> to vector<64x128xf32>
    %196 = arith.addf %193, %195 : vector<64x128xf32>
    %c0_113 = arith.constant 0 : index
    %c0_114 = arith.constant 0 : index
    %c0_115 = arith.constant 0 : index
    %197 = vector.load %arg9[%c0_113, %c0_114, %c0_115] : memref<1x64x128xf32, #tpu.memory_space<vmem>>, vector<1x64x128xf32>
    %198 = vector.shape_cast %197 : vector<1x64x128xf32> to vector<64x128xf32>
    %199 = vector.shape_cast %196 : vector<64x128xf32> to vector<1x64x128xf32>
    tpu.vector_store %arg9[%c0_113, %c0_114, %c0_115], %199 {strides = array<i32>} : memref<1x64x128xf32, #tpu.memory_space<vmem>>, vector<1x64x128xf32>,
    return
  }
  func.func @transform_0(%arg0: i32, %arg1: i32) -> (i32, i32, i32) {
    %c0_i32 = arith.constant 0 : i32
    %c0_i32_0 = arith.constant 0 : i32
    return %arg0, %arg1, %c0_i32 : i32, i32, i32
  }
  func.func @transform_1(%arg0: i32, %arg1: i32) -> (i32, i32, i32) {
    %c2_i32 = arith.constant 2 : i32
    %0 = arith.muli %arg1, %c2_i32 : i32
    %c1_i32 = arith.constant 1 : i32
    %1 = arith.subi %0, %c1_i32 : i32
    %c0_i32 = arith.constant 0 : i32
    %2 = arith.maxsi %1, %c0_i32 : i32
    %c0_i32_0 = arith.constant 0 : i32
    %c0_i32_1 = arith.constant 0 : i32
    return %arg0, %2, %c0_i32_0 : i32, i32, i32
  }
  func.func @transform_2(%arg0: i32, %arg1: i32) -> (i32, i32, i32) {
    %c1_i32 = arith.constant 1 : i32
    %0 = arith.addi %arg1, %c1_i32 : i32
    %c2_i32 = arith.constant 2 : i32
    %1 = arith.muli %0, %c2_i32 : i32
    %c7_i32 = arith.constant 7 : i32
    %2 = arith.minsi %1, %c7_i32 : i32
    %c0_i32 = arith.constant 0 : i32
    %c0_i32_0 = arith.constant 0 : i32
    return %arg0, %2, %c0_i32 : i32, i32, i32
  }
  func.func @transform_3(%arg0: i32, %arg1: i32) -> (i32, i32, i32) {
    %c0_i32 = arith.constant 0 : i32
    %c0_i32_0 = arith.constant 0 : i32
    %c0_i32_1 = arith.constant 0 : i32
    %c0_i32_2 = arith.constant 0 : i32
    return %c0_i32, %c0_i32_0, %c0_i32_1 : i32, i32, i32
  }
  func.func @transform_4(%arg0: i32, %arg1: i32) -> (i32, i32) {
    %c0_i32 = arith.constant 0 : i32
    %c0_i32_0 = arith.constant 0 : i32
    %c0_i32_1 = arith.constant 0 : i32
    return %c0_i32, %c0_i32_0 : i32, i32
  }
  func.func @transform_5(%arg0: i32, %arg1: i32) -> (i32, i32, i32) {
    %c0_i32 = arith.constant 0 : i32
    %c0_i32_0 = arith.constant 0 : i32
    %c0_i32_1 = arith.constant 0 : i32
    %c0_i32_2 = arith.constant 0 : i32
    return %c0_i32, %c0_i32_0, %c0_i32_1 : i32, i32, i32
  }
  func.func @transform_6(%arg0: i32, %arg1: i32) -> (i32, i32) {
    %c0_i32 = arith.constant 0 : i32
    %c0_i32_0 = arith.constant 0 : i32
    %c0_i32_1 = arith.constant 0 : i32
    return %c0_i32, %c0_i32_0 : i32, i32
  }
  func.func @transform_7(%arg0: i32, %arg1: i32) -> (i32, i32, i32) {
    %c0_i32 = arith.constant 0 : i32
    %c0_i32_0 = arith.constant 0 : i32
    return %arg0, %arg1, %c0_i32 : i32, i32, i32
  }
}

</mosaic_0001>

<bundles_post_ra>
// kernel: tpu_custom_call.1
= control target key start
LH: loop header
LB: loop body
LE: loop exit
PB: predicated region body
PF: predicated region fallthrough
CT: control target
= control target key end

     0   :  { %s7802_s0 = inlined_call_operand.hbm [shape: f32[2,256,128], index: 0, kind: input, shape index: {}]   ;;  %s7803_s1 = inlined_call_operand.hbm [shape: f32[2,256,128], index: 1, kind: input, shape index: {}]   ;;  %s7804_s2 = inlined_call_operand.hbm [shape: f32[2,256,128], index: 2, kind: input, shape index: {}]   ;;  %s7805_s3 = inlined_call_operand.hbm [shape: f32[9,128,128], index: 3, kind: input, shape index: {}]   ;;  %s7806_s4 = inlined_call_operand.vmem [shape: f32[1,128], index: 4, kind: input, shape index: {}]   ;;  %s7807_s5 = inlined_call_operand.hbm [shape: f32[9,128,128], index: 5, kind: input, shape index: {}]   ;;  %s7808_s6 = inlined_call_operand.vmem [shape: f32[1,128], index: 6, kind: input, shape index: {}]   ;;  %s7809_s7 = inlined_call_operand.hbm [shape: f32[2,256,128], index: 7, kind: output, shape index: {}]  }
   0x1   :  { %7840 = sst [smem:[#allocation32_spill]] %s7802_s0 }
   0x2   :  { %7841 = sst [smem:[#allocation33_spill]] %s7803_s1 }
   0x3   :  { %7842 = sst [smem:[#allocation34_spill]] %s7804_s2 }
   0x4   :  { %7843 = sst [smem:[#allocation35_spill]] %s7805_s3 }
   0x5   :  { %7844 = sst [smem:[#allocation36_spill]] %s7806_s4 }
   0x6   :  { %7845 = sst [smem:[#allocation37_spill]] %s7807_s5 }
   0x7   :  { %7846 = sst [smem:[#allocation38_spill]] %s7808_s6 }
   0x8   :  { %7847 = sst [smem:[#allocation39_spill]] %s7809_s7 }
   0x9   :  { %12 = vsyncpa [#allocation5], 0 }
   0xa   :  { %14 = vsyncpa [#allocation5 + $0x1], 0 }
   0xb   :  { %15 = vsyncpa [#allocation8], 0 }
   0xc   :  { %17 = vsyncpa [#allocation8 + $0x1], 0 }
   0xd   :  { %18 = vsyncpa [#allocation11], 0 }
   0xe   :  { %19 = vsyncpa [#allocation6], 0 }
   0xf   :  { %21 = vsyncpa [#allocation6 + $0x1], 0  ;;  %s6587_s24 = smov 0   ;;  %s6589_s25 = smov 0  }
  0x10   :  { %s6591_s26 = smov 0   ;;  %s6593_s27 = smov 0  }
  0x11   :  { %s6595_s28 = smov 0   ;;  %s6597_s29 = smov 0  }
  0x12   :  { %s6599_s30 = smov 0   ;;  %s6601_s8 = smov 0  }
  0x13   :  { %s6603_s9 = smov 0   ;;  %s6605_s10 = smov 0  }
  0x14   :  { %s6607_s11 = smov 0   ;;  %s6609_s12 = smov 0  }
  0x15   :  { %s6611_s13 = smov 0   ;;  %s6613_s14 = smov 0  }
  0x16 LB: > { %7848 = sst [smem:[#allocation19_spill]] %s6479_s24  ;;  %s6658_s15 = sadd.s32 4294967295, %s6531_s14   ;;  %s6531_s14 = sphi %s6613_s14, %s27_s14   ;;  %s6527_s13 = sphi %s6611_s13, %s7979_s13   ;;  %s6523_s12 = sphi %s6609_s12, %s7978_s12   ;;  %s6519_s11 = sphi %s6607_s11, %s7988_s11   ;;  %s6515_s10 = sphi %s6605_s10, %s7976_s10   ;;  %s6511_s9 = sphi %s6603_s9, %s7987_s9   ;;  %s6507_s8 = sphi %s6601_s8, %s7986_s8   ;;  %s6503_s30 = sphi %s6599_s30, %s7985_s30   ;;  %s6499_s29 = sphi %s6597_s29, %s7984_s29   ;;  %s6495_s28 = sphi %s6595_s28, %s7983_s28   ;;  %s6491_s27 = sphi %s6593_s27, %s7982_s27   ;;  %s6487_s26 = sphi %s6591_s26, %s7981_s26   ;;  %s6483_s25 = sphi %s6589_s25, %s7973_s25   ;;  %s6479_s24 = sphi %s6587_s24, %s7972_s24  }
  0x17   : > { %7849 = sst [smem:[#allocation20_spill]] %s6483_s25  ;;  %p3908_p0 = scmp.ge.s32.totalorder %s6531_s14, 1 }
  0x18   : > { %7850 = sst [smem:[#allocation21_spill]] %s6487_s26  ;;  %p7811_p1 = scmp.eq.s32.totalorder %s6658_s15, 0 }
  0x19   : > { %7851 = sst [smem:[#allocation22_spill]] %s6495_s28  ;;  %p256_p3 = scmp.lt.s32.totalorder %s6531_s14, 9 }
  0x1a   : > { %7852 = sst [smem:[#allocation23_spill]] %s6515_s10  ;;  %s6533_s17 = smov [#allocation10]  }
  0x1b   : > { %7853 = sst [smem:[#allocation24_spill]] %s6519_s11  ;;  %p6664_p4 = pnand %p3908_p0, %p256_p3 }
  0x1c   : > { %7854 = sst [smem:[#allocation25_spill]] %s6523_s12  ;;  %s268_s18 = sshll.u32 %s6533_s17, 4  ;;  %s269_s18 = int_to_ptr.vmem [resolvable:$true] %s268_s18 }
  0x1d   : > { %7855 = sst [smem:[#allocation26_spill]] %s6527_s13  ;;  %p6078_p5 = pneg %p6664_p4 }
  0x1e   : > { %s7856_s16 = scalar_select %p6664_p4, 1, 0 }
  0x1f   : > { %p6672_p6 = pnand %p6078_p5, %p7811_p1  ;;  %s7859_s3 = sld [smem:[#allocation35_spill]] }
  0x20   : > { %7857 = sst [smem:[#allocation27_spill]] %s7856_s16 }
  0x21   : > { %p7831_p8 = pneg %p6672_p6 }
  0x25   : > { %s6227_s22 = scalar_lea.hbm %s7859_s3, 18432 }
  0x26   : > { %p6228_p7 = scmp.ne.s32.totalorder %s7859_s3, %s6227_s22  ;;  %p6234_p11 = scmp.lt.u32.totalorder %s6227_s22, %s7859_s3 }
  0x28   : > { %p6230_p9 = pnand %p7831_p8, %p6228_p7 }
  0x2a   : > { %p6231_p10 = pneg %p6230_p9 }
  0x2c   : > { %p6236_p12 = pnand %p6234_p11, %p6231_p10 }
  0x2e   : > { %6239 = shalt.err (!%p6236_p12)
}
  0x2f   : > { %s6240_s20 = scalar_lea.vmem %s269_s18, 18432  ;;  %p6248_p5 = scmp.lt.s32.totalorder %s269_s18, %s269_s18 }
  0x30   : > { %p6241_p13 = scmp.ne.s32.totalorder %s269_s18, %s6240_s20  ;;  %p6249_p2 = scmp.lt.s32.totalorder %s6240_s20, %s6240_s20 }
  0x32   : > { %p6243_p0 = pnand %p6241_p13, %p7831_p8  ;;  %p6250_p1 = por %p6249_p2, %p6248_p5 }
  0x34   : > { %p6244_p3 = pneg %p6243_p0 }
  0x36   : > { %p6251_p4 = pnand %p6250_p1, %p6244_p3 }
  0x38   : > { %6254 = shalt.err (!%p6251_p4)
}
  0x39   : > { %s7815_s7 = smov 128   ;;  %s7817_s11 = smov 8  }
  0x3a   : > { %6081 = dma.hbm_to_vmem [thread:$0]  (!%p6672_p6), %s7859_s3, 18432, %s269_s18, [#allocation11], %s7815_s7, %s7815_s7, %s7817_s11  }
  0x3b   : > { %s36_s23 = sadd.s32 1, %s6523_s12  ;;  %s39_s17 = sadd.s32 1, %s6527_s13 }
  0x3c   : > { %p37_p1 = scmp.ge.s32.totalorder %s36_s23, 4  ;;  %p7830_p2 = scmp.eq.s32.totalorder %s6531_s14, 0 }
  0x3d   : > { %s3902_s20 = sshll.u32 %s6523_s12, 1  ;;  %s84_s6 = sadd.s32 1, %s6499_s29 }
  0x3e   : > { %s7990_s23 = smov (%p37_p1, %s36_s23), 0  ;;  %s7992_s17 = smov (!%p37_p1, %s39_s17), %s6527_s13 }
  0x3f   : > { %7860 = sst [smem:[#allocation28_spill]] %s7990_s23  ;;  %s44_s4 = ssub.s32 %s6523_s12, %s7990_s23 }
  0x40   : > { %s3903_s10 = sadd.s32 4294967295, %s3902_s20  ;;  %p41_p4 = scmp.ge.s32.totalorder %s7992_s17, 2 }
  0x41   : > { %p73_p7 = scmp.gt.s32.totalorder %s3903_s10, 0  ;;  %s3904_s18 = sshll.u32 %s7990_s23, 1 }
  0x42   : > { %p91_p9 = scmp.ne.s32.totalorder %s6499_s29, %s6495_s28  ;;  %s7994_s17 = smov (%p41_p4, %s7992_s17), 0 }
  0x43   : > { %7861 = sst [smem:[#allocation29_spill]] %s7994_s17  ;;  %s7996_s10 = smov (!%p73_p7, %s3903_s10), 0 }
  0x44   : > { %s6718_s21 = ssub.s32 %s6527_s13, %s7994_s17  ;;  %s3905_s22 = sadd.s32 4294967295, %s3904_s18 }
  0x45   : > { %7862 = sst [smem:[#allocation30_spill]] %s6718_s21  ;;  %s6721_s7 = sor.u32 %s44_s4, %s6718_s21 }
  0x46   : > { %p77_p10 = scmp.gt.s32.totalorder %s3905_s22, 0  ;;  %p6726_p12 = por %p91_p9, %p7830_p2 }
  0x47   : > { %p97_p13 = scmp.ne.s32.totalorder %s6495_s28, %s6491_s27  ;;  %s6732_s3 = sadd.s32 2, %s3902_s20 }
  0x48   : > { %s7998_s22 = smov (!%p77_p10, %s3905_s22), 0  ;;  %p7864_p3 = scmp.eq.s32.totalorder %s6658_s15, 0 }
  0x49   : > { %s80_s17 = ssub.s32 %s7996_s10, %s7998_s22  ;;  %s6742_s16 = sadd.s32 2, %s3904_s18 }
  0x4a   : > { %s81_s4 = sor.u32 %s80_s17, %s6718_s21  ;;  %p6738_p5 = por %p97_p13, %p7864_p3 }
  0x4b   : > { %p82_p1 = scmp.eq.s32.totalorder %s81_s4, 0  ;;  %p7829_p7 = scmp.lt.s32.totalorder %s6531_s14, 8 }
  0x4c   : > { %s7865_s23 = scalar_select %p6738_p5, 1, 0 }
  0x4d   : > { %s6747_s27 = scalar_select %p82_p1, %s6499_s29, %s84_s6  }
  0x4e   : > { %7866 = sst [smem:[#allocation31_spill]] %s7865_s23  ;;  %s6750_s20 = sshll.u32 %s6527_s13, 5 }
  0x4f   : > { %s324_s22 = sand.u32 1, %s6531_s14   ;;  %s326_s17 = sand.u32 1, %s6499_s29  }
  0x50   : > { %s3916_s28 = sshll.u32 %s326_s17, 5  ;;  %s3919_s2 = sshll.u32 %s7996_s10, 2 }
  0x51   : > { %s338_s21 = sadd.s32 %s3919_s2, %s6750_s20  ;;  %s328_s23 = scalar_lea.vmem [#allocation7], %s3916_s28 }
  0x52   : > { %s3921_s24 = sshll.u32 %s338_s21, 7  ;;  %s341_s4 = sshll.u32 %s328_s23, 4  ;;  %s6760_s4 = int_to_ptr.vmem [resolvable:$true] %s341_s4 }
  0x53   : > { %s7867_s1 = sld [smem:[#allocation33_spill]]  ;;  %p6766_p9 = pnand %p7829_p7, %p6726_p12 }
  0x54   : > { %s6536_s2 = smov [#allocation12]  }
  0x55   : > { %s284_s28 = sshll.u32 %s6536_s2, 4  ;;  %p6257_p13 = pneg %p6766_p9  ;;  %s6770_s28 = int_to_ptr.vmem [resolvable:$true] %s284_s28 }
  0x59   : > { %s6758_s18 = scalar_lea.hbm %s7867_s1, %s3921_s24  ;;  %s6772_s24 = scalar_lea.sflag [#allocation8], %s324_s22 }
  0x5a   : > { %s6255_s25 = scalar_lea.hbm %s6758_s18, 512  ;;  %s6260_s11 = scalar_lea.hbm %s7867_s1, 8192 }
  0x5b   : > { %p6256_p10 = scmp.ne.s32.totalorder %s6758_s18, %s6255_s25  ;;  %p6261_p12 = scmp.lt.u32.totalorder %s6758_s18, %s7867_s1 }
  0x5c   : > { %p6262_p4 = scmp.lt.u32.totalorder %s6260_s11, %s6255_s25  ;;  %p6264_p7 = scmp.lt.u32.totalorder %s6255_s25, %s6758_s18 }
  0x5d   : > { %p6258_p3 = pnand %p6257_p13, %p6256_p10 }
  0x5e   : > { %p6263_p0 = por %p6262_p4, %p6261_p12 }
  0x5f   : > { %p6259_p1 = pneg %p6258_p3 }
  0x60   : > { %p6265_p2 = por %p6264_p7, %p6263_p0 }
  0x62   : > { %p6266_p11 = pnand %p6265_p2, %p6259_p1 }
  0x64   : > { %6269 = shalt.err (!%p6266_p11)
}
  0x65   : > { %s6270_s22 = scalar_lea.vmem %s6760_s4, 512  ;;  %s6537_s17 = smov [#allocation7]  }
  0x66   : > { %p6271_p10 = scmp.ne.s32.totalorder %s6760_s4, %s6270_s22  ;;  %s6275_s2 = sshll.u32 %s6537_s17, 4  ;;  %s6276_s2 = int_to_ptr.vmem [resolvable:$false] %s6275_s2 }
  0x67   : > { %s6277_s26 = scalar_lea.vmem %s6276_s2, 1024  ;;  %p6278_p5 = scmp.lt.s32.totalorder %s6760_s4, %s6276_s2 }
  0x68   : > { %p6273_p3 = pnand %p6271_p10, %p6257_p13  ;;  %p6279_p4 = scmp.lt.s32.totalorder %s6277_s26, %s6270_s22 }
  0x6a   : > { %p6274_p8 = pneg %p6273_p3  ;;  %p6280_p12 = por %p6279_p4, %p6278_p5 }
  0x6c   : > { %p6281_p0 = pnand %p6280_p12, %p6274_p8 }
  0x6e   : > { %6284 = shalt.err (!%p6281_p0)
}
  0x6f   : > { %s7869_s25 = smov 8   ;;  %s7870_s10 = smov 128  }
  0x70   : > { %6091 = dma.hbm_to_vmem [thread:$0]  (!%p6766_p9), %s6758_s18, 512, %s6760_s4, %s6772_s24, %s7870_s10, %s7870_s10, %s7869_s25  }
  0x71   : > { %s7871_s5 = sld [smem:[#allocation37_spill]]  ;;  %p7872_p8 = pneg %p6672_p6 }
  0x77   : > { %s6285_s21 = scalar_lea.hbm %s7871_s5, 18432 }
  0x78   : > { %p6286_p2 = scmp.ne.s32.totalorder %s7871_s5, %s6285_s21  ;;  %p6292_p7 = scmp.lt.u32.totalorder %s6285_s21, %s7871_s5 }
  0x7a   : > { %p6288_p11 = pnand %p6286_p2, %p7872_p8 }
  0x7c   : > { %p6289_p5 = pneg %p6288_p11 }
  0x7e   : > { %p6294_p13 = pnand %p6292_p7, %p6289_p5 }
  0x80   : > { %6297 = shalt.err (!%p6294_p13)
}
  0x81   : > { %s6298_s4 = scalar_lea.vmem %s6770_s28, 18432  ;;  %p7873_p1 = pmov %p7872_p8 }
  0x82   : > { %p6299_p9 = scmp.ne.s32.totalorder %s6770_s28, %s6298_s4  ;;  %p6306_p4 = scmp.lt.s32.totalorder %s6770_s28, %s6770_s28 }
  0x83   : > { %p6307_p12 = scmp.lt.s32.totalorder %s6298_s4, %s6298_s4 }
  0x84   : > { %p6301_p10 = pnand %p6299_p9, %p7873_p1 }
  0x85   : > { %p6308_p0 = por %p6307_p12, %p6306_p4 }
  0x86   : > { %p6302_p3 = pneg %p6301_p10 }
  0x88   : > { %p6309_p2 = pnand %p6308_p0, %p6302_p3 }
  0x8a   : > { %6312 = shalt.err (!%p6309_p2)
}
  0x8b   : > { %6084 = dma.hbm_to_vmem [thread:$0]  (!%p6672_p6), %s7871_s5, 18432, %s6770_s28, [#allocation11], %s7870_s10, %s7870_s10, %s7869_s25  }
  0x8c   : > { %s3901_s19 = sadd.s32 4294967294, %s6531_s14   ;;  %s48_s11 = sadd.s32 1, %s6511_s9 }
  0x8d   : > { %p55_p8 = scmp.ne.s32.totalorder %s6511_s9, %s6507_s8  ;;  %p7874_p11 = scmp.eq.s32.totalorder %s6721_s7, 0 }
  0x8e   : > { %p7875_p5 = scmp.eq.s32.totalorder %s6531_s14, 0  ;;  %p61_p13 = scmp.ne.s32.totalorder %s6507_s8, %s6503_s30 }
  0x8f   : > { %s6838_s23 = scalar_select %p7874_p11, %s6511_s9, %s48_s11  }
  0x90   : > { %p6842_p7 = por %p7875_p5, %p55_p8  ;;  %p7877_p9 = scmp.eq.s32.totalorder %s6658_s15, 7 }
  0x91   : > { %p249_p6 = scmp.eq.s32.totalorder %s3901_s19, 7  ;;  %p7879_p10 = scmp.eq.s32.totalorder %s6658_s15, 0 }
  0x92   : > { %p6850_p1 = por %p7877_p9, %p55_p8  ;;  %s301_s7 = sand.u32 1, %s6511_s9  }
  0x93   : > { %p6856_p3 = por %p7879_p10, %p61_p13  ;;  %p6861_p4 = por %p249_p6, %p61_p13 }
  0x94   : > { %s7878_s17 = scalar_select %p6850_p1, 1, 0 }
  0x95   : > { %s7881_s2 = scalar_select %p6861_p4, 1, 0 }
  0x96   : > { %s3912_s6 = sshll.u32 %s301_s7, 6  ;;  %s3913_s22 = sshll.u32 %s6523_s12, 3 }
  0x97   : > { %s311_s4 = sadd.s32 %s6750_s20, %s3913_s22  ;;  %s305_s26 = scalar_lea.vmem [#allocation4], %s3912_s6 }
  0x98   : > { %s3915_s18 = sshll.u32 %s311_s4, 7  ;;  %s314_s11 = sshll.u32 %s305_s26, 4  ;;  %s6872_s11 = int_to_ptr.vmem [resolvable:$true] %s314_s11 }
  0x99   : > { %s7882_s0 = sld [smem:[#allocation32_spill]]  ;;  %p7883_p12 = scmp.lt.s32.totalorder %s6531_s14, 8 }
  0x9a   : > { %s6882_s6 = scalar_lea.sflag [#allocation5], %s301_s7 }
  0x9b   : > { %p6878_p0 = pnand %p7883_p12, %p6842_p7 }
  0x9d   : > { %p6315_p8 = pneg %p6878_p0 }
  0x9f   : > { %s6870_s19 = scalar_lea.hbm %s7882_s0, %s3915_s18  ;;  %s6318_s21 = scalar_lea.hbm %s7882_s0, 8192 }
  0xa0   : > { %s6313_s22 = scalar_lea.hbm %s6870_s19, 1024  ;;  %p6319_p7 = scmp.lt.u32.totalorder %s6870_s19, %s7882_s0 }
  0xa1   : > { %p6314_p2 = scmp.ne.s32.totalorder %s6870_s19, %s6313_s22  ;;  %p6320_p13 = scmp.lt.u32.totalorder %s6318_s21, %s6313_s22 }
  0xa2   : > { %p6322_p6 = scmp.lt.u32.totalorder %s6313_s22, %s6870_s19 }
  0xa3   : > { %p6316_p11 = pnand %p6315_p8, %p6314_p2  ;;  %p6321_p9 = por %p6320_p13, %p6319_p7 }
  0xa5   : > { %p6317_p5 = pneg %p6316_p11  ;;  %p6323_p10 = por %p6322_p6, %p6321_p9 }
  0xa7   : > { %p6324_p12 = pnand %p6323_p10, %p6317_p5 }
  0xa9   : > { %6327 = shalt.err (!%p6324_p12)
}
  0xaa   : > { %s6328_s7 = scalar_lea.vmem %s6872_s11, 1024  ;;  %s6538_s26 = smov [#allocation4]  }
  0xab   : > { %p6329_p2 = scmp.ne.s32.totalorder %s6872_s11, %s6328_s7  ;;  %s6333_s1 = sshll.u32 %s6538_s26, 4  ;;  %s6334_s1 = int_to_ptr.vmem [resolvable:$false] %s6333_s1 }
  0xac   : > { %s6335_s5 = scalar_lea.vmem %s6334_s1, 2048  ;;  %p6336_p1 = scmp.lt.s32.totalorder %s6872_s11, %s6334_s1 }
  0xad   : > { %p6331_p11 = pnand %p6329_p2, %p6315_p8  ;;  %p6337_p7 = scmp.lt.s32.totalorder %s6335_s5, %s6328_s7 }
  0xaf   : > { %p6332_p4 = pneg %p6331_p11  ;;  %p6338_p13 = por %p6337_p7, %p6336_p1 }
  0xb1   : > { %p6339_p9 = pnand %p6338_p13, %p6332_p4 }
  0xb3   : > { %6342 = shalt.err (!%p6339_p9)
}
  0xb4   : > { %s7885_s22 = sld [smem:[#allocation21_spill]]  ;;  %s7886_s21 = sld [smem:[#allocation20_spill]] }
  0xb5   : > { %s7887_s4 = sld [smem:[#allocation19_spill]]  ;;  %s7888_s18 = sld [smem:[#allocation30_spill]] }
  0xb6   : > { %6088 = dma.hbm_to_vmem [thread:$0]  (!%p6878_p0), %s6870_s19, 1024, %s6872_s11, %s6882_s6, %s7870_s10, %s7870_s10, %s7869_s25  }
  0xb7   : > { %p7889_p1 = scmp.lt.s32.totalorder %s6732_s3, 7  ;;  %p7890_p4 = scmp.lt.s32.totalorder %s6742_s16, 7 }
  0xb8   : > { %p7891_p6 = scmp.eq.s32.totalorder %s6531_s14, 0  ;;  %p7893_p2 = scmp.eq.s32.totalorder %s6658_s15, 0 }
  0xb9   : > { %s8000_s3 = smov (!%p7889_p1, %s6732_s3), 7  ;;  %s8002_s16 = smov (!%p7890_p4, %s6742_s16), 7 }
  0xba   : > { %s120_s13 = sadd.s32 1, %s7885_s22  ;;  %p127_p8 = scmp.ne.s32.totalorder %s7885_s22, %s7886_s21 }
  0xbb   : > { %s116_s7 = ssub.s32 %s8000_s3, %s8002_s16  ;;  %p133_p5 = scmp.ne.s32.totalorder %s7886_s21, %s7887_s4 }
  0xbc   : > { %s117_s26 = sor.u32 %s116_s7, %s7888_s18  ;;  %p6927_p10 = por %p127_p8, %p7891_p6 }
  0xbd   : > { %p118_p12 = scmp.eq.s32.totalorder %s117_s26, 0  ;;  %p6933_p11 = por %p133_p5, %p7893_p2 }
  0xbe   : > { %s353_s19 = sand.u32 1, %s7885_s22   ;;  %s3924_s6 = sshll.u32 %s8000_s3, 2 }
  0xbf   : > { %s7894_s11 = scalar_select %p6933_p11, 1, 0 }
  0xc0   : > { %s8004_s22 = smov (!%p118_p12, %s7885_s22), %s120_s13  ;;  %s3922_s16 = sshll.u32 %s353_s19, 5 }
  0xc1   : > { %s365_s5 = sadd.s32 %s3924_s6, %s6750_s20  ;;  %s7895_s7 = sld [smem:[#allocation34_spill]] }
  0xc2   : > { %s3926_s21 = sshll.u32 %s365_s5, 7  ;;  %s355_s26 = scalar_lea.vmem [#allocation9], %s3922_s16 }
  0xc3   : > { %s368_s12 = sshll.u32 %s355_s26, 4  ;;  %p7896_p0 = scmp.lt.s32.totalorder %s6531_s14, 8  ;;  %s6947_s12 = int_to_ptr.vmem [resolvable:$true] %s368_s12 }
  0xc5   : > { %p6953_p7 = pnand %p7896_p0, %p6927_p10 }
  0xc7   : > { %s6945_s0 = scalar_lea.hbm %s7895_s7, %s3926_s21  ;;  %p6345_p9 = pneg %p6953_p7 }
  0xc8   : > { %s6343_s20 = scalar_lea.hbm %s6945_s0, 512  ;;  %s6348_s6 = scalar_lea.hbm %s7895_s7, 8192 }
  0xc9   : > { %p6344_p13 = scmp.ne.s32.totalorder %s6945_s0, %s6343_s20  ;;  %p6349_p8 = scmp.lt.u32.totalorder %s6945_s0, %s7895_s7 }
  0xca   : > { %p6350_p5 = scmp.lt.u32.totalorder %s6348_s6, %s6343_s20  ;;  %p6352_p10 = scmp.lt.u32.totalorder %s6343_s20, %s6945_s0 }
  0xcb   : > { %p6346_p1 = pnand %p6345_p9, %p6344_p13 }
  0xcc   : > { %p6351_p6 = por %p6350_p5, %p6349_p8 }
  0xcd   : > { %p6347_p4 = pneg %p6346_p1 }
  0xce   : > { %p6353_p12 = por %p6352_p10, %p6351_p6 }
  0xd0   : > { %p6354_p2 = pnand %p6353_p12, %p6347_p4 }
  0xd2   : > { %6357 = shalt.err (!%p6354_p2)
}
  0xd3   : > { %s6358_s5 = scalar_lea.vmem %s6947_s12, 512  ;;  %s6539_s21 = smov [#allocation9]  }
  0xd4   : > { %p6359_p0 = scmp.ne.s32.totalorder %s6947_s12, %s6358_s5  ;;  %s6363_s4 = sshll.u32 %s6539_s21, 4  ;;  %s6364_s4 = int_to_ptr.vmem [resolvable:$false] %s6363_s4 }
  0xd5   : > { %s6365_s18 = scalar_lea.vmem %s6364_s4, 1024  ;;  %p6366_p11 = scmp.lt.s32.totalorder %s6947_s12, %s6364_s4 }
  0xd6   : > { %p6361_p13 = pnand %p6359_p0, %p6345_p9  ;;  %p6367_p8 = scmp.lt.s32.totalorder %s6365_s18, %s6358_s5 }
  0xd8   : > { %p6362_p1 = pneg %p6361_p13  ;;  %p6368_p5 = por %p6367_p8, %p6366_p11 }
  0xda   : > { %p6369_p6 = pnand %p6368_p5, %p6362_p1 }
  0xdc   : > { %6372 = shalt.err (!%p6369_p6)
}
  0xdd   : > { %6094 = dma.hbm_to_vmem [thread:$0]  (!%p6953_p7), %s6945_s0, 512, %s6947_s12, %s6772_s24, %s7870_s10, %s7870_s10, %s7869_s25  }
  0xde   : > { %s7898_s26 = sld [smem:[#allocation27_spill]] }
  0xe4   : > { %p7899_p9 = scmp.ne.s32.totalorder %s7898_s26, 0 }
  0xe5   : > { %s6989_s20 = sand.u32 (!%p7899_p9), 1, %s6507_s8  }
  0xe6   : > { %380 = sbr.rel (%p7899_p9) target bundleno = 1363 (0x553), region = 48  ;;  %s3928_s13 = sshll.u32 (!%p7899_p9), %s6989_s20, 6 }
  0xe7   : > { %s383_s19 = scalar_lea.sflag (!%p7899_p9), [#allocation5], %s6989_s20  ;;  %s6995_s3 = scalar_lea.vmem (!%p7899_p9), [#allocation4], %s3928_s13 }
  0xed   : > { %6458 = dma.done.wait (%p6856_p3), %s383_s19, 1024  }
  0xee   : > { %6460 = vsyncadd (%p6856_p3), %s383_s19, 4294966272  ;;  %s7900_s0 = sld [smem:[#allocation22_spill]]  ;;  %s7901_s12 = sld [smem:[#allocation31_spill]] }
  0xef   : > { %s391_s24 = sand.u32 1, %s6658_s15  }
  0xf0   : > { %s392_s6 = scalar_lea.sflag [#allocation8], %s391_s24 }
  0xf4   : > { %s393_s25 = sand.u32 1, %s7900_s0   ;;  %p7902_p11 = scmp.ne.s32.totalorder %s7901_s12, 0 }
  0xf5   : > { %s3929_s10 = sshll.u32 %s393_s25, 5 }
  0xf6   : > { %s395_s1 = scalar_lea.vmem [#allocation7], %s3929_s10 }
  0xf7   : > { %6462 = dma.done.wait (%p7902_p11), %s392_s6, 512  }
  0xf8   : > { %6464 = vsyncadd (%p7902_p11), %s392_s6, 4294966784  ;;  %s7903_s16 = sld [smem:[#allocation20_spill]]  ;;  %p7904_p3 = scmp.ne.s32.totalorder %s7894_s11, 0 }
  0xfe   : > { %s402_s5 = sand.u32 1, %s7903_s16  }
  0xff   : > { %s3930_s21 = sshll.u32 %s402_s5, 5 }
 0x100   : > { %s7008_s4 = scalar_lea.vmem [#allocation9], %s3930_s21 }
 0x101   : > { %6466 = dma.done.wait (%p7904_p3), %s392_s6, 512  }
 0x102   : > { %6468 = vsyncadd (%p7904_p3), %s392_s6, 4294966784  ;;  %p7905_p7 = scmp.eq.s32.totalorder %s6658_s15, 0 }
 0x104   : > { %6470 = dma.done.wait (%p7905_p7), [#allocation11], 36864   ;;  %p7906_p4 = pmov %p7905_p7 }
 0x105   : > { %v465_v0 = vld [vmem:[%s395_s1] sm:$0xff]  ;;  %v466_v1 = vld [vmem:[%s395_s1 + $0x8] sm:$0xff]  ;;  %v467_v2 = vld [vmem:[%s395_s1 + $0x10] sm:$0xff]  ;;  %s7032_s15 = scalar_lea.vmem [#allocation13], %s3928_s13  ;;  %s7907_s28 = sld [smem:[#allocation23_spill]] }
 0x106   : > { %6472 = vsyncadd (%p7906_p4), [#allocation11], 4294930432  ;;  %v469_v3 = vmax.f32 %v465_v0, 0.0  ;;  %v470_v4 = vmax.f32 %v466_v1, 0.0  ;;  %v471_v5 = vmax.f32 %v467_v2, 0.0  ;;  %v468_v6 = vld [vmem:[%s395_s1 + $0x18] sm:$0xff] }
 0x107   : > { %v477_v7 = vld [vmem:[%s6995_s3] sm:$0xff]  ;;  %v478_v8 = vld [vmem:[%s6995_s3 + $0x8] sm:$0xff]  ;;  %v472_v9 = vmax.f32 %v468_v6, 0.0  ;;  %v479_v12 = vld [vmem:[%s6995_s3 + $0x10] sm:$0xff] }
 0x108   : > { %v485_v10 = vmax.f32 %v477_v7, 0.0  ;;  %v486_v11 = vmax.f32 %v478_v8, 0.0  ;;  %v480_v13 = vld [vmem:[%s6995_s3 + $0x18] sm:$0xff]  ;;  %v481_v14 = vld [vmem:[%s6995_s3 + $0x20] sm:$0xff]  ;;  %473 = vst [vmem:[#allocation2] sm:$0xff] %v469_v3  ;;  %474 = vst [vmem:[#allocation2 + $0x8] sm:$0xff] %v470_v4 }
 0x109   : > { %475 = vst [vmem:[#allocation2 + $0x10] sm:$0xff] %v471_v5  ;;  %v487_v15 = vmax.f32 %v479_v12, 0.0  ;;  %v488_v16 = vmax.f32 %v480_v13, 0.0  ;;  %v489_v17 = vmax.f32 %v481_v14, 0.0  ;;  %v482_v18 = vld [vmem:[%s6995_s3 + $0x28] sm:$0xff]  ;;  %v483_v19 = vld [vmem:[%s6995_s3 + $0x30] sm:$0xff] }
 0x10a   : > { %v484_v20 = vld [vmem:[%s6995_s3 + $0x38] sm:$0xff]  ;;  %476 = vst [vmem:[#allocation2 + $0x18] sm:$0xff] %v472_v9  ;;  %493 = vst [vmem:[#allocation2 + $0x20] sm:$0xff] %v485_v10  ;;  %v490_v21 = vmax.f32 %v482_v18, 0.0  ;;  %v491_v22 = vmax.f32 %v483_v19, 0.0  ;;  %v501_v24 = vld [vmem:[%s7008_s4] sm:$0xff] }
 0x10b   : > { %494 = vst [vmem:[#allocation2 + $0x28] sm:$0xff] %v486_v11  ;;  %v492_v23 = vmax.f32 %v484_v20, 0.0  ;;  %v502_v25 = vld [vmem:[%s7008_s4 + $0x8] sm:$0xff]  ;;  %v503_v26 = vld [vmem:[%s7008_s4 + $0x10] sm:$0xff]  ;;  %495 = vst [vmem:[#allocation2 + $0x30] sm:$0xff] %v487_v15  ;;  %v505_v27 = vmax.f32 %v501_v24, 0.0 }
 0x10c   : > { %496 = vst [vmem:[#allocation2 + $0x38] sm:$0xff] %v488_v16  ;;  %497 = vst [vmem:[#allocation2 + $0x40] sm:$0xff] %v489_v17  ;;  %v506_v28 = vmax.f32 %v502_v25, 0.0  ;;  %v507_v29 = vmax.f32 %v503_v26, 0.0  ;;  %v504_v30 = vld [vmem:[%s7008_s4 + $0x18] sm:$0xff]  ;;  %p3934_p10 = scmp.ne.s32.totalorder %s7907_s28, 0 }
 0x10d   : > { %498 = vst [vmem:[#allocation2 + $0x48] sm:$0xff] %v490_v21  ;;  %499 = vst [vmem:[#allocation2 + $0x50] sm:$0xff] %v491_v22  ;;  %v508_v31 = vmax.f32 %v504_v30, 0.0  ;;  %v6540_v32 = vmov (!%p3934_p10), 0.0  }
 0x10e   : > { %500 = vst [vmem:[#allocation2 + $0x58] sm:$0xff] %v492_v23  ;;  %509 = vst [vmem:[#allocation2 + $0x60] sm:$0xff] %v505_v27  ;;  %516 = sbr.rel (%p3934_p10) target bundleno = 277 (0x115), region = 72 }
 0x10f   : > { %510 = vst [vmem:[#allocation2 + $0x68] sm:$0xff] %v506_v28  ;;  %511 = vst [vmem:[#allocation2 + $0x70] sm:$0xff] %v507_v29 }
 0x110   : > { %512 = vst [vmem:[#allocation2 + $0x78] sm:$0xff] %v508_v31  ;;  %517 = vst [vmem:[#allocation2] sm:$0xff] (!%p3934_p10), %v6540_v32 }
 0x111   : > { %518 = vst [vmem:[#allocation2 + $0x8] sm:$0xff] (!%p3934_p10), %v6540_v32  ;;  %519 = vst [vmem:[#allocation2 + $0x10] sm:$0xff] (!%p3934_p10), %v6540_v32 }
 0x112   : > { %520 = vst [vmem:[#allocation2 + $0x18] sm:$0xff] (!%p3934_p10), %v6540_v32 }
 0x115 PF: > { %s7908_s11 = sld [smem:[#allocation23_spill]] }
 0x11b   : > { %p3935_p12 = scmp.ne.s32.totalorder %s7908_s11, 3 }
 0x11c   : > { %v6541_v33 = vmov (!%p3935_p12), 0.0  }
 0x11d   : > { %524 = sbr.rel (%p3935_p12) target bundleno = 292 (0x124), region = 76  ;;  %525 = vst [vmem:[#allocation2 + $0x60] sm:$0xff] (!%p3935_p12), %v6541_v33  ;;  %526 = vst [vmem:[#allocation2 + $0x68] sm:$0xff] (!%p3935_p12), %v6541_v33 }
 0x11e   : > { %527 = vst [vmem:[#allocation2 + $0x70] sm:$0xff] (!%p3935_p12), %v6541_v33  ;;  %528 = vst [vmem:[#allocation2 + $0x78] sm:$0xff] (!%p3935_p12), %v6541_v33 }
 0x124 PF: > { %v1015_v34 = vld [vmem:[#allocation10 + $0x80] sm:$0xff]  ;;  %v1016_v35 = vld [vmem:[#allocation10 + $0x88] sm:$0xff]  ;;  %v1017_v36 = vld [vmem:[#allocation10 + $0x90] sm:$0xff]  ;;  %v545_v13 = vlaneseq  ;;  %vm7839_vm0 = vcmask 1040384   ;;  %vm7838_vm7 = vcmask 1046528   ;;  %s7940_s13 = sld [smem:[#allocation36_spill]] }
 0x125   : > { %v5326_v37 = vpack.c.bf16 %v1016_v35, %v1015_v34  ;;  %v1018_v38 = vld [vmem:[#allocation10 + $0x98] sm:$0xff]  ;;  %v1019_v40 = vld [vmem:[#allocation10 + $0xa0] sm:$0xff]  ;;  %v1020_v41 = vld [vmem:[#allocation10 + $0xa8] sm:$0xff] }
 0x126   : > { %v5330_v39 = vpack.c.bf16 %v1018_v38, %v1017_v36  ;;  %v5334_v42 = vpack.c.bf16 %v1020_v41, %v1019_v40  ;;  %v7040_v43 = vld [vmem:[#allocation2] sm:$0xff]  ;;  %v1021_v44 = vld [vmem:[#allocation10 + $0xb0] sm:$0xff]  ;;  %v1022_v45 = vld [vmem:[#allocation10 + $0xb8] sm:$0xff]  ;;  %v7065_v19 = vshrl.u32 %v545_v13, 7 }
 0x127   : > { %5327 = vmatprep.subr.bf16.mxu0 %v5326_v37  ;;  %4512 = vmatprep.mubr.f32.mxu0 %v7040_v43  ;;  %v5338_v46 = vpack.c.bf16 %v1022_v45, %v1021_v44  ;;  %v1023_v47 = vld [vmem:[#allocation10 + $0xc0] sm:$0xff]  ;;  %v1024_v48 = vld [vmem:[#allocation10 + $0xc8] sm:$0xff]  ;;  %v1025_v50 = vld [vmem:[#allocation10 + $0xd0] sm:$0xff]  ;;  %v823_v24 = vrot.slane %v7040_v43, 7 }
 0x128   : > { %5329 = vmatpush3.bf16.msra.mxu0 %v5326_v37  ;;  %v5342_v49 = vpack.c.bf16 %v1024_v48, %v1023_v47  ;;  %v1026_v51 = vld [vmem:[#allocation10 + $0xd8] sm:$0xff]  ;;  %v1027_v53 = vld [vmem:[#allocation10 + $0xe0] sm:$0xff]  ;;  %v1028_v54 = vld [vmem:[#allocation10 + $0xe8] sm:$0xff]  ;;  %v566_v27 = vand.u32 15, %v7065_v19  ;;  %v548_v38 = vadd.s32 16, %v7065_v19 }
 0x129   : > { %5331 = vmatprep.subr.bf16.mxu0 %v5330_v39  ;;  %v5346_v52 = vpack.c.bf16 %v1026_v51, %v1025_v50  ;;  %v5350_v55 = vpack.c.bf16 %v1028_v54, %v1027_v53  ;;  %v1029_v56 = vld [vmem:[#allocation10 + $0xf0] sm:$0xff]  ;;  %v1030_v57 = vld [vmem:[#allocation10 + $0xf8] sm:$0xff]  ;;  %v998_v59 = vld [vmem:[#allocation10] sm:$0xff] }
 0x12a   : > { %v5354_v58 = vpack.c.bf16 %v1030_v57, %v1029_v56  ;;  %v999_v60 = vld [vmem:[#allocation10 + $0x8] sm:$0xff]  ;;  %v1000_v62 = vld [vmem:[#allocation10 + $0x10] sm:$0xff]  ;;  %v1001_v63 = vld [vmem:[#allocation10 + $0x18] sm:$0xff]  ;;  %vm7085_vm1 = vcmp.gt.s32.totalorder %v566_v27, 0 }
 0x12b   : > { %v5358_v61 = vpack.c.bf16 %v999_v60, %v998_v59  ;;  %v7043_v0 = vld [vmem:[#allocation2 + $0x8] sm:$0xff]  ;;  %v5362_v1 = vpack.c.bf16 %v1001_v63, %v1000_v62  ;;  %v7045_v2 = vld [vmem:[#allocation2 + $0x10] sm:$0xff]  ;;  %v1002_v3 = vld [vmem:[#allocation10 + $0x20] sm:$0xff]  ;;  %v554_v62 = vadd.s32 64, %v7065_v19 }
 0x12c   : > { %5333 = vmatpush3.bf16.msra.mxu0 %v5330_v39  ;;  %v1003_v4 = vld [vmem:[#allocation10 + $0x28] sm:$0xff]  ;;  %v7049_v5 = vld [vmem:[#allocation2 + $0x18] sm:$0xff]  ;;  %v7051_v7 = vld [vmem:[#allocation2 + $0x20] sm:$0xff]  ;;  %v824_v41 = vrot.slane %v7043_v0, 7  ;;  %v826_v44 = vrot.slane %v7045_v2, 7 }
 0x12d   : > { %5335 = vmatprep.subr.bf16.mxu0 %v5334_v42  ;;  %v5366_v6 = vpack.c.bf16 %v1003_v4, %v1002_v3  ;;  %v1004_v8 = vld [vmem:[#allocation10 + $0x30] sm:$0xff]  ;;  %v1005_v9 = vld [vmem:[#allocation10 + $0x38] sm:$0xff]  ;;  %v7055_v10 = vld [vmem:[#allocation2 + $0x28] sm:$0xff]  ;;  %v828_v50 = vrot.slane %v7049_v5, 7  ;;  %v830_v56 = vrot.slane %v7051_v7, 7 }
 0x12e   : > { %v5370_v11 = vpack.c.bf16 %v1005_v9, %v1004_v8  ;;  %v7057_v12 = vld [vmem:[#allocation2 + $0x30] sm:$0xff]  ;;  %v1006_v14 = vld [vmem:[#allocation10 + $0x40] sm:$0xff]  ;;  %v1007_v15 = vld [vmem:[#allocation10 + $0x48] sm:$0xff]  ;;  %v7100_v54 = vsel %vm7839_vm0, %v824_v41, %v826_v44  ;;  %v832_v60 = vrot.slane %v7055_v10, 7 }
 0x12f   : > { %v7061_v16 = vld [vmem:[#allocation2 + $0x38] sm:$0xff]  ;;  %v5374_v17 = vpack.c.bf16 %v1007_v15, %v1006_v14  ;;  %v7063_v18 = vld [vmem:[#allocation2 + $0x40] sm:$0xff]  ;;  %v1008_v20 = vld [vmem:[#allocation10 + $0x50] sm:$0xff]  ;;  %v7111_v59 = vsel %vm7839_vm0, %v826_v44, %v828_v50  ;;  %v834_v4 = vrot.slane %v7057_v12, 7 }
 0x130   : > { %5337 = vmatpush3.bf16.msra.mxu0 %v5334_v42  ;;  %v1009_v21 = vld [vmem:[#allocation10 + $0x58] sm:$0xff]  ;;  %v7071_v23 = vld [vmem:[#allocation2 + $0x48] sm:$0xff]  ;;  %v7074_v26 = vld [vmem:[#allocation2 + $0x50] sm:$0xff]  ;;  %v550_v42 = vadd.s32 32, %v7065_v19  ;;  %v7128_v9 = vsel %vm7839_vm0, %v830_v56, %v832_v60  ;;  %v836_v13 = vrot.slane %v7061_v16, 7  ;;  %v838_v14 = vrot.slane %v7063_v18, 7 }
 0x131   : > { %5339 = vmatprep.subr.bf16.mxu0 %v5338_v46  ;;  %v7067_v22 = vld [vmem:[#allocation2 + $0x78] sm:$0xff]  ;;  %v5378_v25 = vpack.c.bf16 %v1009_v21, %v1008_v20  ;;  %v1010_v29 = vld [vmem:[#allocation10 + $0x60] sm:$0xff]  ;;  %v1011_v30 = vld [vmem:[#allocation10 + $0x68] sm:$0xff]  ;;  %v622_v20 = vand.u32 15, %v554_v62  ;;  %v556_v21 = vadd.s32 80, %v7065_v19  ;;  %v549_v62 = vadd.s32 24, %v7065_v19 }
 0x132   : > { %v820_v28 = vrot.slane %v7067_v22, 7  ;;  %v7080_v31 = vld [vmem:[#allocation2 + $0x58] sm:$0xff]  ;;  %v5382_v32 = vpack.c.bf16 %v1011_v30, %v1010_v29  ;;  %v1012_v35 = vld [vmem:[#allocation10 + $0x70] sm:$0xff]  ;;  %v1282_v39 = vld [vmem:[#allocation10 + $0x100] sm:$0xff]  ;;  %v594_v51 = vand.u32 15, %v550_v42  ;;  %v7145_v27 = vsel %vm7839_vm0, %v834_v4, %v836_v13 }
 0x133   : > { %v1013_v36 = vld [vmem:[#allocation10 + $0x78] sm:$0xff]  ;;  %v1283_v40 = vld [vmem:[#allocation10 + $0x108] sm:$0xff]  ;;  %v1284_v47 = vld [vmem:[#allocation10 + $0x110] sm:$0xff]  ;;  %v7148_v29 = vsel %vm7839_vm0, %v836_v13, %v838_v14  ;;  %v840_v30 = vrot.slane %v7071_v23, 7  ;;  %vm7151_vm5 = vcmp.gt.s32.totalorder %v622_v20, 0  ;;  %v772_v42 = vrot.slane %v7043_v0, 1 }
 0x134   : > { %5341 = vmatpush3.bf16.msra.mxu0 %v5338_v46  ;;  %v869_v33 = vsel %vm7839_vm0, %v820_v28, %v823_v24  ;;  %v5386_v37 = vpack.c.bf16 %v1013_v36, %v1012_v35  ;;  %v5390_v45 = vpack.c.bf16 %v1283_v40, %v1282_v39  ;;  %v580_v46 = vand.u32 15, %v548_v38  ;;  %v1285_v48 = vld [vmem:[#allocation10 + $0x118] sm:$0xff]  ;;  %v1286_v57 = vld [vmem:[#allocation10 + $0x120] sm:$0xff] }
 0x135   : > { %5343 = vmatprep.subr.bf16.mxu0 %v5342_v49  ;;  %v5394_v53 = vpack.c.bf16 %v1285_v48, %v1284_v47  ;;  %vm7118_vm3 = vcmp.gt.s32.totalorder %v594_v51, 0  ;;  %v1289_v8 = vld [vmem:[#allocation10 + $0x138] sm:$0xff]  ;;  %v636_v35 = vand.u32 15, %v556_v21  ;;  %v842_v36 = vrot.slane %v7074_v26, 7  ;;  %v1294_v47 = vld [vmem:[#allocation10 + $0x160] sm:$0xff]  ;;  %v1295_v48 = vld [vmem:[#allocation10 + $0x168] sm:$0xff] }
 0x136   : > { %vm7102_vm2 = vcmp.gt.s32.totalorder %v580_v46, 0  ;;  %v1293_v38 = vld [vmem:[#allocation10 + $0x158] sm:$0xff]  ;;  %v7837_v39 = vrot.slane %v7040_v43, 1  ;;  %v7162_v40 = vsel %vm7839_vm0, %v838_v14, %v840_v30  ;;  %v1296_v51 = vld [vmem:[#allocation10 + $0x170] sm:$0xff]  ;;  %v778_v13 = vrot.slane %v7051_v7, 1 }
 0x137   : > { %vm7169_vm6 = vcmp.gt.s32.totalorder %v636_v35, 0  ;;  %v587_v20 = vand.u32 15, %v549_v62  ;;  %v551_v21 = vadd.s32 40, %v7065_v19  ;;  %v1441_v35 = vld [vmem:[#allocation10 + $0x1a8] sm:$0xff]  ;;  %v788_v62 = vrot.slane %v7071_v23, 1 }
 0x138   : > { %5345 = vmatpush3.bf16.msra.mxu0 %v5342_v49  ;;  %v825_v49 = vsel %vm7839_vm0, %v823_v24, %v824_v41  ;;  %v1290_v24 = vld [vmem:[#allocation10 + $0x140] sm:$0xff]  ;;  %v844_v41 = vrot.slane %v7080_v31, 7 }
 0x139   : > { %5347 = vmatprep.subr.bf16.mxu0 %v5346_v52  ;;  %vm7207_vm9 = vcmp.lt.s32.totalorder %v587_v20, 15  ;;  %v557_v20 = vadd.s32 88, %v7065_v19 }
 0x13c   : > { %5349 = vmatpush3.bf16.msra.mxu0 %v5346_v52  ;;  %v552_v52 = vadd.s32 48, %v7065_v19 }
 0x13d   : > { %5351 = vmatprep.subr.bf16.mxu0 %v5350_v55 }
 0x140   : > { %5353 = vmatpush3.bf16.msra.mxu0 %v5350_v55 }
 0x141   : > { %5355 = vmatprep.subr.bf16.mxu0 %v5354_v58 }
 0x144   : > { %5357 = vmatpush3.bf16.msra.mxu0 %v5354_v58  ;;  %v1287_v58 = vld [vmem:[#allocation10 + $0x128] sm:$0xff] }
 0x145   : > { %5359 = vmatprep.subr.bf16.mxu0 %v5358_v61  ;;  %v5398_v63 = vpack.c.bf16 %v1287_v58, %v1286_v57  ;;  %v1436_v57 = vld [vmem:[#allocation10 + $0x180] sm:$0xff]  ;;  %v1437_v58 = vld [vmem:[#allocation10 + $0x188] sm:$0xff] }
 0x147   : > { %4513 = vmatmul.mubr.f32.vlgmr.msra.gmra.mrb[0].mxu0 %v7043_v0  ;;  %v7180_v0 = vsel %vm7839_vm0, %v842_v36, %v844_v41 }
 0x148   : > { %5361 = vmatpush3.bf16.msra.mxu0 %v5358_v61  ;;  %4515 = vmatprep.mubr.f32.mxu0 %v7045_v2  ;;  %v608_v61 = vand.u32 15, %v552_v52  ;;  %v1297_v52 = vld [vmem:[#allocation10 + $0x178] sm:$0xff] }
 0x149   : > { %5363 = vmatprep.subr.bf16.mxu0 %v5362_v1 }
 0x14a   : > { %vm7130_vm4 = vcmp.gt.s32.totalorder %v608_v61, 0 }
 0x14b   : > { %4516 = vmatmul.mubr.f32.gmra.mrb[2].mxu0 %v7049_v5 }
 0x14c   : > { %5365 = vmatpush3.bf16.msra.mxu0 %v5362_v1  ;;  %4518 = vmatprep.mubr.f32.mxu0 %v7051_v7  ;;  %v7116_v1 = vsel %vm7839_vm0, %v828_v50, %v830_v56  ;;  %v773_v50 = vsel %vm7838_vm7, %v7837_v39, %v772_v42  ;;  %v5418_v56 = vpack.c.bf16 %v1297_v52, %v1296_v51  ;;  %v1443_v51 = vld [vmem:[#allocation10 + $0x1b8] sm:$0xff]  ;;  %v786_v52 = vrot.slane %v7063_v18, 1 }
 0x14d   : > { %5367 = vmatprep.subr.bf16.mxu0 %v5366_v6  ;;  %v1747_v39 = vld [vmem:[#allocation10 + $0x298] sm:$0xff] }
 0x14f   : > { %4519 = vmatmul.mubr.f32.gmra.mrb[4].mxu0 %v7055_v10 }
 0x150   : > { %5369 = vmatpush3.bf16.msra.mxu0 %v5366_v6  ;;  %4521 = vmatprep.mubr.f32.mxu0 %v7057_v12  ;;  %v1288_v6 = vld [vmem:[#allocation10 + $0x130] sm:$0xff] }
 0x151   : > { %5371 = vmatprep.subr.bf16.mxu0 %v5370_v11  ;;  %v5402_v15 = vpack.c.bf16 %v1289_v8, %v1288_v6  ;;  %v1438_v6 = vld [vmem:[#allocation10 + $0x190] sm:$0xff]  ;;  %v1439_v8 = vld [vmem:[#allocation10 + $0x198] sm:$0xff] }
 0x153   : > { %4522 = vmatmul.mubr.f32.gmra.mrb[6].mxu0 %v7061_v16 }
 0x154   : > { %5373 = vmatpush3.bf16.msra.mxu0 %v5370_v11  ;;  %4524 = vmatprep.mubr.f32.mxu0 %v7063_v18 }
 0x155   : > { %5375 = vmatprep.subr.bf16.mxu0 %v5374_v17 }
 0x157   : > { %4525 = vmatmul.mubr.f32.gmra.mrb[8].mxu0 %v7071_v23 }
 0x158   : > { %5377 = vmatpush3.bf16.msra.mxu0 %v5374_v17  ;;  %4527 = vmatprep.mubr.f32.mxu0 %v7074_v26  ;;  %v7137_v17 = vsel %vm7839_vm0, %v832_v60, %v834_v4  ;;  %v774_v60 = vrot.slane %v7045_v2, 1  ;;  %v776_v4 = vrot.slane %v7049_v5, 1 }
 0x159   : > { %5379 = vmatprep.subr.bf16.mxu0 %v5378_v25 }
 0x15a   : > { %v775_v14 = vsel %vm7838_vm7, %v772_v42, %v774_v60  ;;  %v782_v42 = vrot.slane %v7057_v12, 1 }
 0x15b   : > { %4528 = vmatmul.mubr.f32.gmra.mrb[10].mxu0 %v7080_v31 }
 0x15c   : > { %5381 = vmatpush3.bf16.msra.mxu0 %v5378_v25  ;;  %4562 = vmatprep.mubr.msk.f32.mxu0 %vm7085_vm1, %v869_v33  ;;  %v1291_v25 = vld [vmem:[#allocation10 + $0x148] sm:$0xff] }
 0x15d   : > { %5383 = vmatprep.subr.bf16.mxu0 %v5382_v32 }
 0x160   : > { %5385 = vmatpush3.bf16.msra.mxu0 %v5382_v32  ;;  %v5406_v32 = vpack.c.bf16 %v1291_v25, %v1290_v24  ;;  %v5426_v24 = vpack.c.bf16 %v1439_v8, %v1438_v6  ;;  %v7198_v25 = vsel %vm7838_vm7, %v774_v60, %v776_v4 }
 0x161   : > { %5387 = vmatprep.subr.bf16.mxu0 %v5386_v37 }
 0x164   : > { %5389 = vmatpush3.bf16.msra.mxu0 %v5386_v37  ;;  %v1292_v37 = vld [vmem:[#allocation10 + $0x150] sm:$0xff] }
 0x165   : > { %5391 = vmatprep.subr.bf16.mxu0 %v5390_v45  ;;  %v5410_v44 = vpack.c.bf16 %v1293_v38, %v1292_v37  ;;  %v601_v38 = vand.u32 15, %v551_v21 }
 0x167   : > { %4563 = vmatmul.mubr.f32.vlgmr.msra.gmra.mrb[0].mxu0 %v825_v49  ;;  %v5414_v49 = vpack.c.bf16 %v1295_v48, %v1294_v47  ;;  %vm7225_vm10 = vcmp.lt.s32.totalorder %v601_v38, 15  ;;  %v1447_v38 = vld [vmem:[#allocation10 + $0x1d8] sm:$0xff] }
 0x168   : > { %5393 = vmatpush3.bf16.msra.mxu0 %v5390_v45  ;;  %4565 = vmatprep.mubr.msk.f32.mxu0 %vm7102_vm2, %v7100_v54  ;;  %v7167_v45 = vsel %vm7839_vm0, %v840_v30, %v842_v36  ;;  %v780_v30 = vrot.slane %v7055_v10, 1  ;;  %v7204_v36 = vsel %vm7838_vm7, %v776_v4, %v778_v13  ;;  %v1445_v4 = vld [vmem:[#allocation10 + $0x1c8] sm:$0xff] }
 0x169   : > { %5395 = vmatprep.subr.bf16.mxu0 %v5394_v53 }
 0x16a   : > { %v7214_v48 = vsel %vm7838_vm7, %v778_v13, %v780_v30 }
 0x16b   : > { %4566 = vmatmul.mubr.f32.gmra.mrb[2].mxu0 %v7111_v59 }
 0x16c   : > { %5397 = vmatpush3.bf16.msra.mxu0 %v5394_v53  ;;  %4568 = vmatprep.mubr.msk.f32.mxu0 %vm7118_vm3, %v7116_v1  ;;  %v547_v53 = vadd.s32 8, %v7065_v19 }
 0x16d   : > { %5399 = vmatprep.subr.bf16.mxu0 %v5398_v63 }
 0x16e   : > { %v573_v61 = vand.u32 15, %v547_v53  ;;  %v7223_v53 = vsel %vm7838_vm7, %v780_v30, %v782_v42  ;;  %v792_v30 = vrot.slane %v7080_v31, 1 }
 0x16f   : > { %4569 = vmatmul.mubr.f32.gmra.mrb[4].mxu0 %v7128_v9 }
 0x170   : > { %5401 = vmatpush3.bf16.msra.mxu0 %v5398_v63  ;;  %4571 = vmatprep.mubr.msk.f32.mxu0 %vm7130_vm4, %v7137_v17  ;;  %v5422_v63 = vpack.c.bf16 %v1437_v58, %v1436_v57  ;;  %vm7192_vm8 = vcmp.lt.s32.totalorder %v573_v61, 15  ;;  %v555_v58 = vadd.s32 72, %v7065_v19 }
 0x171   : > { %5403 = vmatprep.subr.bf16.mxu0 %v5402_v15 }
 0x172   : > { %v629_v13 = vand.u32 15, %v555_v58 }
 0x173   : > { %4572 = vmatmul.mubr.f32.gmra.mrb[6].mxu0 %v7145_v27 }
 0x174   : > { %5405 = vmatpush3.bf16.msra.mxu0 %v5402_v15  ;;  %4574 = vmatprep.mubr.msk.f32.mxu0 %vm7151_vm5, %v7148_v29  ;;  %vm7260_vm12 = vcmp.lt.s32.totalorder %v629_v13, 15 }
 0x175   : > { %5407 = vmatprep.subr.bf16.mxu0 %v5406_v32 }
 0x177   : > { %4575 = vmatmul.mubr.f32.gmra.mrb[8].mxu0 %v7162_v40 }
 0x178   : > { %5409 = vmatpush3.bf16.msra.mxu0 %v5406_v32  ;;  %4577 = vmatprep.mubr.msk.f32.mxu0 %vm7169_vm6, %v7167_v45  ;;  %v1440_v32 = vld [vmem:[#allocation10 + $0x1a0] sm:$0xff] }
 0x179   : > { %5411 = vmatprep.subr.bf16.mxu0 %v5410_v44  ;;  %v5430_v47 = vpack.c.bf16 %v1441_v35, %v1440_v32  ;;  %v7251_v32 = vld [vmem:[#allocation2 + $0x60] sm:$0xff]  ;;  %v1446_v35 = vld [vmem:[#allocation10 + $0x1d0] sm:$0xff] }
 0x17b   : > { %4578 = vmatmul.mubr.f32.gmra.mrb[10].mxu0 %v7180_v0 }
 0x17c   : > { %5413 = vmatpush3.bf16.msra.mxu0 %v5410_v44  ;;  %4612 = vmatprep.mubr.f32.mxu0 %v773_v50  ;;  %v553_v44 = vadd.s32 56, %v7065_v19  ;;  %v1442_v50 = vld [vmem:[#allocation10 + $0x1b0] sm:$0xff] }
 0x17d   : > { %5415 = vmatprep.subr.bf16.mxu0 %v5414_v49  ;;  %v5434_v60 = vpack.c.bf16 %v1443_v51, %v1442_v50  ;;  %v5442_v50 = vpack.c.bf16 %v1447_v38, %v1446_v35  ;;  %v1593_v35 = vld [vmem:[#allocation10 + $0x218] sm:$0xff] }
 0x17e   : > { %v615_v57 = vand.u32 15, %v553_v44 }
 0x180   : > { %5417 = vmatpush3.bf16.msra.mxu0 %v5414_v49  ;;  %v784_v49 = vrot.slane %v7061_v16, 1  ;;  %vm7241_vm11 = vcmp.lt.s32.totalorder %v615_v57, 15  ;;  %v1449_v57 = vld [vmem:[#allocation10 + $0x1e8] sm:$0xff] }
 0x181   : > { %5419 = vmatprep.subr.bf16.mxu0 %v5418_v56 }
 0x182   : > { %v7231_v61 = vsel %vm7838_vm7, %v782_v42, %v784_v49  ;;  %v7238_v6 = vsel %vm7838_vm7, %v784_v49, %v786_v52  ;;  %v794_v49 = vrot.slane %v7251_v32, 1 }
 0x184   : > { %5421 = vmatpush3.bf16.msra.mxu0 %v5418_v56  ;;  %v7275_v58 = vsel %vm7838_vm7, %v792_v30, %v794_v49 }
 0x185   : > { %5423 = vmatprep.subr.bf16.mxu0 %v5422_v63 }
 0x187   : > { %4613 = vmatmul.mubr.msk.f32.vlgmr.msra.gmra.mrb[0].mxu0 %vm7192_vm8, %v775_v14  ;;  %v790_v14 = vrot.slane %v7074_v26, 1 }
 0x188   : > { %5425 = vmatpush3.bf16.msra.mxu0 %v5422_v63  ;;  %4615 = vmatprep.mubr.f32.mxu0 %v7198_v25  ;;  %v1444_v63 = vld [vmem:[#allocation10 + $0x1c0] sm:$0xff] }
 0x189   : > { %5427 = vmatprep.subr.bf16.mxu0 %v5426_v24  ;;  %v5438_v21 = vpack.c.bf16 %v1445_v4, %v1444_v63  ;;  %v7258_v42 = vsel %vm7838_vm7, %v788_v62, %v790_v14  ;;  %v7266_v51 = vsel %vm7838_vm7, %v790_v14, %v792_v30  ;;  %v1450_v63 = vld [vmem:[#allocation10 + $0x1f0] sm:$0xff]  ;;  %v1451_v4 = vld [vmem:[#allocation10 + $0x1f8] sm:$0xff]  ;;  %v1590_v14 = vld [vmem:[#allocation10 + $0x200] sm:$0xff] }
 0x18a   : > { %v5450_v13 = vpack.c.bf16 %v1451_v4, %v1450_v63  ;;  %v1592_v30 = vld [vmem:[#allocation10 + $0x210] sm:$0xff]  ;;  %v1598_v63 = vld [vmem:[#allocation10 + $0x240] sm:$0xff]  ;;  %v1599_v4 = vld [vmem:[#allocation10 + $0x248] sm:$0xff] }
 0x18b   : > { %4616 = vmatmul.mubr.msk.f32.gmra.mrb[2].mxu0 %vm7207_vm9, %v7204_v36  ;;  %v5458_v38 = vpack.c.bf16 %v1593_v35, %v1592_v30  ;;  %v1600_v30 = vld [vmem:[#allocation10 + $0x250] sm:$0xff]  ;;  %v1601_v35 = vld [vmem:[#allocation10 + $0x258] sm:$0xff] }
 0x18c   : > { %5429 = vmatpush3.bf16.msra.mxu0 %v5426_v24  ;;  %4618 = vmatprep.mubr.f32.mxu0 %v7214_v48  ;;  %v7248_v24 = vsel %vm7838_vm7, %v786_v52, %v788_v62  ;;  %v1448_v52 = vld [vmem:[#allocation10 + $0x1e0] sm:$0xff] }
 0x18d   : > { %5431 = vmatprep.subr.bf16.mxu0 %v5430_v47  ;;  %v5446_v62 = vpack.c.bf16 %v1449_v57, %v1448_v52  ;;  %v1595_v52 = vld [vmem:[#allocation10 + $0x228] sm:$0xff]  ;;  %v1597_v57 = vld [vmem:[#allocation10 + $0x238] sm:$0xff] }
 0x18f   : > { %4619 = vmatmul.mubr.msk.f32.gmra.mrb[4].mxu0 %vm7225_vm10, %v7223_v53 }
 0x190   : > { %5433 = vmatpush3.bf16.msra.mxu0 %v5430_v47  ;;  %4621 = vmatprep.mubr.f32.mxu0 %v7231_v61  ;;  %v643_v47 = vand.u32 15, %v557_v20  ;;  %v1591_v20 = vld [vmem:[#allocation10 + $0x208] sm:$0xff] }
 0x191   : > { %5435 = vmatprep.subr.bf16.mxu0 %v5434_v60 }
 0x192   : > { %vm7277_vm13 = vcmp.lt.s32.totalorder %v643_v47, 15  ;;  %v1594_v47 = vld [vmem:[#allocation10 + $0x220] sm:$0xff] }
 0x193   : > { %4622 = vmatmul.mubr.msk.f32.gmra.mrb[6].mxu0 %vm7241_vm11, %v7238_v6 }
 0x194   : > { %5437 = vmatpush3.bf16.msra.mxu0 %v5434_v60  ;;  %4624 = vmatprep.mubr.f32.mxu0 %v7248_v24 }
 0x195   : > { %5439 = vmatprep.subr.bf16.mxu0 %v5438_v21 }
 0x197   : > { %4625 = vmatmul.mubr.msk.f32.gmra.mrb[8].mxu0 %vm7260_vm12, %v7258_v42 }
 0x198   : > { %5441 = vmatpush3.bf16.msra.mxu0 %v5438_v21  ;;  %4627 = vmatprep.mubr.f32.mxu0 %v7266_v51  ;;  %v5454_v21 = vpack.c.bf16 %v1591_v20, %v1590_v14  ;;  %v846_v20 = vrot.slane %v7251_v32, 7 }
 0x199   : > { %5443 = vmatprep.subr.bf16.mxu0 %v5442_v50 }
 0x19b   : > { %4628 = vmatmul.mubr.msk.f32.gmra.mrb[10].mxu0 %vm7277_vm13, %v7275_v58 }
 0x19c   : > { %5445 = vmatpush3.bf16.msra.mxu0 %v5442_v50  ;;  %4662 = vmatprep.mubr.msk.f32.mxu0 %vm7102_vm2, %v7100_v54  ;;  %v5462_v54 = vpack.c.bf16 %v1595_v52, %v1594_v47  ;;  %v1596_v50 = vld [vmem:[#allocation10 + $0x230] sm:$0xff]  ;;  %v5474_v47 = vpack.c.bf16 %v1601_v35, %v1600_v30  ;;  %v7311_v52 = vsel %vm7839_vm0, %v844_v41, %v846_v20 }
 0x19d   : > { %5447 = vmatprep.subr.bf16.mxu0 %v5446_v62  ;;  %v1746_v35 = vld [vmem:[#allocation10 + $0x290] sm:$0xff] }
 0x1a0   : > { %5449 = vmatpush3.bf16.msra.mxu0 %v5446_v62  ;;  %v5466_v62 = vpack.c.bf16 %v1597_v57, %v1596_v50  ;;  %v1602_v50 = vld [vmem:[#allocation10 + $0x260] sm:$0xff]  ;;  %v1603_v57 = vld [vmem:[#allocation10 + $0x268] sm:$0xff] }
 0x1a1   : > { %5451 = vmatprep.subr.bf16.mxu0 %v5450_v13  ;;  %v5478_v41 = vpack.c.bf16 %v1603_v57, %v1602_v50  ;;  %v1748_v50 = vld [vmem:[#allocation10 + $0x2a0] sm:$0xff]  ;;  %v1749_v57 = vld [vmem:[#allocation10 + $0x2a8] sm:$0xff] }
 0x1a4   : > { %5453 = vmatpush3.bf16.msra.mxu0 %v5450_v13  ;;  %v5470_v13 = vpack.c.bf16 %v1599_v4, %v1598_v63  ;;  %v1605_v63 = vld [vmem:[#allocation10 + $0x278] sm:$0xff] }
 0x1a5   : > { %5455 = vmatprep.subr.bf16.mxu0 %v5454_v21 }
 0x1a7   : > { %4663 = vmatmul.mubr.f32.vlgmr.msra.gmra.mrb[0].mxu0 %v7111_v59  ;;  %v558_v59 = vadd.s32 96, %v7065_v19 }
 0x1a8   : > { %5457 = vmatpush3.bf16.msra.mxu0 %v5454_v21  ;;  %4665 = vmatprep.mubr.msk.f32.mxu0 %vm7118_vm3, %v7116_v1  ;;  %v7301_v21 = vld [vmem:[#allocation2 + $0x68] sm:$0xff] }
 0x1a9   : > { %5459 = vmatprep.subr.bf16.mxu0 %v5458_v38  ;;  %v650_v14 = vand.u32 15, %v558_v59  ;;  %v1604_v59 = vld [vmem:[#allocation10 + $0x270] sm:$0xff] }
 0x1aa   : > { %v5482_v4 = vpack.c.bf16 %v1605_v63, %v1604_v59  ;;  %v1751_v59 = vld [vmem:[#allocation10 + $0x2b8] sm:$0xff]  ;;  %v1752_v63 = vld [vmem:[#allocation10 + $0x2c0] sm:$0xff] }
 0x1ab   : > { %4666 = vmatmul.mubr.f32.gmra.mrb[2].mxu0 %v7128_v9  ;;  %vm7313_vm14 = vcmp.gt.s32.totalorder %v650_v14, 0  ;;  %v1745_v14 = vld [vmem:[#allocation10 + $0x288] sm:$0xff] }
 0x1ac   : > { %5461 = vmatpush3.bf16.msra.mxu0 %v5458_v38  ;;  %4668 = vmatprep.mubr.msk.f32.mxu0 %vm7130_vm4, %v7137_v17  ;;  %v848_v38 = vrot.slane %v7301_v21, 7 }
 0x1ad   : > { %5463 = vmatprep.subr.bf16.mxu0 %v5462_v54 }
 0x1af   : > { %4669 = vmatmul.mubr.f32.gmra.mrb[4].mxu0 %v7145_v27 }
 0x1b0   : > { %5465 = vmatpush3.bf16.msra.mxu0 %v5462_v54  ;;  %4671 = vmatprep.mubr.msk.f32.mxu0 %vm7151_vm5, %v7148_v29 }
 0x1b1   : > { %5467 = vmatprep.subr.bf16.mxu0 %v5466_v62 }
 0x1b3   : > { %4672 = vmatmul.mubr.f32.gmra.mrb[6].mxu0 %v7162_v40 }
 0x1b4   : > { %5469 = vmatpush3.bf16.msra.mxu0 %v5466_v62  ;;  %4674 = vmatprep.mubr.msk.f32.mxu0 %vm7169_vm6, %v7167_v45  ;;  %v7324_v62 = vsel %vm7839_vm0, %v846_v20, %v848_v38  ;;  %v5490_v20 = vpack.c.bf16 %v1747_v39, %v1746_v35  ;;  %v1753_v39 = vld [vmem:[#allocation10 + $0x2c8] sm:$0xff] }
 0x1b5   : > { %5471 = vmatprep.subr.bf16.mxu0 %v5470_v13  ;;  %v1757_v35 = vld [vmem:[#allocation10 + $0x2e8] sm:$0xff] }
 0x1b7   : > { %4675 = vmatmul.mubr.f32.gmra.mrb[8].mxu0 %v7180_v0 }
 0x1b8   : > { %5473 = vmatpush3.bf16.msra.mxu0 %v5470_v13  ;;  %4677 = vmatprep.mubr.msk.f32.mxu0 %vm7313_vm14, %v7311_v52  ;;  %v1744_v13 = vld [vmem:[#allocation10 + $0x280] sm:$0xff] }
 0x1b9   : > { %5475 = vmatprep.subr.bf16.mxu0 %v5474_v47  ;;  %v5486_v30 = vpack.c.bf16 %v1745_v14, %v1744_v13  ;;  %v1755_v13 = vld [vmem:[#allocation10 + $0x2d8] sm:$0xff] }
 0x1bb   : > { %4678 = vmatmul.mubr.f32.gmra.mrb[10].mxu0 %v7324_v62 }
 0x1bc   : > { %5477 = vmatpush3.bf16.msra.mxu0 %v5474_v47  ;;  %4712 = vmatprep.mubr.f32.mxu0 %v7045_v2  ;;  %v5494_v2 = vpack.c.bf16 %v1749_v57, %v1748_v50  ;;  %v1750_v47 = vld [vmem:[#allocation10 + $0x2b0] sm:$0xff]  ;;  %v1759_v57 = vld [vmem:[#allocation10 + $0x2f8] sm:$0xff] }
 0x1bd   : > { %5479 = vmatprep.subr.bf16.mxu0 %v5478_v41  ;;  %v1758_v50 = vld [vmem:[#allocation10 + $0x2f0] sm:$0xff] }
 0x1c0   : > { %5481 = vmatpush3.bf16.msra.mxu0 %v5478_v41  ;;  %v5498_v41 = vpack.c.bf16 %v1751_v59, %v1750_v47  ;;  %v1898_v47 = vld [vmem:[#allocation10 + $0x300] sm:$0xff]  ;;  %v1899_v59 = vld [vmem:[#allocation10 + $0x308] sm:$0xff] }
 0x1c1   : > { %5483 = vmatprep.subr.bf16.mxu0 %v5482_v4 }
 0x1c4   : > { %5485 = vmatpush3.bf16.msra.mxu0 %v5482_v4  ;;  %v1754_v4 = vld [vmem:[#allocation10 + $0x2d0] sm:$0xff] }
 0x1c5   : > { %5487 = vmatprep.subr.bf16.mxu0 %v5486_v30  ;;  %v5506_v14 = vpack.c.bf16 %v1755_v13, %v1754_v4  ;;  %v1902_v4 = vld [vmem:[#allocation10 + $0x320] sm:$0xff]  ;;  %v1903_v13 = vld [vmem:[#allocation10 + $0x328] sm:$0xff] }
 0x1c7   : > { %4713 = vmatmul.mubr.f32.vlgmr.msra.gmra.mrb[0].mxu0 %v7049_v5  ;;  %v5502_v5 = vpack.c.bf16 %v1753_v39, %v1752_v63  ;;  %v1900_v63 = vld [vmem:[#allocation10 + $0x310] sm:$0xff]  ;;  %v1901_v39 = vld [vmem:[#allocation10 + $0x318] sm:$0xff] }
 0x1c8   : > { %5489 = vmatpush3.bf16.msra.mxu0 %v5486_v30  ;;  %4715 = vmatprep.mubr.f32.mxu0 %v7051_v7  ;;  %v1756_v30 = vld [vmem:[#allocation10 + $0x2e0] sm:$0xff] }
 0x1c9   : > { %5491 = vmatprep.subr.bf16.mxu0 %v5490_v20 }
 0x1cb   : > { %4716 = vmatmul.mubr.f32.gmra.mrb[2].mxu0 %v7055_v10 }
 0x1cc   : > { %5493 = vmatpush3.bf16.msra.mxu0 %v5490_v20  ;;  %4718 = vmatprep.mubr.f32.mxu0 %v7057_v12  ;;  %v5510_v20 = vpack.c.bf16 %v1757_v35, %v1756_v30  ;;  %v1905_v30 = vld [vmem:[#allocation10 + $0x338] sm:$0xff] }
 0x1cd   : > { %5495 = vmatprep.subr.bf16.mxu0 %v5494_v2 }
 0x1cf   : > { %4719 = vmatmul.mubr.f32.gmra.mrb[4].mxu0 %v7061_v16 }
 0x1d0   : > { %5497 = vmatpush3.bf16.msra.mxu0 %v5494_v2  ;;  %4721 = vmatprep.mubr.f32.mxu0 %v7063_v18  ;;  %v5514_v2 = vpack.c.bf16 %v1759_v57, %v1758_v50  ;;  %v1907_v50 = vld [vmem:[#allocation10 + $0x348] sm:$0xff] }
 0x1d1   : > { %5499 = vmatprep.subr.bf16.mxu0 %v5498_v41 }
 0x1d3   : > { %4722 = vmatmul.mubr.f32.gmra.mrb[6].mxu0 %v7071_v23 }
 0x1d4   : > { %5501 = vmatpush3.bf16.msra.mxu0 %v5498_v41  ;;  %4724 = vmatprep.mubr.f32.mxu0 %v7074_v26  ;;  %v5518_v41 = vpack.c.bf16 %v1899_v59, %v1898_v47  ;;  %v7354_v47 = vld [vmem:[#allocation2 + $0x70] sm:$0xff] }
 0x1d5   : > { %5503 = vmatprep.subr.bf16.mxu0 %v5502_v5  ;;  %v1908_v59 = vld [vmem:[#allocation10 + $0x350] sm:$0xff] }
 0x1d7   : > { %4725 = vmatmul.mubr.f32.gmra.mrb[8].mxu0 %v7080_v31 }
 0x1d8   : > { %5505 = vmatpush3.bf16.msra.mxu0 %v5502_v5  ;;  %4727 = vmatprep.mubr.f32.mxu0 %v7251_v32  ;;  %v5522_v5 = vpack.c.bf16 %v1901_v39, %v1900_v63  ;;  %v798_v39 = vrot.slane %v7354_v47, 1 }
 0x1d9   : > { %5507 = vmatprep.subr.bf16.mxu0 %v5506_v14 }
 0x1db   : > { %4728 = vmatmul.mubr.f32.gmra.mrb[10].mxu0 %v7301_v21 }
 0x1dc   : > { %5509 = vmatpush3.bf16.msra.mxu0 %v5506_v14  ;;  %4762 = vmatprep.mubr.f32.mxu0 %v7198_v25  ;;  %v5526_v25 = vpack.c.bf16 %v1903_v13, %v1902_v4  ;;  %v1904_v14 = vld [vmem:[#allocation10 + $0x330] sm:$0xff]  ;;  %v1910_v13 = vld [vmem:[#allocation10 + $0x360] sm:$0xff] }
 0x1dd   : > { %5511 = vmatprep.subr.bf16.mxu0 %v5510_v20  ;;  %v5530_v35 = vpack.c.bf16 %v1905_v30, %v1904_v14 }
 0x1e0   : > { %5513 = vmatpush3.bf16.msra.mxu0 %v5510_v20  ;;  %v1906_v20 = vld [vmem:[#allocation10 + $0x340] sm:$0xff] }
 0x1e1   : > { %5515 = vmatprep.subr.bf16.mxu0 %v5514_v2  ;;  %v5534_v57 = vpack.c.bf16 %v1907_v50, %v1906_v20  ;;  %v1913_v20 = vld [vmem:[#allocation10 + $0x378] sm:$0xff] }
 0x1e4   : > { %5517 = vmatpush3.bf16.msra.mxu0 %v5514_v2  ;;  %v796_v2 = vrot.slane %v7301_v21, 1 }
 0x1e5   : > { %5519 = vmatprep.subr.bf16.mxu0 %v5518_v41 }
 0x1e6   : > { %v7364_v4 = vsel %vm7838_vm7, %v794_v49, %v796_v2  ;;  %v7373_v14 = vsel %vm7838_vm7, %v796_v2, %v798_v39 }
 0x1e7   : > { %4763 = vmatmul.mubr.msk.f32.vlgmr.msra.gmra.mrb[0].mxu0 %vm7207_vm9, %v7204_v36  ;;  %v559_v36 = vadd.s32 104, %v7065_v19 }
 0x1e8   : > { %5521 = vmatpush3.bf16.msra.mxu0 %v5518_v41  ;;  %4765 = vmatprep.mubr.f32.mxu0 %v7214_v48  ;;  %v1909_v41 = vld [vmem:[#allocation10 + $0x358] sm:$0xff] }
 0x1e9   : > { %5523 = vmatprep.subr.bf16.mxu0 %v5522_v5  ;;  %v657_v63 = vand.u32 15, %v559_v36  ;;  %v2052_v36 = vld [vmem:[#allocation10 + $0x380] sm:$0xff] }
 0x1eb   : > { %4766 = vmatmul.mubr.msk.f32.gmra.mrb[2].mxu0 %vm7225_vm10, %v7223_v53  ;;  %vm7375_vm15 = vcmp.lt.s32.totalorder %v657_v63, 15 }
 0x1ec   : > { %5525 = vmatpush3.bf16.msra.mxu0 %v5522_v5  ;;  %4768 = vmatprep.mubr.f32.mxu0 %v7231_v61  ;;  %v5538_v5 = vpack.c.bf16 %v1909_v41, %v1908_v59  ;;  %v2054_v59 = vld [vmem:[#allocation10 + $0x390] sm:$0xff]  ;;  %v2055_v41 = vld [vmem:[#allocation10 + $0x398] sm:$0xff] }
 0x1ed   : > { %5527 = vmatprep.subr.bf16.mxu0 %v5526_v25  ;;  %v5554_v63 = vpack.c.bf16 %v2055_v41, %v2054_v59  ;;  %v2065_v59 = vld [vmem:[#allocation10 + $0x3e8] sm:$0xff]  ;;  %v2067_v41 = vld [vmem:[#allocation10 + $0x3f8] sm:$0xff] }
 0x1ef   : > { %4769 = vmatmul.mubr.msk.f32.gmra.mrb[4].mxu0 %vm7241_vm11, %v7238_v6 }
 0x1f0   : > { %5529 = vmatpush3.bf16.msra.mxu0 %v5526_v25  ;;  %4771 = vmatprep.mubr.f32.mxu0 %v7248_v24  ;;  %v1911_v25 = vld [vmem:[#allocation10 + $0x368] sm:$0xff] }
 0x1f1   : > { %5531 = vmatprep.subr.bf16.mxu0 %v5530_v35  ;;  %v5542_v49 = vpack.c.bf16 %v1911_v25, %v1910_v13  ;;  %v2056_v13 = vld [vmem:[#allocation10 + $0x3a0] sm:$0xff]  ;;  %v2057_v25 = vld [vmem:[#allocation10 + $0x3a8] sm:$0xff] }
 0x1f3   : > { %4772 = vmatmul.mubr.msk.f32.gmra.mrb[6].mxu0 %vm7260_vm12, %v7258_v42 }
 0x1f4   : > { %5533 = vmatpush3.bf16.msra.mxu0 %v5530_v35  ;;  %4774 = vmatprep.mubr.f32.mxu0 %v7266_v51  ;;  %v1912_v35 = vld [vmem:[#allocation10 + $0x370] sm:$0xff] }
 0x1f5   : > { %5535 = vmatprep.subr.bf16.mxu0 %v5534_v57  ;;  %v5546_v50 = vpack.c.bf16 %v1913_v20, %v1912_v35  ;;  %v2060_v20 = vld [vmem:[#allocation10 + $0x3c0] sm:$0xff] }
 0x1f7   : > { %4775 = vmatmul.mubr.msk.f32.gmra.mrb[8].mxu0 %vm7277_vm13, %v7275_v58 }
 0x1f8   : > { %5537 = vmatpush3.bf16.msra.mxu0 %v5534_v57  ;;  %4777 = vmatprep.mubr.f32.mxu0 %v7364_v4  ;;  %v2053_v57 = vld [vmem:[#allocation10 + $0x388] sm:$0xff] }
 0x1f9   : > { %5539 = vmatprep.subr.bf16.mxu0 %v5538_v5  ;;  %v5550_v2 = vpack.c.bf16 %v2053_v57, %v2052_v36  ;;  %v850_v36 = vrot.slane %v7354_v47, 7  ;;  %v2062_v57 = vld [vmem:[#allocation10 + $0x3d0] sm:$0xff] }
 0x1fb   : > { %4778 = vmatmul.mubr.msk.f32.gmra.mrb[10].mxu0 %vm7375_vm15, %v7373_v14 }
 0x1fc   : > { %5541 = vmatpush3.bf16.msra.mxu0 %v5538_v5  ;;  %4812 = vmatprep.mubr.msk.f32.mxu0 %vm7118_vm3, %v7116_v1  ;;  %v5558_v1 = vpack.c.bf16 %v2057_v25, %v2056_v13  ;;  %v2058_v5 = vld [vmem:[#allocation10 + $0x3b0] sm:$0xff]  ;;  %v2207_v13 = vld [vmem:[#allocation10 + $0x408] sm:$0xff] }
 0x1fd   : > { %5543 = vmatprep.subr.bf16.mxu0 %v5542_v49  ;;  %v2208_v25 = vld [vmem:[#allocation10 + $0x410] sm:$0xff] }
 0x200   : > { %5545 = vmatpush3.bf16.msra.mxu0 %v5542_v49  ;;  %v2059_v49 = vld [vmem:[#allocation10 + $0x3b8] sm:$0xff] }
 0x201   : > { %5547 = vmatprep.subr.bf16.mxu0 %v5546_v50  ;;  %v5562_v35 = vpack.c.bf16 %v2059_v49, %v2058_v5  ;;  %v2210_v5 = vld [vmem:[#allocation10 + $0x420] sm:$0xff]  ;;  %v2211_v49 = vld [vmem:[#allocation10 + $0x428] sm:$0xff] }
 0x204   : > { %5549 = vmatpush3.bf16.msra.mxu0 %v5546_v50  ;;  %v2061_v50 = vld [vmem:[#allocation10 + $0x3c8] sm:$0xff] }
 0x205   : > { %5551 = vmatprep.subr.bf16.mxu0 %v5550_v2 }
 0x207   : > { %4813 = vmatmul.mubr.f32.vlgmr.msra.gmra.mrb[0].mxu0 %v7128_v9  ;;  %v560_v9 = vadd.s32 112, %v7065_v19 }
 0x208   : > { %5553 = vmatpush3.bf16.msra.mxu0 %v5550_v2  ;;  %4815 = vmatprep.mubr.msk.f32.mxu0 %vm7130_vm4, %v7137_v17  ;;  %v5566_v17 = vpack.c.bf16 %v2061_v50, %v2060_v20  ;;  %v2064_v2 = vld [vmem:[#allocation10 + $0x3e0] sm:$0xff] }
 0x209   : > { %5555 = vmatprep.subr.bf16.mxu0 %v5554_v63  ;;  %v5574_v54 = vpack.c.bf16 %v2065_v59, %v2064_v2  ;;  %v2214_v50 = vld [vmem:[#allocation10 + $0x440] sm:$0xff] }
 0x20b   : > { %4816 = vmatmul.mubr.f32.gmra.mrb[2].mxu0 %v7145_v27  ;;  %v664_v27 = vand.u32 15, %v560_v9  ;;  %v2213_v9 = vld [vmem:[#allocation10 + $0x438] sm:$0xff] }
 0x20c   : > { %5557 = vmatpush3.bf16.msra.mxu0 %v5554_v63  ;;  %4818 = vmatprep.mubr.msk.f32.mxu0 %vm7151_vm5, %v7148_v29  ;;  %v2063_v29 = vld [vmem:[#allocation10 + $0x3d8] sm:$0xff]  ;;  %v2206_v63 = vld [vmem:[#allocation10 + $0x400] sm:$0xff] }
 0x20d   : > { %5559 = vmatprep.subr.bf16.mxu0 %v5558_v1  ;;  %vm884_vm7 = vcmp.gt.s32.totalorder %v664_v27, 0  ;;  %v2217_v27 = vld [vmem:[#allocation10 + $0x458] sm:$0xff] }
 0x20f   : > { %4819 = vmatmul.mubr.f32.gmra.mrb[4].mxu0 %v7162_v40  ;;  %v5570_v40 = vpack.c.bf16 %v2063_v29, %v2062_v57  ;;  %v2221_v57 = vld [vmem:[#allocation10 + $0x478] sm:$0xff] }
 0x210   : > { %5561 = vmatpush3.bf16.msra.mxu0 %v5558_v1  ;;  %4821 = vmatprep.mubr.msk.f32.mxu0 %vm7169_vm6, %v7167_v45  ;;  %v851_v45 = vsel %vm7839_vm0, %v848_v38, %v850_v36  ;;  %v2209_v1 = vld [vmem:[#allocation10 + $0x418] sm:$0xff] }
 0x211   : > { %5563 = vmatprep.subr.bf16.mxu0 %v5562_v35 }
 0x213   : > { %4822 = vmatmul.mubr.f32.gmra.mrb[6].mxu0 %v7180_v0  ;;  %v852_v0 = vsel %vm7839_vm0, %v850_v36, %v820_v28  ;;  %v5586_v28 = vpack.c.bf16 %v2209_v1, %v2208_v25  ;;  %v2219_v36 = vld [vmem:[#allocation10 + $0x468] sm:$0xff] }
 0x214   : > { %5565 = vmatpush3.bf16.msra.mxu0 %v5562_v35  ;;  %4824 = vmatprep.mubr.msk.f32.mxu0 %vm7313_vm14, %v7311_v52  ;;  %v2066_v52 = vld [vmem:[#allocation10 + $0x3f0] sm:$0xff] }
 0x215   : > { %5567 = vmatprep.subr.bf16.mxu0 %v5566_v17  ;;  %v5578_v38 = vpack.c.bf16 %v2067_v41, %v2066_v52  ;;  %v2212_v35 = vld [vmem:[#allocation10 + $0x430] sm:$0xff] }
 0x216   : > { %v5594_v20 = vpack.c.bf16 %v2213_v9, %v2212_v35 }
 0x217   : > { %4825 = vmatmul.mubr.f32.gmra.mrb[8].mxu0 %v7324_v62  ;;  %v5582_v62 = vpack.c.bf16 %v2207_v13, %v2206_v63 }
 0x218   : > { %5569 = vmatpush3.bf16.msra.mxu0 %v5566_v17  ;;  %4827 = vmatprep.mubr.msk.f32.mxu0 %vm884_vm7, %v851_v45  ;;  %v2215_v17 = vld [vmem:[#allocation10 + $0x448] sm:$0xff]  ;;  %vm7937_vm7 = vcmask 1046528  }
 0x219   : > { %5571 = vmatprep.subr.bf16.mxu0 %v5570_v40  ;;  %vm7939_vm14 = vmmov %vm7937_vm7 }
 0x21b   : > { %4828 = vmatmul.mubr.f32.gmra.mrb[10].mxu0 %v852_v0 }
 0x21c   : > { %5573 = vmatpush3.bf16.msra.mxu0 %v5570_v40  ;;  %4862 = vmatprep.mubr.f32.mxu0 %v7051_v7  ;;  %v5590_v7 = vpack.c.bf16 %v2211_v49, %v2210_v5 }
 0x21d   : > { %5575 = vmatprep.subr.bf16.mxu0 %v5574_v54 }
 0x220   : > { %5577 = vmatpush3.bf16.msra.mxu0 %v5574_v54 }
 0x221   : > { %5579 = vmatprep.subr.bf16.mxu0 %v5578_v38 }
 0x224   : > { %5581 = vmatpush3.bf16.msra.mxu0 %v5578_v38 }
 0x225   : > { %5583 = vmatprep.subr.bf16.mxu0 %v5582_v62 }
 0x227   : > { %4863 = vmatmul.mubr.f32.vlgmr.msra.gmra.mrb[0].mxu0 %v7055_v10  ;;  %v5598_v10 = vpack.c.bf16 %v2215_v17, %v2214_v50 }
 0x228   : > { %5585 = vmatpush3.bf16.msra.mxu0 %v5582_v62  ;;  %4865 = vmatprep.mubr.f32.mxu0 %v7057_v12  ;;  %v2216_v12 = vld [vmem:[#allocation10 + $0x450] sm:$0xff] }
 0x229   : > { %5587 = vmatprep.subr.bf16.mxu0 %v5586_v28 }
 0x22b   : > { %4866 = vmatmul.mubr.f32.gmra.mrb[2].mxu0 %v7061_v16  ;;  %v5602_v16 = vpack.c.bf16 %v2217_v27, %v2216_v12  ;;  %v6542_v12 = vmov (!%p3934_p10), 0.0  }
 0x22c   : > { %5589 = vmatpush3.bf16.msra.mxu0 %v5586_v28  ;;  %4868 = vmatprep.mubr.f32.mxu0 %v7063_v18  ;;  %v2218_v18 = vld [vmem:[#allocation10 + $0x460] sm:$0xff] }
 0x22d   : > { %5591 = vmatprep.subr.bf16.mxu0 %v5590_v7 }
 0x22f   : > { %4869 = vmatmul.mubr.f32.gmra.mrb[4].mxu0 %v7071_v23  ;;  %v5606_v23 = vpack.c.bf16 %v2219_v36, %v2218_v18 }
 0x230   : > { %5593 = vmatpush3.bf16.msra.mxu0 %v5590_v7  ;;  %4871 = vmatprep.mubr.f32.mxu0 %v7074_v26  ;;  %v2220_v26 = vld [vmem:[#allocation10 + $0x470] sm:$0xff] }
 0x231   : > { %5595 = vmatprep.subr.bf16.mxu0 %v5594_v20 }
 0x233   : > { %4872 = vmatmul.mubr.f32.gmra.mrb[6].mxu0 %v7080_v31  ;;  %v5610_v31 = vpack.c.bf16 %v2221_v57, %v2220_v26 }
 0x234   : > { %5597 = vmatpush3.bf16.msra.mxu0 %v5594_v20  ;;  %4874 = vmatprep.mubr.f32.mxu0 %v7251_v32  ;;  %v800_v32 = vrot.slane %v7067_v22, 1 }
 0x235   : > { %5599 = vmatprep.subr.bf16.mxu0 %v5598_v10 }
 0x237   : > { %4875 = vmatmul.mubr.f32.gmra.mrb[8].mxu0 %v7301_v21 }
 0x238   : > { %5601 = vmatpush3.bf16.msra.mxu0 %v5598_v10  ;;  %4877 = vmatprep.mubr.f32.mxu0 %v7354_v47 }
 0x239   : > { %5603 = vmatprep.subr.bf16.mxu0 %v5602_v16 }
 0x23b   : > { %4878 = vmatmul.mubr.f32.gmra.mrb[10].mxu0 %v7067_v22 }
 0x23c   : > { %5605 = vmatpush3.bf16.msra.mxu0 %v5602_v16  ;;  %4912 = vmatprep.mubr.f32.mxu0 %v7214_v48  ;;  %v561_v48 = vadd.s32 120, %v7065_v19  ;;  %v7938_v19 = vrot.slane %v7040_v43, 1 }
 0x23d   : > { %5607 = vmatprep.subr.bf16.mxu0 %v5606_v23 }
 0x23e   : > { %v819_v22 = vsel %vm7939_vm14, %v800_v32, %v7938_v19 }
 0x240   : > { %5609 = vmatpush3.bf16.msra.mxu0 %v5606_v23 }
 0x241   : > { %5611 = vmatprep.subr.bf16.mxu0 %v5610_v31 }
 0x244   : > { %5613 = vmatpush3.bf16.msra.mxu0 %v5610_v31 }
 0x247   : > { %4913 = vmatmul.mubr.msk.f32.vlgmr.msra.gmra.mrb[0].mxu0 %vm7225_vm10, %v7223_v53  ;;  %v671_v53 = vand.u32 15, %v561_v48 }
 0x248   : > { %4915 = vmatprep.mubr.f32.mxu0 %v7231_v61  ;;  %v801_v61 = vsel %vm7937_vm7, %v798_v39, %v800_v32 }
 0x249   : > { %vm949_vm0 = vcmp.lt.s32.totalorder %v671_v53, 15 }
 0x24b   : > { %4916 = vmatmul.mubr.msk.f32.gmra.mrb[2].mxu0 %vm7241_vm11, %v7238_v6  ;;  %v3972_v6 = vld [vmem:[%s7940_s13] ss:$0 sm:$0xff] }
 0x24c   : > { %4918 = vmatprep.mubr.f32.mxu0 %v7248_v24 }
 0x24f   : > { %4919 = vmatmul.mubr.msk.f32.gmra.mrb[4].mxu0 %vm7260_vm12, %v7258_v42 }
 0x250   : > { %4921 = vmatprep.mubr.f32.mxu0 %v7266_v51 }
 0x253   : > { %4922 = vmatmul.mubr.msk.f32.gmra.mrb[6].mxu0 %vm7277_vm13, %v7275_v58 }
 0x254   : > { %4924 = vmatprep.mubr.f32.mxu0 %v7364_v4 }
 0x257   : > { %4925 = vmatmul.mubr.msk.f32.gmra.mrb[8].mxu0 %vm7375_vm15, %v7373_v14 }
 0x258   : > { %4927 = vmatprep.mubr.f32.mxu0 %v801_v61 }
 0x25b   : > { %4928 = vmatmul.mubr.msk.f32.gmra.mrb[10].mxu0 %vm949_vm0, %v819_v22 }
 0x31a   : > { %v4914_v24 = vpop.f32.mrb[0].mxu0 }
 0x31b   : > { %v2367_v42 = vadd.f32 %v4914_v24, %v3972_v6  ;;  %v2288_v51 = vpop.f32.mrb[1].mxu0 }
 0x31c   : > { %v2366_v58 = vadd.f32 %v3972_v6, %v2288_v51 }
 0x31d   : > { %v2379_v21 = vmax.f32 %v2367_v42, 0.0 }
 0x31e   : > { %v2378_v47 = vmax.f32 %v2366_v58, 0.0  ;;  %v4917_v39 = vpop.f32.mrb[2].mxu0 }
 0x31f   : > { %2391 = vst [vmem:[#allocation3 + $0x8] sm:$0xff] %v2379_v21  ;;  %v2369_v4 = vadd.f32 %v4917_v39, %v3972_v6  ;;  %v2298_v14 = vpop.f32.mrb[3].mxu0 }
 0x320   : > { %2390 = vst [vmem:[#allocation3] sm:$0xff] %v2378_v47  ;;  %v2368_v43 = vadd.f32 %v3972_v6, %v2298_v14  ;;  %2406 = vst [vmem:[#allocation3 + $0x8] sm:$0xff] (!%p3934_p10), %v6542_v12 }
 0x321   : > { %v2381_v30 = vmax.f32 %v2369_v4, 0.0  ;;  %2405 = vst [vmem:[#allocation3] sm:$0xff] (!%p3934_p10), %v6542_v12 }
 0x322   : > { %v2380_v29 = vmax.f32 %v2368_v43, 0.0  ;;  %v4920_v40 = vpop.f32.mrb[4].mxu0 }
 0x323   : > { %2393 = vst [vmem:[#allocation3 + $0x18] sm:$0xff] %v2381_v30  ;;  %v2371_v45 = vadd.f32 %v4920_v40, %v3972_v6  ;;  %v2308_v2 = vpop.f32.mrb[5].mxu0 }
 0x324   : > { %2392 = vst [vmem:[#allocation3 + $0x10] sm:$0xff] %v2380_v29  ;;  %v2370_v59 = vadd.f32 %v3972_v6, %v2308_v2 }
 0x325   : > { %v2383_v0 = vmax.f32 %v2371_v45, 0.0 }
 0x326   : > { %v2382_v54 = vmax.f32 %v2370_v59, 0.0  ;;  %v4923_v52 = vpop.f32.mrb[6].mxu0 }
 0x327   : > { %2395 = vst [vmem:[#allocation3 + $0x28] sm:$0xff] %v2383_v0  ;;  %v2373_v41 = vadd.f32 %v4923_v52, %v3972_v6  ;;  %v2318_v38 = vpop.f32.mrb[7].mxu0 }
 0x328   : > { %2394 = vst [vmem:[#allocation3 + $0x20] sm:$0xff] %v2382_v54  ;;  %v2372_v63 = vadd.f32 %v3972_v6, %v2318_v38 }
 0x329   : > { %v2385_v13 = vmax.f32 %v2373_v41, 0.0 }
 0x32a   : > { %v2384_v62 = vmax.f32 %v2372_v63, 0.0  ;;  %v4926_v25 = vpop.f32.mrb[8].mxu0 }
 0x32b   : > { %2397 = vst [vmem:[#allocation3 + $0x38] sm:$0xff] %v2385_v13  ;;  %v2375_v1 = vadd.f32 %v4926_v25, %v3972_v6  ;;  %v2328_v28 = vpop.f32.mrb[9].mxu0 }
 0x32c   : > { %2396 = vst [vmem:[#allocation3 + $0x30] sm:$0xff] %v2384_v62  ;;  %v2374_v5 = vadd.f32 %v3972_v6, %v2328_v28 }
 0x32d   : > { %v2387_v49 = vmax.f32 %v2375_v1, 0.0 }
 0x32e   : > { %v2386_v7 = vmax.f32 %v2374_v5, 0.0  ;;  %v4929_v35 = vpop.f32.mrb[10].mxu0  ;;  %2404 = sbr.rel (%p3934_p10) target bundleno = 821 (0x335), region = 80 }
 0x32f   : > { %2399 = vst [vmem:[#allocation3 + $0x48] sm:$0xff] %v2387_v49  ;;  %v2377_v9 = vadd.f32 %v4929_v35, %v3972_v6  ;;  %v2338_v20 = vpop.f32.mrb[11].mxu0 }
 0x330   : > { %2398 = vst [vmem:[#allocation3 + $0x40] sm:$0xff] %v2386_v7  ;;  %v2376_v50 = vadd.f32 %v3972_v6, %v2338_v20 }
 0x331   : > { %v2389_v17 = vmax.f32 %v2377_v9, 0.0 }
 0x332   : > { %v2388_v10 = vmax.f32 %v2376_v50, 0.0 }
 0x333   : > { %2401 = vst [vmem:[#allocation3 + $0x58] sm:$0xff] %v2389_v17 }
 0x334   : > { %2400 = vst [vmem:[#allocation3 + $0x50] sm:$0xff] %v2388_v10 }
 0x335 PF: > { %2409 = sbr.rel (%p3935_p12) target bundleno = 828 (0x33c), region = 84  ;;  %v6543_v27 = vmov (!%p3935_p12), 0.0  }
 0x336   : > { %2410 = vst [vmem:[#allocation3 + $0x50] sm:$0xff] (!%p3935_p12), %v6543_v27  ;;  %2411 = vst [vmem:[#allocation3 + $0x58] sm:$0xff] (!%p3935_p12), %v6543_v27 }
 0x33c PF: > { %v2551_v16 = vld [vmem:[#allocation12 + $0x80] sm:$0xff]  ;;  %v2552_v18 = vld [vmem:[#allocation12 + $0x88] sm:$0xff]  ;;  %v2553_v36 = vld [vmem:[#allocation12 + $0x90] sm:$0xff]  ;;  %vm7943_vm0 = vcmask 1040384   ;;  %s7965_s25 = sld [smem:[#allocation38_spill]]  ;;  %s7966_s10 = sld [smem:[#allocation23_spill]] }
 0x33d   : > { %v5614_v23 = vpack.c.bf16 %v2552_v18, %v2551_v16  ;;  %v2554_v26 = vld [vmem:[#allocation12 + $0x98] sm:$0xff]  ;;  %v2555_v31 = vld [vmem:[#allocation12 + $0xa0] sm:$0xff]  ;;  %v2556_v48 = vld [vmem:[#allocation12 + $0xa8] sm:$0xff]  ;;  %s7967_s6 = sld [smem:[#allocation24_spill]]  ;;  %s3742_s4 = sshll.u32 %s7032_s15, 4  ;;  %s7722_s4 = int_to_ptr.vmem [resolvable:$true] %s3742_s4 }
 0x33e   : > { %v5618_v57 = vpack.c.bf16 %v2554_v26, %v2553_v36  ;;  %v5622_v32 = vpack.c.bf16 %v2556_v48, %v2555_v31  ;;  %v7457_v53 = vld [vmem:[#allocation3] sm:$0xff]  ;;  %v2557_v61 = vld [vmem:[#allocation12 + $0xb0] sm:$0xff]  ;;  %v2558_v19 = vld [vmem:[#allocation12 + $0xb8] sm:$0xff]  ;;  %s7968_s18 = sld [smem:[#allocation39_spill]]  ;;  %s3727_s13 = scalar_lea.sflag [#allocation6], %s6989_s20 }
 0x33f   : > { %5615 = vmatprep.subr.bf16.mxu1 %v5614_v23  ;;  %4962 = vmatprep.mubr.f32.mxu1 %v7457_v53  ;;  %v5626_v22 = vpack.c.bf16 %v2558_v19, %v2557_v61  ;;  %v2559_v6 = vld [vmem:[#allocation12 + $0xc0] sm:$0xff]  ;;  %v2560_v24 = vld [vmem:[#allocation12 + $0xc8] sm:$0xff]  ;;  %v2561_v51 = vld [vmem:[#allocation12 + $0xd0] sm:$0xff]  ;;  %v2475_v9 = vrot.slane %v7457_v53, 7  ;;  %s6373_s19 = scalar_lea.vmem %s7722_s4, 1024  ;;  %p7969_p0 = scmp.ne.s32.totalorder %s7878_s17, 0 }
 0x340   : > { %5617 = vmatpush3.bf16.msra.mxu1 %v5614_v23  ;;  %v5630_v42 = vpack.c.bf16 %v2560_v24, %v2559_v6  ;;  %v2562_v58 = vld [vmem:[#allocation12 + $0xd8] sm:$0xff]  ;;  %v2563_v47 = vld [vmem:[#allocation12 + $0xe0] sm:$0xff]  ;;  %v2564_v39 = vld [vmem:[#allocation12 + $0xe8] sm:$0xff]  ;;  %p6374_p2 = scmp.ne.s32.totalorder %s7722_s4, %s6373_s19 }
 0x341   : > { %5619 = vmatprep.subr.bf16.mxu1 %v5618_v57  ;;  %v5634_v21 = vpack.c.bf16 %v2562_v58, %v2561_v51  ;;  %v5638_v4 = vpack.c.bf16 %v2564_v39, %v2563_v47  ;;  %v2565_v14 = vld [vmem:[#allocation12 + $0xf0] sm:$0xff]  ;;  %v2566_v43 = vld [vmem:[#allocation12 + $0xf8] sm:$0xff]  ;;  %v2534_v29 = vld [vmem:[#allocation12] sm:$0xff] }
 0x342   : > { %v5642_v30 = vpack.c.bf16 %v2566_v43, %v2565_v14  ;;  %v2535_v40 = vld [vmem:[#allocation12 + $0x8] sm:$0xff]  ;;  %v2536_v2 = vld [vmem:[#allocation12 + $0x10] sm:$0xff]  ;;  %v2537_v59 = vld [vmem:[#allocation12 + $0x18] sm:$0xff]  ;;  %s4001_s1 = sshll.u32 %s7966_s10, 3  ;;  %p6375_p13 = pnand %p6374_p2, %p7969_p0 }
 0x343   : > { %v5646_v45 = vpack.c.bf16 %v2535_v40, %v2534_v29  ;;  %v7460_v0 = vld [vmem:[#allocation3 + $0x8] sm:$0xff]  ;;  %v5650_v54 = vpack.c.bf16 %v2537_v59, %v2536_v2  ;;  %v7462_v52 = vld [vmem:[#allocation3 + $0x10] sm:$0xff]  ;;  %v2538_v41 = vld [vmem:[#allocation12 + $0x20] sm:$0xff]  ;;  %s4002_s16 = sshll.u32 %s7967_s6, 5 }
 0x344   : > { %5621 = vmatpush3.bf16.msra.mxu1 %v5618_v57  ;;  %v2539_v38 = vld [vmem:[#allocation12 + $0x28] sm:$0xff]  ;;  %v7466_v63 = vld [vmem:[#allocation3 + $0x18] sm:$0xff]  ;;  %v7468_v62 = vld [vmem:[#allocation3 + $0x20] sm:$0xff]  ;;  %v2476_v19 = vrot.slane %v7460_v0, 7  ;;  %s3739_s5 = sadd.s32 %s4002_s16, %s4001_s1  ;;  %p6376_p1 = pneg %p6375_p13 }
 0x345   : > { %5623 = vmatprep.subr.bf16.mxu1 %v5622_v32  ;;  %v5654_v13 = vpack.c.bf16 %v2539_v38, %v2538_v41  ;;  %v2540_v25 = vld [vmem:[#allocation12 + $0x30] sm:$0xff]  ;;  %v2541_v1 = vld [vmem:[#allocation12 + $0x38] sm:$0xff]  ;;  %v7474_v5 = vld [vmem:[#allocation3 + $0x28] sm:$0xff]  ;;  %v2480_v51 = vrot.slane %v7466_v63, 7  ;;  %v2482_v47 = vrot.slane %v7468_v62, 7  ;;  %s4003_s21 = sshll.u32 %s3739_s5, 7 }
 0x346   : > { %v7470_v28 = vld [vmem:[#allocation3 + $0x58] sm:$0xff]  ;;  %v5658_v49 = vpack.c.bf16 %v2541_v1, %v2540_v25  ;;  %v7476_v7 = vld [vmem:[#allocation3 + $0x30] sm:$0xff]  ;;  %v2542_v20 = vld [vmem:[#allocation12 + $0x40] sm:$0xff]  ;;  %v2484_v43 = vrot.slane %v7474_v5, 7  ;;  %v2437_v25 = vrot.slane %v7460_v0, 1  ;;  %s7720_s26 = scalar_lea.hbm %s7968_s18, %s4003_s21 }
 0x347   : > { %v2473_v35 = vrot.slane %v7470_v28, 7  ;;  %v2543_v50 = vld [vmem:[#allocation12 + $0x48] sm:$0xff]  ;;  %v7482_v17 = vld [vmem:[#allocation3 + $0x38] sm:$0xff]  ;;  %v2544_v27 = vld [vmem:[#allocation12 + $0x50] sm:$0xff]  ;;  %v2486_v40 = vrot.slane %v7476_v7, 7 }
 0x348   : > { %5625 = vmatpush3.bf16.msra.mxu1 %v5622_v32  ;;  %v5662_v10 = vpack.c.bf16 %v2543_v50, %v2542_v20  ;;  %v2545_v16 = vld [vmem:[#allocation12 + $0x58] sm:$0xff]  ;;  %v2546_v36 = vld [vmem:[#allocation12 + $0x60] sm:$0xff]  ;;  %v2547_v23 = vld [vmem:[#allocation12 + $0x68] sm:$0xff]  ;;  %v7514_v59 = vsel %vm7943_vm0, %v2482_v47, %v2484_v43 }
 0x349   : > { %5627 = vmatprep.subr.bf16.mxu1 %v5626_v22  ;;  %v2509_v12 = vsel %vm7943_vm0, %v2473_v35, %v2475_v9  ;;  %v5666_v18 = vpack.c.bf16 %v2545_v16, %v2544_v27  ;;  %v5670_v26 = vpack.c.bf16 %v2547_v23, %v2546_v36  ;;  %v2548_v57 = vld [vmem:[#allocation12 + $0x70] sm:$0xff]  ;;  %v2549_v31 = vld [vmem:[#allocation12 + $0x78] sm:$0xff]  ;;  %v2778_v32 = vld [vmem:[#allocation12 + $0x100] sm:$0xff] }
 0x34a   : > { %v5674_v48 = vpack.c.bf16 %v2549_v31, %v2548_v57  ;;  %v2779_v61 = vld [vmem:[#allocation12 + $0x108] sm:$0xff]  ;;  %v2780_v6 = vld [vmem:[#allocation12 + $0x110] sm:$0xff]  ;;  %v2781_v24 = vld [vmem:[#allocation12 + $0x118] sm:$0xff] }
 0x34b   : > { %v5678_v34 = vpack.c.bf16 %v2779_v61, %v2778_v32  ;;  %v5682_v58 = vpack.c.bf16 %v2781_v24, %v2780_v6  ;;  %vm7945_vm15 = vmmov %vm7943_vm0  ;;  %v2782_v39 = vld [vmem:[#allocation12 + $0x120] sm:$0xff]  ;;  %v2785_v2 = vld [vmem:[#allocation12 + $0x138] sm:$0xff]  ;;  %v2441_v61 = vrot.slane %v7466_v63, 1  ;;  %v2443_v6 = vrot.slane %v7468_v62, 1 }
 0x34c   : > { %5629 = vmatpush3.bf16.msra.mxu1 %v5626_v22  ;;  %v2478_v22 = vrot.slane %v7462_v52, 7  ;;  %vm7946_vm7 = vmmov %vm7943_vm0  ;;  %v2786_v1 = vld [vmem:[#allocation12 + $0x140] sm:$0xff]  ;;  %v2788_v50 = vld [vmem:[#allocation12 + $0x150] sm:$0xff] }
 0x34d   : > { %5631 = vmatprep.subr.bf16.mxu1 %v5630_v42  ;;  %vm7947_vm14 = vmmov %vm7943_vm0  ;;  %v2790_v27 = vld [vmem:[#allocation12 + $0x160] sm:$0xff]  ;;  %v2791_v16 = vld [vmem:[#allocation12 + $0x168] sm:$0xff] }
 0x34e   : > { %v7502_v14 = vsel %vm7946_vm7, %v2478_v22, %v2480_v51  ;;  %v7506_v29 = vsel %vm7947_vm14, %v2480_v51, %v2482_v47  ;;  %vm7950_vm7 = vcmask 1046528   ;;  %v2792_v36 = vld [vmem:[#allocation12 + $0x170] sm:$0xff]  ;;  %v2793_v23 = vld [vmem:[#allocation12 + $0x178] sm:$0xff]  ;;  %v2908_v57 = vld [vmem:[#allocation12 + $0x180] sm:$0xff]  ;;  %v2445_v51 = vrot.slane %v7474_v5, 1 }
 0x34f   : > { %v2909_v31 = vld [vmem:[#allocation12 + $0x188] sm:$0xff]  ;;  %vm7951_vm14 = vmmov %vm7950_vm7  ;;  %v2915_v15 = vld [vmem:[#allocation12 + $0x1b8] sm:$0xff] }
 0x350   : > { %5633 = vmatpush3.bf16.msra.mxu1 %v5630_v42  ;;  %v5710_v32 = vpack.c.bf16 %v2909_v31, %v2908_v57  ;;  %v2913_v47 = vld [vmem:[#allocation12 + $0x1a8] sm:$0xff]  ;;  %v2923_v57 = vld [vmem:[#allocation12 + $0x1f8] sm:$0xff]  ;;  %v3999_v8 = vld [vmem:[%s7965_s25] ss:$0 sm:$0xff] }
 0x351   : > { %5635 = vmatprep.subr.bf16.mxu1 %v5634_v21  ;;  %v3041_v55 = vld [vmem:[#allocation12 + $0x218] sm:$0xff] }
 0x352   : > { %v3431_v3 = vld [vmem:[#allocation12 + $0x398] sm:$0xff] }
 0x354   : > { %5637 = vmatpush3.bf16.msra.mxu1 %v5634_v21  ;;  %v7495_v21 = vsel %vm7945_vm15, %v2476_v19, %v2478_v22  ;;  %vm7949_vm15 = vmmov %vm7943_vm0 }
 0x355   : > { %5639 = vmatprep.subr.bf16.mxu1 %v5638_v4 }
 0x358   : > { %5641 = vmatpush3.bf16.msra.mxu1 %v5638_v4  ;;  %v2783_v4 = vld [vmem:[#allocation12 + $0x128] sm:$0xff] }
 0x359   : > { %5643 = vmatprep.subr.bf16.mxu1 %v5642_v30 }
 0x35c   : > { %5645 = vmatpush3.bf16.msra.mxu1 %v5642_v30  ;;  %v5686_v30 = vpack.c.bf16 %v2783_v4, %v2782_v39  ;;  %v2447_v4 = vrot.slane %v7476_v7, 1 }
 0x35d   : > { %5647 = vmatprep.subr.bf16.mxu1 %v5646_v45 }
 0x35f   : > { %4963 = vmatmul.mubr.f32.vlgmr.msra.gmra.mrb[0].mxu1 %v7460_v0 }
 0x360   : > { %5649 = vmatpush3.bf16.msra.mxu1 %v5646_v45  ;;  %4965 = vmatprep.mubr.f32.mxu1 %v7462_v52  ;;  %v2784_v45 = vld [vmem:[#allocation12 + $0x130] sm:$0xff] }
 0x361   : > { %5651 = vmatprep.subr.bf16.mxu1 %v5650_v54  ;;  %v5690_v41 = vpack.c.bf16 %v2785_v2, %v2784_v45  ;;  %v7554_v45 = vld [vmem:[#allocation3 + $0x40] sm:$0xff]  ;;  %v2914_v2 = vld [vmem:[#allocation12 + $0x1b0] sm:$0xff] }
 0x363   : > { %4966 = vmatmul.mubr.f32.gmra.mrb[2].mxu1 %v7466_v63 }
 0x364   : > { %5653 = vmatpush3.bf16.msra.mxu1 %v5650_v54  ;;  %4968 = vmatprep.mubr.f32.mxu1 %v7468_v62  ;;  %v2488_v54 = vrot.slane %v7482_v17, 7 }
 0x365   : > { %5655 = vmatprep.subr.bf16.mxu1 %v5654_v13 }
 0x367   : > { %4969 = vmatmul.mubr.f32.gmra.mrb[4].mxu1 %v7474_v5 }
 0x368   : > { %5657 = vmatpush3.bf16.msra.mxu1 %v5654_v13  ;;  %4971 = vmatprep.mubr.f32.mxu1 %v7476_v7  ;;  %v2436_v13 = vrot.slane %v7457_v53, 1 }
 0x369   : > { %5659 = vmatprep.subr.bf16.mxu1 %v5658_v49 }
 0x36a   : > { %v2438_v0 = vsel %vm7950_vm7, %v2436_v13, %v2437_v25 }
 0x36b   : > { %4972 = vmatmul.mubr.f32.gmra.mrb[6].mxu1 %v7482_v17 }
 0x36c   : > { %5661 = vmatpush3.bf16.msra.mxu1 %v5658_v49  ;;  %5006 = vmatprep.mubr.msk.f32.mxu1 %vm7085_vm1, %v2509_v12  ;;  %vm7944_vm1 = vmmov %vm7943_vm0  ;;  %v2787_v49 = vld [vmem:[#allocation12 + $0x148] sm:$0xff] }
 0x36d   : > { %5663 = vmatprep.subr.bf16.mxu1 %v5662_v10  ;;  %v2477_v42 = vsel %vm7944_vm1, %v2475_v9, %v2476_v19  ;;  %vm7948_vm1 = vmmov %vm7943_vm0  ;;  %v7529_v9 = vsel %vm7949_vm15, %v2486_v40, %v2488_v54  ;;  %v5694_v20 = vpack.c.bf16 %v2787_v49, %v2786_v1  ;;  %v2910_v19 = vld [vmem:[#allocation12 + $0x190] sm:$0xff]  ;;  %v5722_v1 = vpack.c.bf16 %v2915_v15, %v2914_v2  ;;  %v3047_v2 = vld [vmem:[#allocation12 + $0x248] sm:$0xff] }
 0x36e   : > { %v7518_v38 = vsel %vm7948_vm1, %v2484_v43, %v2486_v40  ;;  %vm7952_vm0 = vmmov %vm7950_vm7  ;;  %v2449_v40 = vrot.slane %v7482_v17, 1 }
 0x36f   : > { %vm7953_vm1 = vmmov %vm7952_vm0 }
 0x370   : > { %5665 = vmatpush3.bf16.msra.mxu1 %v5662_v10  ;;  %v2789_v10 = vld [vmem:[#allocation12 + $0x158] sm:$0xff]  ;;  %v7547_v39 = vsel %vm7953_vm1, %v2441_v61, %v2443_v6  ;;  %vm7954_vm15 = vmmov %vm7952_vm0 }
 0x371   : > { %5667 = vmatprep.subr.bf16.mxu1 %v5666_v18  ;;  %v5698_v12 = vpack.c.bf16 %v2789_v10, %v2788_v50  ;;  %vm7956_vm7 = vmmov %vm7952_vm0 }
 0x372   : > { %v7565_v49 = vsel %vm7956_vm7, %v2447_v4, %v2449_v40 }
 0x374   : > { %5669 = vmatpush3.bf16.msra.mxu1 %v5666_v18  ;;  %v5702_v18 = vpack.c.bf16 %v2791_v16, %v2790_v27  ;;  %v2919_v27 = vld [vmem:[#allocation12 + $0x1d8] sm:$0xff] }
 0x375   : > { %5671 = vmatprep.subr.bf16.mxu1 %v5670_v26 }
 0x378   : > { %5673 = vmatpush3.bf16.msra.mxu1 %v5670_v26  ;;  %v5706_v26 = vpack.c.bf16 %v2793_v23, %v2792_v36  ;;  %v2921_v36 = vld [vmem:[#allocation12 + $0x1e8] sm:$0xff] }
 0x379   : > { %5675 = vmatprep.subr.bf16.mxu1 %v5674_v48 }
 0x37c   : > { %5677 = vmatpush3.bf16.msra.mxu1 %v5674_v48  ;;  %v2439_v48 = vrot.slane %v7462_v52, 1 }
 0x37d   : > { %5679 = vmatprep.subr.bf16.mxu1 %v5678_v34 }
 0x37e   : > { %v2440_v22 = vsel %vm7951_vm14, %v2437_v25, %v2439_v48  ;;  %v2451_v25 = vrot.slane %v7554_v45, 1  ;;  %vm7957_vm14 = vmmov %vm7952_vm0 }
 0x37f   : > { %5007 = vmatmul.mubr.f32.vlgmr.msra.gmra.mrb[0].mxu1 %v2477_v42  ;;  %v7540_v42 = vsel %vm7952_vm0, %v2439_v48, %v2441_v61  ;;  %v3038_v48 = vld [vmem:[#allocation12 + $0x200] sm:$0xff] }
 0x380   : > { %5681 = vmatpush3.bf16.msra.mxu1 %v5678_v34  ;;  %5009 = vmatprep.mubr.msk.f32.mxu1 %vm7102_vm2, %v7495_v21  ;;  %v2911_v34 = vld [vmem:[#allocation12 + $0x198] sm:$0xff]  ;;  %v7574_v50 = vsel %vm7957_vm14, %v2449_v40, %v2451_v25  ;;  %v3046_v40 = vld [vmem:[#allocation12 + $0x240] sm:$0xff] }
 0x381   : > { %5683 = vmatprep.subr.bf16.mxu1 %v5682_v58  ;;  %v5714_v24 = vpack.c.bf16 %v2911_v34, %v2910_v19  ;;  %v3040_v19 = vld [vmem:[#allocation12 + $0x210] sm:$0xff]  ;;  %v3042_v34 = vld [vmem:[#allocation12 + $0x220] sm:$0xff] }
 0x383   : > { %5010 = vmatmul.mubr.f32.gmra.mrb[2].mxu1 %v7502_v14 }
 0x384   : > { %5685 = vmatpush3.bf16.msra.mxu1 %v5682_v58  ;;  %5012 = vmatprep.mubr.msk.f32.mxu1 %vm7118_vm3, %v7506_v29  ;;  %v2912_v58 = vld [vmem:[#allocation12 + $0x1a0] sm:$0xff] }
 0x385   : > { %5687 = vmatprep.subr.bf16.mxu1 %v5686_v30  ;;  %v5718_v43 = vpack.c.bf16 %v2913_v47, %v2912_v58  ;;  %v3044_v58 = vld [vmem:[#allocation12 + $0x230] sm:$0xff]  ;;  %v3045_v47 = vld [vmem:[#allocation12 + $0x238] sm:$0xff] }
 0x387   : > { %5013 = vmatmul.mubr.f32.gmra.mrb[4].mxu1 %v7514_v59 }
 0x388   : > { %5689 = vmatpush3.bf16.msra.mxu1 %v5686_v30  ;;  %5015 = vmatprep.mubr.msk.f32.mxu1 %vm7130_vm4, %v7518_v38  ;;  %v7551_v30 = vsel %vm7954_vm15, %v2443_v6, %v2445_v51 }
 0x389   : > { %5691 = vmatprep.subr.bf16.mxu1 %v5690_v41 }
 0x38b   : > { %5016 = vmatmul.mubr.f32.gmra.mrb[6].mxu1 %v7529_v9 }
 0x38c   : > { %5693 = vmatpush3.bf16.msra.mxu1 %v5690_v41  ;;  %5050 = vmatprep.mubr.f32.mxu1 %v2438_v0  ;;  %v2917_v0 = vld [vmem:[#allocation12 + $0x1c8] sm:$0xff] }
 0x38d   : > { %5695 = vmatprep.subr.bf16.mxu1 %v5694_v20 }
 0x390   : > { %5697 = vmatpush3.bf16.msra.mxu1 %v5694_v20  ;;  %v2916_v20 = vld [vmem:[#allocation12 + $0x1c0] sm:$0xff] }
 0x391   : > { %5699 = vmatprep.subr.bf16.mxu1 %v5698_v12  ;;  %v5726_v10 = vpack.c.bf16 %v2917_v0, %v2916_v20  ;;  %v3048_v20 = vld [vmem:[#allocation12 + $0x250] sm:$0xff]  ;;  %v3049_v0 = vld [vmem:[#allocation12 + $0x258] sm:$0xff] }
 0x394   : > { %5701 = vmatpush3.bf16.msra.mxu1 %v5698_v12  ;;  %v2918_v12 = vld [vmem:[#allocation12 + $0x1d0] sm:$0xff] }
 0x395   : > { %5703 = vmatprep.subr.bf16.mxu1 %v5702_v18  ;;  %v5730_v16 = vpack.c.bf16 %v2919_v27, %v2918_v12  ;;  %v3051_v12 = vld [vmem:[#allocation12 + $0x268] sm:$0xff] }
 0x398   : > { %5705 = vmatpush3.bf16.msra.mxu1 %v5702_v18  ;;  %v2920_v18 = vld [vmem:[#allocation12 + $0x1e0] sm:$0xff] }
 0x399   : > { %5707 = vmatprep.subr.bf16.mxu1 %v5706_v26  ;;  %v5734_v23 = vpack.c.bf16 %v2921_v36, %v2920_v18  ;;  %v3053_v18 = vld [vmem:[#allocation12 + $0x278] sm:$0xff] }
 0x39c   : > { %5709 = vmatpush3.bf16.msra.mxu1 %v5706_v26  ;;  %v2922_v26 = vld [vmem:[#allocation12 + $0x1f0] sm:$0xff] }
 0x39d   : > { %5711 = vmatprep.subr.bf16.mxu1 %v5710_v32  ;;  %v5738_v31 = vpack.c.bf16 %v2923_v57, %v2922_v26  ;;  %v3169_v26 = vld [vmem:[#allocation12 + $0x288] sm:$0xff] }
 0x39f   : > { %5051 = vmatmul.mubr.msk.f32.vlgmr.msra.gmra.mrb[0].mxu1 %vm7192_vm8, %v2440_v22  ;;  %vm7955_vm8 = vmmov %vm7952_vm0  ;;  %v3043_v22 = vld [vmem:[#allocation12 + $0x228] sm:$0xff] }
 0x3a0   : > { %5713 = vmatpush3.bf16.msra.mxu1 %v5710_v32  ;;  %5053 = vmatprep.mubr.f32.mxu1 %v7540_v42  ;;  %v7561_v41 = vsel %vm7955_vm8, %v2445_v51, %v2447_v4  ;;  %v3039_v32 = vld [vmem:[#allocation12 + $0x208] sm:$0xff]  ;;  %v5750_v6 = vpack.c.bf16 %v3043_v22, %v3042_v34  ;;  %v5754_v4 = vpack.c.bf16 %v3045_v47, %v3044_v58  ;;  %v3176_v22 = vld [vmem:[#allocation12 + $0x2c0] sm:$0xff]  ;;  %v3179_v58 = vld [vmem:[#allocation12 + $0x2d8] sm:$0xff] }
 0x3a1   : > { %5715 = vmatprep.subr.bf16.mxu1 %v5714_v24  ;;  %v5742_v61 = vpack.c.bf16 %v3039_v32, %v3038_v48  ;;  %v7587_v51 = vld [vmem:[#allocation3 + $0x48] sm:$0xff]  ;;  %v3171_v48 = vld [vmem:[#allocation12 + $0x298] sm:$0xff]  ;;  %v3172_v32 = vld [vmem:[#allocation12 + $0x2a0] sm:$0xff] }
 0x3a3   : > { %5054 = vmatmul.mubr.msk.f32.gmra.mrb[2].mxu1 %vm7207_vm9, %v7547_v39 }
 0x3a4   : > { %5717 = vmatpush3.bf16.msra.mxu1 %v5714_v24  ;;  %5056 = vmatprep.mubr.f32.mxu1 %v7551_v30  ;;  %v2490_v24 = vrot.slane %v7554_v45, 7 }
 0x3a5   : > { %5719 = vmatprep.subr.bf16.mxu1 %v5718_v43 }
 0x3a7   : > { %5057 = vmatmul.mubr.msk.f32.gmra.mrb[4].mxu1 %vm7225_vm10, %v7561_v41 }
 0x3a8   : > { %5721 = vmatpush3.bf16.msra.mxu1 %v5718_v43  ;;  %5059 = vmatprep.mubr.f32.mxu1 %v7565_v49 }
 0x3a9   : > { %5723 = vmatprep.subr.bf16.mxu1 %v5722_v1 }
 0x3ab   : > { %5060 = vmatmul.mubr.msk.f32.gmra.mrb[6].mxu1 %vm7241_vm11, %v7574_v50 }
 0x3ac   : > { %5725 = vmatpush3.bf16.msra.mxu1 %v5722_v1  ;;  %5094 = vmatprep.mubr.msk.f32.mxu1 %vm7102_vm2, %v7495_v21  ;;  %v5746_v21 = vpack.c.bf16 %v3041_v55, %v3040_v19  ;;  %vm7958_vm2 = vcmask 1040384   ;;  %v5758_v1 = vpack.c.bf16 %v3047_v2, %v3046_v40  ;;  %v3174_v55 = vld [vmem:[#allocation12 + $0x2b0] sm:$0xff]  ;;  %v3181_v40 = vld [vmem:[#allocation12 + $0x2e8] sm:$0xff] }
 0x3ad   : > { %5727 = vmatprep.subr.bf16.mxu1 %v5726_v10  ;;  %v7597_v43 = vsel %vm7958_vm2, %v2488_v54, %v2490_v24  ;;  %vm7959_vm0 = vmmov %vm7958_vm2  ;;  %v5762_v54 = vpack.c.bf16 %v3049_v0, %v3048_v20  ;;  %v3183_v20 = vld [vmem:[#allocation12 + $0x2f8] sm:$0xff] }
 0x3b0   : > { %5729 = vmatpush3.bf16.msra.mxu1 %v5726_v10  ;;  %v3050_v10 = vld [vmem:[#allocation12 + $0x260] sm:$0xff] }
 0x3b1   : > { %5731 = vmatprep.subr.bf16.mxu1 %v5730_v16  ;;  %v5766_v27 = vpack.c.bf16 %v3051_v12, %v3050_v10  ;;  %v3299_v10 = vld [vmem:[#allocation12 + $0x308] sm:$0xff] }
 0x3b4   : > { %5733 = vmatpush3.bf16.msra.mxu1 %v5730_v16  ;;  %v3052_v16 = vld [vmem:[#allocation12 + $0x270] sm:$0xff] }
 0x3b5   : > { %5735 = vmatprep.subr.bf16.mxu1 %v5734_v23  ;;  %v5770_v36 = vpack.c.bf16 %v3053_v18, %v3052_v16  ;;  %v3301_v16 = vld [vmem:[#allocation12 + $0x318] sm:$0xff]  ;;  %v3302_v18 = vld [vmem:[#allocation12 + $0x320] sm:$0xff] }
 0x3b8   : > { %5737 = vmatpush3.bf16.msra.mxu1 %v5734_v23  ;;  %v3168_v23 = vld [vmem:[#allocation12 + $0x280] sm:$0xff] }
 0x3b9   : > { %5739 = vmatprep.subr.bf16.mxu1 %v5738_v31  ;;  %v5774_v57 = vpack.c.bf16 %v3169_v26, %v3168_v23  ;;  %v2453_v26 = vrot.slane %v7587_v51, 1 }
 0x3bc   : > { %5741 = vmatpush3.bf16.msra.mxu1 %v5738_v31  ;;  %v3170_v31 = vld [vmem:[#allocation12 + $0x290] sm:$0xff] }
 0x3bd   : > { %5743 = vmatprep.subr.bf16.mxu1 %v5742_v61 }
 0x3bf   : > { %5095 = vmatmul.mubr.f32.vlgmr.msra.gmra.mrb[0].mxu1 %v7502_v14  ;;  %v2492_v14 = vrot.slane %v7587_v51, 7 }
 0x3c0   : > { %5745 = vmatpush3.bf16.msra.mxu1 %v5742_v61  ;;  %5097 = vmatprep.mubr.msk.f32.mxu1 %vm7118_vm3, %v7506_v29  ;;  %v3173_v61 = vld [vmem:[#allocation12 + $0x2a8] sm:$0xff] }
 0x3c1   : > { %5747 = vmatprep.subr.bf16.mxu1 %v5746_v21  ;;  %v7606_v15 = vsel %vm7959_vm0, %v2490_v24, %v2492_v14  ;;  %v5782_v19 = vpack.c.bf16 %v3173_v61, %v3172_v32  ;;  %v3178_v24 = vld [vmem:[#allocation12 + $0x2d0] sm:$0xff]  ;;  %v3306_v32 = vld [vmem:[#allocation12 + $0x340] sm:$0xff]  ;;  %v3307_v61 = vld [vmem:[#allocation12 + $0x348] sm:$0xff] }
 0x3c2   : > { %v5794_v47 = vpack.c.bf16 %v3179_v58, %v3178_v24  ;;  %v3312_v24 = vld [vmem:[#allocation12 + $0x370] sm:$0xff]  ;;  %v3313_v58 = vld [vmem:[#allocation12 + $0x378] sm:$0xff] }
 0x3c3   : > { %5098 = vmatmul.mubr.f32.gmra.mrb[2].mxu1 %v7514_v59 }
 0x3c4   : > { %5749 = vmatpush3.bf16.msra.mxu1 %v5746_v21  ;;  %5100 = vmatprep.mubr.msk.f32.mxu1 %vm7130_vm4, %v7518_v38  ;;  %v3175_v21 = vld [vmem:[#allocation12 + $0x2b8] sm:$0xff] }
 0x3c5   : > { %5751 = vmatprep.subr.bf16.mxu1 %v5750_v6  ;;  %v5786_v34 = vpack.c.bf16 %v3175_v21, %v3174_v55  ;;  %v5822_v55 = vpack.c.bf16 %v3307_v61, %v3306_v32  ;;  %v3308_v21 = vld [vmem:[#allocation12 + $0x350] sm:$0xff]  ;;  %v3561_v32 = vld [vmem:[#allocation12 + $0x418] sm:$0xff]  ;;  %v3562_v61 = vld [vmem:[#allocation12 + $0x420] sm:$0xff] }
 0x3c7   : > { %5101 = vmatmul.mubr.f32.gmra.mrb[4].mxu1 %v7529_v9 }
 0x3c8   : > { %5753 = vmatpush3.bf16.msra.mxu1 %v5750_v6  ;;  %5103 = vmatprep.mubr.msk.f32.mxu1 %vm7151_vm5, %v7597_v43  ;;  %v3177_v6 = vld [vmem:[#allocation12 + $0x2c8] sm:$0xff] }
 0x3c9   : > { %5755 = vmatprep.subr.bf16.mxu1 %v5754_v4 }
 0x3cb   : > { %5104 = vmatmul.mubr.f32.gmra.mrb[6].mxu1 %v7606_v15 }
 0x3cc   : > { %5757 = vmatpush3.bf16.msra.mxu1 %v5754_v4  ;;  %5138 = vmatprep.mubr.f32.mxu1 %v7462_v52  ;;  %v5778_v52 = vpack.c.bf16 %v3171_v48, %v3170_v31  ;;  %v3180_v4 = vld [vmem:[#allocation12 + $0x2e0] sm:$0xff]  ;;  %v3304_v31 = vld [vmem:[#allocation12 + $0x330] sm:$0xff]  ;;  %v3305_v48 = vld [vmem:[#allocation12 + $0x338] sm:$0xff] }
 0x3cd   : > { %5759 = vmatprep.subr.bf16.mxu1 %v5758_v1  ;;  %v5798_v2 = vpack.c.bf16 %v3181_v40, %v3180_v4  ;;  %v3428_v4 = vld [vmem:[#allocation12 + $0x380] sm:$0xff]  ;;  %v3429_v40 = vld [vmem:[#allocation12 + $0x388] sm:$0xff] }
 0x3d0   : > { %5761 = vmatpush3.bf16.msra.mxu1 %v5758_v1  ;;  %v3182_v1 = vld [vmem:[#allocation12 + $0x2f0] sm:$0xff] }
 0x3d1   : > { %5763 = vmatprep.subr.bf16.mxu1 %v5762_v54  ;;  %v5802_v0 = vpack.c.bf16 %v3183_v20, %v3182_v1  ;;  %v3430_v1 = vld [vmem:[#allocation12 + $0x390] sm:$0xff]  ;;  %v3432_v20 = vld [vmem:[#allocation12 + $0x3a0] sm:$0xff] }
 0x3d4   : > { %5765 = vmatpush3.bf16.msra.mxu1 %v5762_v54  ;;  %v3298_v54 = vld [vmem:[#allocation12 + $0x300] sm:$0xff] }
 0x3d5   : > { %5767 = vmatprep.subr.bf16.mxu1 %v5766_v27  ;;  %v5806_v12 = vpack.c.bf16 %v3299_v10, %v3298_v54 }
 0x3d8   : > { %5769 = vmatpush3.bf16.msra.mxu1 %v5766_v27  ;;  %v3300_v27 = vld [vmem:[#allocation12 + $0x310] sm:$0xff] }
 0x3d9   : > { %5771 = vmatprep.subr.bf16.mxu1 %v5770_v36 }
 0x3dc   : > { %5773 = vmatpush3.bf16.msra.mxu1 %v5770_v36  ;;  %v3303_v36 = vld [vmem:[#allocation12 + $0x328] sm:$0xff] }
 0x3dd   : > { %5775 = vmatprep.subr.bf16.mxu1 %v5774_v57  ;;  %v5814_v23 = vpack.c.bf16 %v3303_v36, %v3302_v18  ;;  %v3440_v18 = vld [vmem:[#allocation12 + $0x3e0] sm:$0xff]  ;;  %v3442_v36 = vld [vmem:[#allocation12 + $0x3f0] sm:$0xff] }
 0x3df   : > { %5139 = vmatmul.mubr.f32.vlgmr.msra.gmra.mrb[0].mxu1 %v7466_v63  ;;  %v5790_v63 = vpack.c.bf16 %v3177_v6, %v3176_v22  ;;  %v3310_v22 = vld [vmem:[#allocation12 + $0x360] sm:$0xff]  ;;  %v3311_v6 = vld [vmem:[#allocation12 + $0x368] sm:$0xff] }
 0x3e0   : > { %5777 = vmatpush3.bf16.msra.mxu1 %v5774_v57  ;;  %5141 = vmatprep.mubr.f32.mxu1 %v7468_v62  ;;  %v7623_v57 = vld [vmem:[#allocation3 + $0x50] sm:$0xff] }
 0x3e1   : > { %5779 = vmatprep.subr.bf16.mxu1 %v5778_v52  ;;  %v2455_v37 = vrot.slane %v7623_v57, 1  ;;  %v2494_v10 = vrot.slane %v7623_v57, 7 }
 0x3e3   : > { %5142 = vmatmul.mubr.f32.gmra.mrb[2].mxu1 %v7474_v5 }
 0x3e4   : > { %5781 = vmatpush3.bf16.msra.mxu1 %v5778_v52  ;;  %5144 = vmatprep.mubr.f32.mxu1 %v7476_v7 }
 0x3e5   : > { %5783 = vmatprep.subr.bf16.mxu1 %v5782_v19 }
 0x3e7   : > { %5145 = vmatmul.mubr.f32.gmra.mrb[4].mxu1 %v7482_v17 }
 0x3e8   : > { %5785 = vmatpush3.bf16.msra.mxu1 %v5782_v19  ;;  %5147 = vmatprep.mubr.f32.mxu1 %v7554_v45  ;;  %v7642_v19 = vsel %vm7953_vm1, %v2453_v26, %v2455_v37 }
 0x3e9   : > { %5787 = vmatprep.subr.bf16.mxu1 %v5786_v34 }
 0x3eb   : > { %5148 = vmatmul.mubr.f32.gmra.mrb[6].mxu1 %v7587_v51 }
 0x3ec   : > { %5789 = vmatpush3.bf16.msra.mxu1 %v5786_v34  ;;  %5182 = vmatprep.mubr.f32.mxu1 %v7540_v42  ;;  %v5810_v42 = vpack.c.bf16 %v3301_v16, %v3300_v27  ;;  %v3309_v34 = vld [vmem:[#allocation12 + $0x358] sm:$0xff]  ;;  %v3437_v16 = vld [vmem:[#allocation12 + $0x3c8] sm:$0xff] }
 0x3ed   : > { %5791 = vmatprep.subr.bf16.mxu1 %v5790_v63  ;;  %v3435_v27 = vld [vmem:[#allocation12 + $0x3b8] sm:$0xff] }
 0x3f0   : > { %5793 = vmatpush3.bf16.msra.mxu1 %v5790_v63  ;;  %v5830_v63 = vpack.c.bf16 %v3311_v6, %v3310_v22  ;;  %v3566_v6 = vld [vmem:[#allocation12 + $0x440] sm:$0xff] }
 0x3f1   : > { %5795 = vmatprep.subr.bf16.mxu1 %v5794_v47 }
 0x3f4   : > { %5797 = vmatpush3.bf16.msra.mxu1 %v5794_v47  ;;  %v5834_v47 = vpack.c.bf16 %v3313_v58, %v3312_v24  ;;  %v3569_v24 = vld [vmem:[#allocation12 + $0x458] sm:$0xff]  ;;  %v3571_v58 = vld [vmem:[#allocation12 + $0x468] sm:$0xff] }
 0x3f5   : > { %5799 = vmatprep.subr.bf16.mxu1 %v5798_v2 }
 0x3f8   : > { %5801 = vmatpush3.bf16.msra.mxu1 %v5798_v2  ;;  %v5838_v2 = vpack.c.bf16 %v3429_v40, %v3428_v4  ;;  %v3573_v4 = vld [vmem:[#allocation12 + $0x478] sm:$0xff] }
 0x3f9   : > { %5803 = vmatprep.subr.bf16.mxu1 %v5802_v0 }
 0x3fc   : > { %5805 = vmatpush3.bf16.msra.mxu1 %v5802_v0  ;;  %v3433_v0 = vld [vmem:[#allocation12 + $0x3a8] sm:$0xff] }
 0x3fd   : > { %5807 = vmatprep.subr.bf16.mxu1 %v5806_v12  ;;  %v5846_v54 = vpack.c.bf16 %v3433_v0, %v3432_v20 }
 0x3ff   : > { %5183 = vmatmul.mubr.msk.f32.vlgmr.msra.gmra.mrb[0].mxu1 %vm7207_vm9, %v7547_v39  ;;  %v5818_v39 = vpack.c.bf16 %v3305_v48, %v3304_v31  ;;  %vm7960_vm9 = vmmov %vm7953_vm1  ;;  %v3559_v31 = vld [vmem:[#allocation12 + $0x408] sm:$0xff] }
 0x400   : > { %5809 = vmatpush3.bf16.msra.mxu1 %v5806_v12  ;;  %5185 = vmatprep.mubr.f32.mxu1 %v7551_v30  ;;  %v7633_v52 = vsel %vm7960_vm9, %v2451_v25, %v2453_v26  ;;  %v5826_v25 = vpack.c.bf16 %v3309_v34, %v3308_v21  ;;  %v3434_v12 = vld [vmem:[#allocation12 + $0x3b0] sm:$0xff]  ;;  %v3558_v26 = vld [vmem:[#allocation12 + $0x400] sm:$0xff] }
 0x401   : > { %5811 = vmatprep.subr.bf16.mxu1 %v5810_v42  ;;  %v5870_v48 = vpack.c.bf16 %v3559_v31, %v3558_v26  ;;  %v3564_v34 = vld [vmem:[#allocation12 + $0x430] sm:$0xff] }
 0x403   : > { %5186 = vmatmul.mubr.msk.f32.gmra.mrb[2].mxu1 %vm7225_vm10, %v7561_v41 }
 0x404   : > { %5813 = vmatpush3.bf16.msra.mxu1 %v5810_v42  ;;  %5188 = vmatprep.mubr.f32.mxu1 %v7565_v49  ;;  %v3439_v42 = vld [vmem:[#allocation12 + $0x3d8] sm:$0xff] }
 0x405   : > { %5815 = vmatprep.subr.bf16.mxu1 %v5814_v23 }
 0x407   : > { %5189 = vmatmul.mubr.msk.f32.gmra.mrb[4].mxu1 %vm7241_vm11, %v7574_v50 }
 0x408   : > { %5817 = vmatpush3.bf16.msra.mxu1 %v5814_v23  ;;  %5191 = vmatprep.mubr.f32.mxu1 %v7633_v52  ;;  %v3443_v23 = vld [vmem:[#allocation12 + $0x3f8] sm:$0xff] }
 0x409   : > { %5819 = vmatprep.subr.bf16.mxu1 %v5818_v39 }
 0x40b   : > { %5192 = vmatmul.mubr.msk.f32.gmra.mrb[6].mxu1 %vm7260_vm12, %v7642_v19 }
 0x40c   : > { %5821 = vmatpush3.bf16.msra.mxu1 %v5818_v39  ;;  %5226 = vmatprep.mubr.msk.f32.mxu1 %vm7118_vm3, %v7506_v29  ;;  %v5842_v29 = vpack.c.bf16 %v3431_v3, %v3430_v1  ;;  %vm7961_vm3 = vmmov %vm7959_vm0  ;;  %v3560_v39 = vld [vmem:[#allocation12 + $0x410] sm:$0xff] }
 0x40d   : > { %5823 = vmatprep.subr.bf16.mxu1 %v5822_v55  ;;  %v2495_v11 = vsel %vm7961_vm3, %v2492_v14, %v2494_v10  ;;  %v3704_v1 = vld [vmem:[%s6995_s3 + $0x10] sm:$0xff] }
 0x410   : > { %5825 = vmatpush3.bf16.msra.mxu1 %v5822_v55  ;;  %v3563_v55 = vld [vmem:[#allocation12 + $0x428] sm:$0xff] }
 0x411   : > { %5827 = vmatprep.subr.bf16.mxu1 %v5826_v25  ;;  %v5878_v21 = vpack.c.bf16 %v3563_v55, %v3562_v61 }
 0x414   : > { %5829 = vmatpush3.bf16.msra.mxu1 %v5826_v25  ;;  %v3565_v25 = vld [vmem:[#allocation12 + $0x438] sm:$0xff] }
 0x415   : > { %5831 = vmatprep.subr.bf16.mxu1 %v5830_v63  ;;  %v5882_v22 = vpack.c.bf16 %v3565_v25, %v3564_v34 }
 0x418   : > { %5833 = vmatpush3.bf16.msra.mxu1 %v5830_v63  ;;  %v3567_v63 = vld [vmem:[#allocation12 + $0x448] sm:$0xff] }
 0x419   : > { %5835 = vmatprep.subr.bf16.mxu1 %v5834_v47 }
 0x41c   : > { %5837 = vmatpush3.bf16.msra.mxu1 %v5834_v47 }
 0x41d   : > { %5839 = vmatprep.subr.bf16.mxu1 %v5838_v2 }
 0x41f   : > { %5227 = vmatmul.mubr.f32.vlgmr.msra.gmra.mrb[0].mxu1 %v7514_v59  ;;  %v5850_v59 = vpack.c.bf16 %v3435_v27, %v3434_v12  ;;  %v3706_v27 = vld [vmem:[%s6995_s3 + $0x20] sm:$0xff] }
 0x420   : > { %5841 = vmatpush3.bf16.msra.mxu1 %v5838_v2  ;;  %5229 = vmatprep.mubr.msk.f32.mxu1 %vm7130_vm4, %v7518_v38  ;;  %v3436_v38 = vld [vmem:[#allocation12 + $0x3c0] sm:$0xff]  ;;  %vm7962_vm4 = vmmov %vm7959_vm0 }
 0x421   : > { %5843 = vmatprep.subr.bf16.mxu1 %v5842_v29  ;;  %v5854_v33 = vpack.c.bf16 %v3437_v16, %v3436_v38 }
 0x423   : > { %5230 = vmatmul.mubr.f32.gmra.mrb[2].mxu1 %v7529_v9  ;;  %v2496_v9 = vsel %vm7962_vm4, %v2494_v10, %v2473_v35  ;;  %v5866_v35 = vpack.c.bf16 %v3443_v23, %v3442_v36 }
 0x424   : > { %5845 = vmatpush3.bf16.msra.mxu1 %v5842_v29  ;;  %5232 = vmatprep.mubr.msk.f32.mxu1 %vm7151_vm5, %v7597_v43  ;;  %v3438_v43 = vld [vmem:[#allocation12 + $0x3d0] sm:$0xff]  ;;  %vm7963_vm5 = vmmov %vm7953_vm1 }
 0x425   : > { %5847 = vmatprep.subr.bf16.mxu1 %v5846_v54  ;;  %v5858_v14 = vpack.c.bf16 %v3439_v42, %v3438_v43  ;;  %v3708_v42 = vld [vmem:[%s6995_s3 + $0x30] sm:$0xff] }
 0x427   : > { %5233 = vmatmul.mubr.f32.gmra.mrb[4].mxu1 %v7606_v15  ;;  %v3441_v15 = vld [vmem:[#allocation12 + $0x3e8] sm:$0xff] }
 0x428   : > { %5849 = vmatpush3.bf16.msra.mxu1 %v5846_v54  ;;  %5235 = vmatprep.mubr.msk.f32.mxu1 %vm7169_vm6, %v2495_v11  ;;  %v5862_v46 = vpack.c.bf16 %v3441_v15, %v3440_v18  ;;  %vm7964_vm6 = vmmov %vm7953_vm1  ;;  %v3707_v54 = vld [vmem:[%s6995_s3 + $0x28] sm:$0xff] }
 0x429   : > { %5851 = vmatprep.subr.bf16.mxu1 %v5850_v59 }
 0x42b   : > { %5236 = vmatmul.mubr.f32.gmra.mrb[6].mxu1 %v2496_v9  ;;  %v3709_v9 = vld [vmem:[%s6995_s3 + $0x38] sm:$0xff] }
 0x42c   : > { %5853 = vmatpush3.bf16.msra.mxu1 %v5850_v59  ;;  %5270 = vmatprep.mubr.f32.mxu1 %v7468_v62  ;;  %v5874_v62 = vpack.c.bf16 %v3561_v32, %v3560_v39 }
 0x42d   : > { %5855 = vmatprep.subr.bf16.mxu1 %v5854_v33 }
 0x430   : > { %5857 = vmatpush3.bf16.msra.mxu1 %v5854_v33 }
 0x431   : > { %5859 = vmatprep.subr.bf16.mxu1 %v5858_v14 }
 0x434   : > { %5861 = vmatpush3.bf16.msra.mxu1 %v5858_v14 }
 0x435   : > { %5863 = vmatprep.subr.bf16.mxu1 %v5862_v46 }
 0x438   : > { %5865 = vmatpush3.bf16.msra.mxu1 %v5862_v46 }
 0x439   : > { %5867 = vmatprep.subr.bf16.mxu1 %v5866_v35 }
 0x43c   : > { %5869 = vmatpush3.bf16.msra.mxu1 %v5866_v35 }
 0x43d   : > { %5871 = vmatprep.subr.bf16.mxu1 %v5870_v48 }
 0x43f   : > { %5271 = vmatmul.mubr.f32.vlgmr.msra.gmra.mrb[0].mxu1 %v7474_v5  ;;  %v5886_v5 = vpack.c.bf16 %v3567_v63, %v3566_v6 }
 0x440   : > { %5873 = vmatpush3.bf16.msra.mxu1 %v5870_v48  ;;  %5273 = vmatprep.mubr.f32.mxu1 %v7476_v7  ;;  %v3568_v7 = vld [vmem:[#allocation12 + $0x450] sm:$0xff] }
 0x441   : > { %5875 = vmatprep.subr.bf16.mxu1 %v5874_v62 }
 0x443   : > { %5274 = vmatmul.mubr.f32.gmra.mrb[2].mxu1 %v7482_v17  ;;  %v5890_v17 = vpack.c.bf16 %v3569_v24, %v3568_v7 }
 0x444   : > { %5877 = vmatpush3.bf16.msra.mxu1 %v5874_v62  ;;  %5276 = vmatprep.mubr.f32.mxu1 %v7554_v45  ;;  %v3570_v45 = vld [vmem:[#allocation12 + $0x460] sm:$0xff] }
 0x445   : > { %5879 = vmatprep.subr.bf16.mxu1 %v5878_v21  ;;  %v5894_v47 = vpack.c.bf16 %v3571_v58, %v3570_v45 }
 0x447   : > { %5277 = vmatmul.mubr.f32.gmra.mrb[4].mxu1 %v7587_v51  ;;  %v3572_v51 = vld [vmem:[#allocation12 + $0x470] sm:$0xff] }
 0x448   : > { %5881 = vmatpush3.bf16.msra.mxu1 %v5878_v21  ;;  %5279 = vmatprep.mubr.f32.mxu1 %v7623_v57  ;;  %v5898_v40 = vpack.c.bf16 %v3573_v4, %v3572_v51 }
 0x449   : > { %5883 = vmatprep.subr.bf16.mxu1 %v5882_v22 }
 0x44b   : > { %5280 = vmatmul.mubr.f32.gmra.mrb[6].mxu1 %v7470_v28 }
 0x44c   : > { %5885 = vmatpush3.bf16.msra.mxu1 %v5882_v22  ;;  %5314 = vmatprep.mubr.f32.mxu1 %v7551_v30  ;;  %v2457_v30 = vrot.slane %v7470_v28, 1 }
 0x44d   : > { %5887 = vmatprep.subr.bf16.mxu1 %v5886_v5 }
 0x44e   : > { %v2458_v2 = vsel %vm7963_vm5, %v2455_v37, %v2457_v30  ;;  %v2472_v56 = vsel %vm7964_vm6, %v2457_v30, %v2436_v13  ;;  %v3705_v37 = vld [vmem:[%s6995_s3 + $0x18] sm:$0xff] }
 0x450   : > { %5889 = vmatpush3.bf16.msra.mxu1 %v5886_v5 }
 0x451   : > { %5891 = vmatprep.subr.bf16.mxu1 %v5890_v17 }
 0x454   : > { %5893 = vmatpush3.bf16.msra.mxu1 %v5890_v17 }
 0x455   : > { %5895 = vmatprep.subr.bf16.mxu1 %v5894_v47 }
 0x458   : > { %5897 = vmatpush3.bf16.msra.mxu1 %v5894_v47 }
 0x459   : > { %5899 = vmatprep.subr.bf16.mxu1 %v5898_v40 }
 0x45c   : > { %5901 = vmatpush3.bf16.msra.mxu1 %v5898_v40 }
 0x45f   : > { %5315 = vmatmul.mubr.msk.f32.vlgmr.msra.gmra.mrb[0].mxu1 %vm7225_vm10, %v7561_v41  ;;  %v3703_v41 = vld [vmem:[%s6995_s3 + $0x8] sm:$0xff] }
 0x460   : > { %5317 = vmatprep.mubr.f32.mxu1 %v7565_v49 }
 0x463   : > { %5318 = vmatmul.mubr.msk.f32.gmra.mrb[2].mxu1 %vm7241_vm11, %v7574_v50  ;;  %v3702_v50 = vld [vmem:[%s6995_s3] sm:$0xff]  ;;  %s6544_s3 = smov [#allocation13]  }
 0x464   : > { %5320 = vmatprep.mubr.f32.mxu1 %v7633_v52  ;;  %s6377_s0 = sshll.u32 %s6544_s3, 4  ;;  %s6378_s0 = int_to_ptr.vmem [resolvable:$false] %s6377_s0 }
 0x465   : > { %s6379_s12 = scalar_lea.vmem %s6378_s0, 2048  ;;  %p6380_p8 = scmp.lt.s32.totalorder %s7722_s4, %s6378_s0 }
 0x466   : > { %p6381_p5 = scmp.lt.s32.totalorder %s6379_s12, %s6373_s19 }
 0x467   : > { %5321 = vmatmul.mubr.msk.f32.gmra.mrb[4].mxu1 %vm7260_vm12, %v7642_v19 }
 0x468   : > { %5323 = vmatprep.mubr.f32.mxu1 %v2458_v2  ;;  %p6382_p6 = por %p6381_p5, %p6380_p8 }
 0x46a   : > { %p6383_p9 = pnand %p6382_p6, %p6376_p1 }
 0x46b   : > { %5324 = vmatmul.mubr.msk.f32.gmra.mrb[6].mxu1 %vm7277_vm13, %v2472_v56 }
 0x532   : > { %v5316_v28 = vpop.f32.mrb[0].mxu1 }
 0x533   : > { %v3695_v44 = vadd.f32 %v5316_v28, %v3999_v8  ;;  %v3640_v49 = vpop.f32.mrb[1].mxu1 }
 0x534   : > { %v3694_v57 = vadd.f32 %v3999_v8, %v3640_v49 }
 0x535   : > { %v3711_v53 = vadd.f32 %v3703_v41, %v3695_v44 }
 0x536   : > { %v3710_v13 = vadd.f32 %v3702_v50, %v3694_v57  ;;  %v5319_v60 = vpop.f32.mrb[2].mxu1 }
 0x537   : > { %3719 = vst [vmem:[%s7032_s15 + $0x8] sm:$0xff] %v3711_v53  ;;  %v3697_v52 = vadd.f32 %v5319_v60, %v3999_v8  ;;  %v3650_v19 = vpop.f32.mrb[3].mxu1 }
 0x538   : > { %3718 = vst [vmem:[%s7032_s15] sm:$0xff] %v3710_v13  ;;  %v3696_v3 = vadd.f32 %v3999_v8, %v3650_v19 }
 0x539   : > { %v3713_v29 = vadd.f32 %v3705_v37, %v3697_v52 }
 0x53a   : > { %v3712_v20 = vadd.f32 %v3704_v1, %v3696_v3  ;;  %v5322_v0 = vpop.f32.mrb[4].mxu1 }
 0x53b   : > { %3721 = vst [vmem:[%s7032_s15 + $0x18] sm:$0xff] %v3713_v29  ;;  %v3699_v10 = vadd.f32 %v5322_v0, %v3999_v8  ;;  %v3660_v12 = vpop.f32.mrb[5].mxu1 }
 0x53c   : > { %3720 = vst [vmem:[%s7032_s15 + $0x10] sm:$0xff] %v3712_v20  ;;  %v3698_v59 = vadd.f32 %v3999_v8, %v3660_v12 }
 0x53d   : > { %v3715_v11 = vadd.f32 %v3707_v54, %v3699_v10 }
 0x53e   : > { %v3714_v38 = vadd.f32 %v3706_v27, %v3698_v59  ;;  %v5325_v16 = vpop.f32.mrb[6].mxu1 }
 0x53f   : > { %3723 = vst [vmem:[%s7032_s15 + $0x28] sm:$0xff] %v3715_v11  ;;  %v3701_v33 = vadd.f32 %v5325_v16, %v3999_v8  ;;  %v3670_v43 = vpop.f32.mrb[7].mxu1 }
 0x540   : > { %3722 = vst [vmem:[%s7032_s15 + $0x20] sm:$0xff] %v3714_v38  ;;  %v3700_v14 = vadd.f32 %v3999_v8, %v3670_v43 }
 0x541   : > { %v3717_v18 = vadd.f32 %v3709_v9, %v3701_v33 }
 0x542   : > { %v3716_v15 = vadd.f32 %v3708_v42, %v3700_v14 }
 0x543   : > { %3725 = vst [vmem:[%s7032_s15 + $0x38] sm:$0xff] %v3717_v18 }
 0x544   : > { %3724 = vst [vmem:[%s7032_s15 + $0x30] sm:$0xff] %v3716_v15 }
 0x545   : > { %6386 = shalt.err (!%p6383_p9)
}
 0x546   : > { %s6387_s15 = scalar_lea.hbm %s7720_s26, 1024  ;;  %s6391_s10 = scalar_lea.hbm %s7968_s18, 8192 }
 0x547   : > { %p6388_p11 = scmp.ne.s32.totalorder %s7720_s26, %s6387_s15  ;;  %p6392_p4 = scmp.lt.u32.totalorder %s7720_s26, %s7968_s18 }
 0x548   : > { %p6393_p10 = scmp.lt.u32.totalorder %s6391_s10, %s6387_s15  ;;  %p6395_p2 = scmp.lt.u32.totalorder %s6387_s15, %s7720_s26 }
 0x549   : > { %p6389_p3 = pnand %p6388_p11, %p7969_p0 }
 0x54a   : > { %p6394_p12 = por %p6393_p10, %p6392_p4 }
 0x54b   : > { %p6390_p7 = pneg %p6389_p3 }
 0x54c   : > { %p6396_p13 = por %p6395_p2, %p6394_p12 }
 0x54e   : > { %p6397_p1 = pnand %p6396_p13, %p6390_p7 }
 0x550   : > { %6400 = shalt.err (!%p6397_p1)
}
 0x551   : > { %s6545_s16 = smov 128   ;;  %s6546_s5 = smov 8  }
 0x552   : > { %6076 = dma.vmem_to_hbm [thread:$0]  (%p7969_p0), %s7722_s4, 1024, %s7720_s26, %s3727_s13, %s6545_s16, %s6545_s16, %s6546_s5  }
 0x553 PF: > { %p6104_p8 = scmp.ge.s32.totalorder %s6531_s14, 2  ;;  %s3757_s21 = sand.u32 1, %s6503_s30  }
 0x554   : > { %p7970_p5 = scmp.ne.s32.totalorder %s7881_s2, 0  ;;  %s3758_s28 = scalar_lea.sflag [#allocation6], %s3757_s21 }
 0x556   : > { %p6096_p6 = pnand %p6104_p8, %p7970_p5 }
 0x558   : > { %6474 = dma.done.wait (!%p6096_p6), %s3758_s28, 1024  }
 0x559   : > { %6476 = vsyncadd (!%p6096_p6), %s3758_s28, 4294966272  ;;  %s27_s14 = sadd.s32 1, %s6531_s14   ;;  %s7972_s24 = sld [smem:[#allocation20_spill]] }
 0x55a   : > { %p7755_p9 = scmp.ge.s32.totalorder %s27_s14, 10   ;;  %s7973_s25 = sld [smem:[#allocation21_spill]] }
 0x55b   : > { %s7974_s17 = sld [smem:[#allocation22_spill]]  ;;  %s7975_s20 = smov %s6747_s27 }
 0x55c   : > { %s7976_s10 = sld [smem:[#allocation25_spill]]  ;;  %s7977_s2 = sld [smem:[#allocation26_spill]] }
 0x55d   : > { %s7978_s12 = sld [smem:[#allocation28_spill]]  ;;  %s7979_s13 = sld [smem:[#allocation29_spill]] }
 0x55e   : > { %s7981_s26 = smov %s8004_s22  ;;  %s7983_s28 = smov %s6499_s29 }
 0x55f   : > { %s7984_s29 = smov %s7975_s20  ;;  %s7985_s30 = smov %s6507_s8 }
 0x560   : > { %s7986_s8 = smov %s6511_s9  ;;  %s7987_s9 = smov %s6838_s23 }
 0x561   : > { %s7982_s27 = smov %s7974_s17  ;;  %26 = sbr.rel (!%p7755_p9) target bundleno = 22 (0x16), region = 157 }
 0x562   : > { %s7988_s11 = smov %s7977_s2 }
 0x568   :  { %3763 = vsyncpa [#allocation5], 1 }
 0x569   :  { %3765 = vsyncpa [#allocation5 + $0x1], 1 }
 0x56a   :  { %3766 = vsyncpa [#allocation8], 1 }
 0x56b   :  { %3768 = vsyncpa [#allocation8 + $0x1], 1 }
 0x56c   :  { %3769 = vsyncpa [#allocation11], 1 }
 0x56d   :  { %3770 = vsyncpa [#allocation6], 1 }
 0x56e   :  { %3772 = vsyncpa [#allocation6 + $0x1], 1 }

</bundles_post_ra>
